<compile_context>
chip_gen: v6e
topology: v6e:2x2x1
jax: 0.10.0
libtpu: 0.0.40
codegen_flags: <defaults>
</compile_context>

<pallas_src>
import functools

import numpy as np
import jax
import jax.numpy as jnp
from jax.experimental import pallas as pl
from jax.experimental.pallas import tpu as pltpu

EPS = 1e-5


def _bn_rows(x, gamma, beta):
    # Training-mode batch norm: per-channel (row) stats over the N*D*H*W axis.
    mean = jnp.mean(x, axis=1, keepdims=True)
    var = jnp.mean(jnp.square(x - mean), axis=1, keepdims=True)
    return (x - mean) * jax.lax.rsqrt(var + EPS) * gamma + beta


def _swish(x):
    return x * jax.nn.sigmoid(x)


def mbconv_kernel(x_ref, masks_ref, w_exp_ref, g0_ref, b0_ref,
                  w_dw_ref, g1_ref, b1_ref,
                  w_se1_ref, b_se1_ref, w_se2_ref, b_se2_ref,
                  w_proj_ref, g2_ref, b2_ref,
                  out_ref, buf_ref, pooled_ref,
                  *, n_batch, d_dim, h_dim, w_dim, ksize, use_residual):
    Cin, M = x_ref.shape
    Cexp = w_dw_ref.shape[0]
    Wd = w_dim
    HW = h_dim * w_dim
    DHW = d_dim * HW
    P = (ksize - 1) // 2
    CHUNK = 8
    n_chunks = Cexp // CHUNK
    inv_dhw = 1.0 / DHW

    # ---- pass 1 (per 8-channel chunk):
    #      expand (1x1x1) -> BN0 -> swish -> depthwise k^3 -> BN1 -> swish
    #      -> stash activations in buf_ref + SE average pool into pooled_ref.
    def chunk_body(c, carry):
        r0 = pl.multiple_of(c * CHUNK, CHUNK)
        xT = x_ref[...]                                             # (Cin, M)
        wE = w_exp_ref[pl.ds(r0, CHUNK), :]                         # (CHUNK, Cin)
        e = jnp.dot(wE, xT, preferred_element_type=jnp.float32)     # (CHUNK, M)
        e = _swish(_bn_rows(e, g0_ref[pl.ds(r0, CHUNK), :],
                            b0_ref[pl.ds(r0, CHUNK), :]))

        # Depthwise k^3 conv, stride 1, 'same' padding: hierarchical
        # roll + boundary-mask along the flat (n,d,h,w) lane axis.
        # masks_ref rows: 0: w-1 valid  1: w+1  2: h-1  3: h+1  4: d-1  5: d+1
        masks = masks_ref[...]                                      # (8, M)
        wdw = w_dw_ref[pl.ds(r0, CHUNK), :]                         # (CHUNK, k^3)
        acc = jnp.zeros_like(e)
        for kd in range(ksize):
            dz = kd - P
            if dz == 0:
                ez = e
            else:
                row = 4 if dz < 0 else 5
                ez = pltpu.roll(e, (-dz * HW) % M, axis=1) * masks[row:row + 1, :]
            for kh in range(ksize):
                dy = kh - P
                if dy == 0:
                    ezy = ez
                else:
                    row = 2 if dy < 0 else 3
                    ezy = pltpu.roll(ez, (-dy * Wd) % M, axis=1) * masks[row:row + 1, :]
                for kw in range(ksize):
                    dx = kw - P
                    if dx == 0:
                        tap = ezy
                    else:
                        row = 0 if dx < 0 else 1
                        tap = pltpu.roll(ezy, (-dx) % M, axis=1) * masks[row:row + 1, :]
                    k = (kd * ksize + kh) * ksize + kw
                    acc = acc + tap * wdw[:, k:k + 1]

        d = _swish(_bn_rows(acc, g1_ref[pl.ds(r0, CHUNK), :],
                            b1_ref[pl.ds(r0, CHUNK), :]))
        buf_ref[pl.ds(r0, CHUNK), :] = d
        # SE global average pool (per batch segment, lane-aligned slices).
        for n in range(n_batch):
            pooled_ref[pl.ds(r0, CHUNK), n:n + 1] = (
                jnp.sum(d[:, n * DHW:(n + 1) * DHW], axis=1, keepdims=True)
                * inv_dhw)
        return carry

    jax.lax.fori_loop(0, n_chunks, chunk_body, 0)

    # ---- squeeze & excitation (tiny, needs all channels) ----
    s = pooled_ref[:, 0:n_batch]                                    # (Cexp, N)
    h = jnp.dot(w_se1_ref[...], s, preferred_element_type=jnp.float32) + b_se1_ref[...]
    h = jnp.maximum(h, 0.0)
    gate = jax.nn.sigmoid(
        jnp.dot(w_se2_ref[...], h, preferred_element_type=jnp.float32)
        + b_se2_ref[...])                                           # (Cexp, N)

    # ---- SE scale + project (1x1x1) + BN2 + residual ----
    wP = w_proj_ref[...]                                            # (Cout, Cexp)
    parts = []
    for n in range(n_batch):
        dseg = buf_ref[:, n * DHW:(n + 1) * DHW] * gate[:, n:n + 1]  # (Cexp, DHW)
        parts.append(jnp.dot(wP, dseg, preferred_element_type=jnp.float32))
    p = parts[0] if n_batch == 1 else jnp.concatenate(parts, axis=1)  # (Cout, M)
    p = _bn_rows(p, g2_ref[...], b2_ref[...])
    if use_residual:
        p = p + x_ref[...]
    out_ref[...] = p


def _build_shift_masks(n, d, h, w):
    """Rows 0..5: validity of reading (w-1, w+1, h-1, h+1, d-1, d+1)."""
    m = n * d * h * w
    pos = np.arange(m)
    wi = pos % w
    hi = (pos // w) % h
    di = (pos // (w * h)) % d
    rows = np.zeros((8, m), np.float32)
    rows[0] = wi >= 1
    rows[1] = wi <= w - 2
    rows[2] = hi >= 1
    rows[3] = hi <= h - 2
    rows[4] = di >= 1
    rows[5] = di <= d - 2
    return jnp.asarray(rows)


def init_params(key, in_channels, out_channels, kernel_size, expand_ratio,
                se_ratio=0.25):
    cexp = in_channels * expand_ratio
    cred = cexp // int(in_channels * se_ratio)
    ks = jax.random.split(key, 13)

    def nrm(k, shape, scale=0.1):
        return scale * jax.random.normal(k, shape, jnp.float32)

    # Layouts match the nn.Conv3d weights with the trailing 1x1x1 / kxkxk
    # dims flattened (channels-first).
    return dict(
        w_exp=nrm(ks[0], (cexp, in_channels)),       # expand_conv.weight
        g0=1.0 + nrm(ks[1], (cexp, 1)), b0=nrm(ks[2], (cexp, 1)),
        w_dw=nrm(ks[3], (cexp, kernel_size ** 3)),   # depthwise.weight (C,1,k,k,k)
        g1=1.0 + nrm(ks[4], (cexp, 1)), b1=nrm(ks[5], (cexp, 1)),
        w_se1=nrm(ks[6], (cred, cexp)), b_se1=nrm(ks[7], (cred, 1)),
        w_se2=nrm(ks[8], (cexp, cred)), b_se2=nrm(ks[9], (cexp, 1)),
        w_proj=nrm(ks[10], (out_channels, cexp)),    # project_conv.weight
        g2=1.0 + nrm(ks[11], (out_channels, 1)), b2=nrm(ks[12], (out_channels, 1)),
    )


def mbconv_forward(x_ncdhw, params, *, kernel_size=3, stride=1):
    assert stride == 1, "only stride=1 implemented in this synthetic config"
    assert kernel_size == 3, "shift-mask table is built for kernel_size=3"
    N, Cin, D, H, W = x_ncdhw.shape
    Cexp = params["w_dw"].shape[0]
    Cout = params["w_proj"].shape[0]
    M = N * D * H * W
    DHW = D * H * W
    assert M % 128 == 0 and DHW % 128 == 0, "spatial volume must be lane aligned"
    assert Cexp % 8 == 0
    use_residual = (Cin == Cout) and (stride == 1)

    # NCDHW -> channels-first, spatial-flat (C, N*D*H*W): lane-dense layout.
    x_cm = jnp.transpose(x_ncdhw, (1, 0, 2, 3, 4)).reshape(Cin, M)
    masks = _build_shift_masks(N, D, H, W)

    kernel = functools.partial(
        mbconv_kernel, n_batch=N, d_dim=D, h_dim=H, w_dim=W,
        ksize=kernel_size, use_residual=use_residual)

    args = [x_cm, masks,
            params["w_exp"], params["g0"], params["b0"],
            params["w_dw"], params["g1"], params["b1"],
            params["w_se1"], params["b_se1"], params["w_se2"], params["b_se2"],
            params["w_proj"], params["g2"], params["b2"]]

    y_cm = pl.pallas_call(
        kernel,
        out_shape=jax.ShapeDtypeStruct((Cout, M), jnp.float32),
        in_specs=[pl.BlockSpec(memory_space=pltpu.MemorySpace.VMEM)] * len(args),
        out_specs=pl.BlockSpec(memory_space=pltpu.MemorySpace.VMEM),
        scratch_shapes=[
            pltpu.VMEM((Cexp, M), jnp.float32),      # post-BN1/swish activations
            pltpu.VMEM((Cexp, 128), jnp.float32),    # SE pooled stats (cols 0..N-1)
        ],
    )(*args)

    # (Cout, M) -> NCDHW
    return jnp.transpose(y_cm.reshape(Cout, N, D, H, W), (1, 0, 2, 3, 4))


def _reference(x, p, *, ksize, use_residual):
    """Pure-JAX reference of MBConvBlock.forward (training-mode BN)."""
    N, Cin, D, H, W = x.shape
    Cexp = p["w_dw"].shape[0]
    P = (ksize - 1) // 2

    def bn(t, g, b):
        m = t.mean(axis=(0, 2, 3, 4), keepdims=True)
        v = jnp.square(t - m).mean(axis=(0, 2, 3, 4), keepdims=True)
        return ((t - m) * jax.lax.rsqrt(v + EPS) * g.reshape(1, -1, 1, 1, 1)
                + b.reshape(1, -1, 1, 1, 1))

    def swish(t):
        return t * jax.nn.sigmoid(t)

    e = jnp.einsum("ncdhw,ec->nedhw", x, p["w_exp"])
    e = swish(bn(e, p["g0"], p["b0"]))

    e_pad = jnp.pad(e, ((0, 0), (0, 0), (P, P), (P, P), (P, P)))
    wdw = p["w_dw"].reshape(Cexp, ksize, ksize, ksize)
    d = jnp.zeros_like(e)
    for kd in range(ksize):
        for kh in range(ksize):
            for kw in range(ksize):
                tap = e_pad[:, :, kd:kd + D, kh:kh + H, kw:kw + W]
                d = d + tap * wdw[:, kd, kh, kw].reshape(1, Cexp, 1, 1, 1)
    d = swish(bn(d, p["g1"], p["b1"]))

    s = d.mean(axis=(2, 3, 4))                                    # (N, Cexp)
    hh = jax.nn.relu(s @ p["w_se1"].T + p["b_se1"].reshape(1, -1))
    gate = jax.nn.sigmoid(hh @ p["w_se2"].T + p["b_se2"].reshape(1, -1))
    d = d * gate[:, :, None, None, None]

    o = jnp.einsum("ncdhw,oc->nodhw", d, p["w_proj"])
    o = bn(o, p["g2"], p["b2"])
    if use_residual:
        o = o + x
    return o


if __name__ == "__main__":
    key = jax.random.PRNGKey(0)
    kx, kp = jax.random.split(key)

    # MBConvBlock(in_channels=8, out_channels=8, kernel_size=3, stride=1,
    #             expand_ratio=4, se_ratio=0.25, dropout_rate=None)
    N, Cin, D, H, W = 2, 8, 8, 8, 8
    x = jax.random.normal(kx, (N, Cin, D, H, W), jnp.float32)     # PyTorch NCDHW

    params = init_params(kp, in_channels=Cin, out_channels=Cin,
                         kernel_size=3, expand_ratio=4, se_ratio=0.25)

    y = mbconv_forward(x, params, kernel_size=3, stride=1)
    jax.block_until_ready(y)
    assert y.shape == (N, Cin, D, H, W) and y.dtype == jnp.float32

    y_ref = _reference(x, params, ksize=3, use_residual=True)
    err = float(jnp.max(jnp.abs(y - y_ref)))
    assert err < 2e-2, f"mismatch vs pure-JAX reference: max abs err {err}"
    print("KERNEL_OK")
</pallas_src>

<mosaic_0001>
module attributes {stable_mosaic.version = 11 : i64} {
  func.func @mbconv_kernel(%arg0: memref<8x1024xf32, #tpu.memory_space<vmem>>, %arg1: memref<8x1024xf32, #tpu.memory_space<vmem>>, %arg2: memref<32x8xf32, #tpu.memory_space<vmem>>, %arg3: memref<32x1xf32, #tpu.memory_space<vmem>>, %arg4: memref<32x1xf32, #tpu.memory_space<vmem>>, %arg5: memref<32x27xf32, #tpu.memory_space<vmem>>, %arg6: memref<32x1xf32, #tpu.memory_space<vmem>>, %arg7: memref<32x1xf32, #tpu.memory_space<vmem>>, %arg8: memref<16x32xf32, #tpu.memory_space<vmem>>, %arg9: memref<16x1xf32, #tpu.memory_space<vmem>>, %arg10: memref<32x16xf32, #tpu.memory_space<vmem>>, %arg11: memref<32x1xf32, #tpu.memory_space<vmem>>, %arg12: memref<8x32xf32, #tpu.memory_space<vmem>>, %arg13: memref<8x1xf32, #tpu.memory_space<vmem>>, %arg14: memref<8x1xf32, #tpu.memory_space<vmem>>, %arg15: memref<8x1024xf32, #tpu.memory_space<vmem>>, %arg16: memref<32x1024xf32, #tpu.memory_space<vmem>>, %arg17: memref<32x128xf32, #tpu.memory_space<vmem>>) attributes {dimension_semantics = [], scalar_prefetch = 0 : i64, scratch_operands = 2 : i64, tpu.core_type = #tpu.core_type<tc>} {
    %c0_i32 = arith.constant 0 : i32
    %c4_i32 = arith.constant 4 : i32
    %0 = arith.addi %c0_i32, %c4_i32 : i32
    %c1_i32 = arith.constant 1 : i32
    scf.for %arg18 = %c0_i32 to %0 step %c1_i32  : i32 {
      %c8_i32 = arith.constant 8 : i32
      %58 = arith.muli %arg18, %c8_i32 : i32
      %59 = tpu.assume_multiple %58, 8 : i32
      %c0_33 = arith.constant 0 : index
      %c0_34 = arith.constant 0 : index
      %60 = vector.load %arg0[%c0_33, %c0_34] : memref<8x1024xf32, #tpu.memory_space<vmem>>, vector<8x1024xf32>
      %61 = arith.index_cast %59 : i32 to index
      %c0_35 = arith.constant 0 : index
      %62 = vector.load %arg2[%61, %c0_35] : memref<32x8xf32, #tpu.memory_space<vmem>>, vector<8x8xf32>
      %cst_36 = arith.constant dense<0.000000e+00> : vector<8x1024xf32>
      %63 = tpu.matmul %62, %60, %cst_36 {dimension_numbers = #tpu.dot_dimension_numbers<[1], [0], [0], [1], [0, 0, 1, 1], [], []>} : vector<8x8xf32>, vector<8x1024xf32>, vector<8x1024xf32> -> vector<8x1024xf32>
      %64 = arith.index_cast %59 : i32 to index
      %c0_37 = arith.constant 0 : index
      %65 = vector.load %arg3[%64, %c0_37] : memref<32x1xf32, #tpu.memory_space<vmem>>, vector<8x1xf32>
      %66 = arith.index_cast %59 : i32 to index
      %c0_38 = arith.constant 0 : index
      %67 = vector.load %arg4[%66, %c0_38] : memref<32x1xf32, #tpu.memory_space<vmem>>, vector<8x1xf32>
      %cst_39 = arith.constant dense<0.000000e+00> : vector<8xf32>
      %68 = vector.multi_reduction <add>, %63, %cst_39 [1] : vector<8x1024xf32> to vector<8xf32>
      %69 = vector.shape_cast %68 : vector<8xf32> to vector<8x1xf32>
      %cst_40 = arith.constant 1.024000e+03 : f32
      %70 = vector.broadcast %cst_40 : f32 to vector<8x1xf32>
      %71 = arith.divf %69, %70 : vector<8x1xf32>
      %72 = vector.broadcast %71 : vector<8x1xf32> to vector<8x1024xf32>
      %73 = arith.subf %63, %72 : vector<8x1024xf32>
      %74 = arith.mulf %73, %73 : vector<8x1024xf32>
      %cst_41 = arith.constant dense<0.000000e+00> : vector<8xf32>
      %75 = vector.multi_reduction <add>, %74, %cst_41 [1] : vector<8x1024xf32> to vector<8xf32>
      %76 = vector.shape_cast %75 : vector<8xf32> to vector<8x1xf32>
      %cst_42 = arith.constant 1.024000e+03 : f32
      %77 = vector.broadcast %cst_42 : f32 to vector<8x1xf32>
      %78 = arith.divf %76, %77 : vector<8x1xf32>
      %79 = vector.broadcast %71 : vector<8x1xf32> to vector<8x1024xf32>
      %80 = arith.subf %63, %79 : vector<8x1024xf32>
      %cst_43 = arith.constant 9.99999974E-6 : f32
      %81 = vector.broadcast %cst_43 : f32 to vector<8x1xf32>
      %82 = arith.addf %78, %81 : vector<8x1xf32>
      %83 = math.rsqrt %82 : vector<8x1xf32>
      %84 = vector.broadcast %83 : vector<8x1xf32> to vector<8x1024xf32>
      %85 = arith.mulf %80, %84 : vector<8x1024xf32>
      %86 = vector.broadcast %65 : vector<8x1xf32> to vector<8x1024xf32>
      %87 = arith.mulf %85, %86 : vector<8x1024xf32>
      %88 = vector.broadcast %67 : vector<8x1xf32> to vector<8x1024xf32>
      %89 = arith.addf %87, %88 : vector<8x1024xf32>
      %90 = arith.negf %89 : vector<8x1024xf32>
      %91 = math.exp %90 : vector<8x1024xf32>
      %cst_44 = arith.constant 1.000000e+00 : f32
      %92 = vector.broadcast %cst_44 : f32 to vector<8x1024xf32>
      %93 = arith.addf %92, %91 : vector<8x1024xf32>
      %94 = arith.divf %92, %93 : vector<8x1024xf32>
      %95 = arith.mulf %89, %94 : vector<8x1024xf32>
      %c0_45 = arith.constant 0 : index
      %c0_46 = arith.constant 0 : index
      %96 = vector.load %arg1[%c0_45, %c0_46] : memref<8x1024xf32, #tpu.memory_space<vmem>>, vector<8x1024xf32>
      %97 = arith.index_cast %59 : i32 to index
      %c0_47 = arith.constant 0 : index
      %98 = vector.load %arg5[%97, %c0_47] : memref<32x27xf32, #tpu.memory_space<vmem>>, vector<8x27xf32>
      %cst_48 = arith.constant 0.000000e+00 : f32
      %99 = vector.broadcast %cst_48 : f32 to vector<8x1024xf32>
      %c64_i32 = arith.constant 64 : i32
      %100 = tpu.dynamic_rotate %95 by %c64_i32 dim 1 : vector<8x1024xf32>, i32 -> vector<8x1024xf32>
      %101 = vector.extract_strided_slice %96 {offsets = [4, 0], sizes = [1, 1024], strides = [1, 1]} : vector<8x1024xf32> to vector<1x1024xf32>
      %102 = vector.broadcast %101 : vector<1x1024xf32> to vector<8x1024xf32>
      %103 = arith.mulf %100, %102 : vector<8x1024xf32>
      %c8_i32_49 = arith.constant 8 : i32
      %104 = tpu.dynamic_rotate %103 by %c8_i32_49 dim 1 : vector<8x1024xf32>, i32 -> vector<8x1024xf32>
      %105 = vector.extract_strided_slice %96 {offsets = [2, 0], sizes = [1, 1024], strides = [1, 1]} : vector<8x1024xf32> to vector<1x1024xf32>
      %106 = vector.broadcast %105 : vector<1x1024xf32> to vector<8x1024xf32>
      %107 = arith.mulf %104, %106 : vector<8x1024xf32>
      %c1_i32_50 = arith.constant 1 : i32
      %108 = tpu.dynamic_rotate %107 by %c1_i32_50 dim 1 : vector<8x1024xf32>, i32 -> vector<8x1024xf32>
      %109 = vector.extract_strided_slice %96 {offsets = [0, 0], sizes = [1, 1024], strides = [1, 1]} : vector<8x1024xf32> to vector<1x1024xf32>
      %110 = vector.broadcast %109 : vector<1x1024xf32> to vector<8x1024xf32>
      %111 = arith.mulf %108, %110 : vector<8x1024xf32>
      %112 = vector.extract_strided_slice %98 {offsets = [0, 0], sizes = [8, 1], strides = [1, 1]} : vector<8x27xf32> to vector<8x1xf32>
      %113 = vector.broadcast %112 : vector<8x1xf32> to vector<8x1024xf32>
      %114 = arith.mulf %111, %113 : vector<8x1024xf32>
      %115 = arith.addf %99, %114 : vector<8x1024xf32>
      %116 = vector.extract_strided_slice %98 {offsets = [0, 1], sizes = [8, 1], strides = [1, 1]} : vector<8x27xf32> to vector<8x1xf32>
      %117 = vector.broadcast %116 : vector<8x1xf32> to vector<8x1024xf32>
      %118 = arith.mulf %107, %117 : vector<8x1024xf32>
      %119 = arith.addf %115, %118 : vector<8x1024xf32>
      %c1023_i32 = arith.constant 1023 : i32
      %120 = tpu.dynamic_rotate %107 by %c1023_i32 dim 1 : vector<8x1024xf32>, i32 -> vector<8x1024xf32>
      %121 = vector.extract_strided_slice %96 {offsets = [1, 0], sizes = [1, 1024], strides = [1, 1]} : vector<8x1024xf32> to vector<1x1024xf32>
      %122 = vector.broadcast %121 : vector<1x1024xf32> to vector<8x1024xf32>
      %123 = arith.mulf %120, %122 : vector<8x1024xf32>
      %124 = vector.extract_strided_slice %98 {offsets = [0, 2], sizes = [8, 1], strides = [1, 1]} : vector<8x27xf32> to vector<8x1xf32>
      %125 = vector.broadcast %124 : vector<8x1xf32> to vector<8x1024xf32>
      %126 = arith.mulf %123, %125 : vector<8x1024xf32>
      %127 = arith.addf %119, %126 : vector<8x1024xf32>
      %c1_i32_51 = arith.constant 1 : i32
      %128 = tpu.dynamic_rotate %103 by %c1_i32_51 dim 1 : vector<8x1024xf32>, i32 -> vector<8x1024xf32>
      %129 = vector.extract_strided_slice %96 {offsets = [0, 0], sizes = [1, 1024], strides = [1, 1]} : vector<8x1024xf32> to vector<1x1024xf32>
      %130 = vector.broadcast %129 : vector<1x1024xf32> to vector<8x1024xf32>
      %131 = arith.mulf %128, %130 : vector<8x1024xf32>
      %132 = vector.extract_strided_slice %98 {offsets = [0, 3], sizes = [8, 1], strides = [1, 1]} : vector<8x27xf32> to vector<8x1xf32>
      %133 = vector.broadcast %132 : vector<8x1xf32> to vector<8x1024xf32>
      %134 = arith.mulf %131, %133 : vector<8x1024xf32>
      %135 = arith.addf %127, %134 : vector<8x1024xf32>
      %136 = vector.extract_strided_slice %98 {offsets = [0, 4], sizes = [8, 1], strides = [1, 1]} : vector<8x27xf32> to vector<8x1xf32>
      %137 = vector.broadcast %136 : vector<8x1xf32> to vector<8x1024xf32>
      %138 = arith.mulf %103, %137 : vector<8x1024xf32>
      %139 = arith.addf %135, %138 : vector<8x1024xf32>
      %c1023_i32_52 = arith.constant 1023 : i32
      %140 = tpu.dynamic_rotate %103 by %c1023_i32_52 dim 1 : vector<8x1024xf32>, i32 -> vector<8x1024xf32>
      %141 = vector.extract_strided_slice %96 {offsets = [1, 0], sizes = [1, 1024], strides = [1, 1]} : vector<8x1024xf32> to vector<1x1024xf32>
      %142 = vector.broadcast %141 : vector<1x1024xf32> to vector<8x1024xf32>
      %143 = arith.mulf %140, %142 : vector<8x1024xf32>
      %144 = vector.extract_strided_slice %98 {offsets = [0, 5], sizes = [8, 1], strides = [1, 1]} : vector<8x27xf32> to vector<8x1xf32>
      %145 = vector.broadcast %144 : vector<8x1xf32> to vector<8x1024xf32>
      %146 = arith.mulf %143, %145 : vector<8x1024xf32>
      %147 = arith.addf %139, %146 : vector<8x1024xf32>
      %c1016_i32 = arith.constant 1016 : i32
      %148 = tpu.dynamic_rotate %103 by %c1016_i32 dim 1 : vector<8x1024xf32>, i32 -> vector<8x1024xf32>
      %149 = vector.extract_strided_slice %96 {offsets = [3, 0], sizes = [1, 1024], strides = [1, 1]} : vector<8x1024xf32> to vector<1x1024xf32>
      %150 = vector.broadcast %149 : vector<1x1024xf32> to vector<8x1024xf32>
      %151 = arith.mulf %148, %150 : vector<8x1024xf32>
      %c1_i32_53 = arith.constant 1 : i32
      %152 = tpu.dynamic_rotate %151 by %c1_i32_53 dim 1 : vector<8x1024xf32>, i32 -> vector<8x1024xf32>
      %153 = vector.extract_strided_slice %96 {offsets = [0, 0], sizes = [1, 1024], strides = [1, 1]} : vector<8x1024xf32> to vector<1x1024xf32>
      %154 = vector.broadcast %153 : vector<1x1024xf32> to vector<8x1024xf32>
      %155 = arith.mulf %152, %154 : vector<8x1024xf32>
      %156 = vector.extract_strided_slice %98 {offsets = [0, 6], sizes = [8, 1], strides = [1, 1]} : vector<8x27xf32> to vector<8x1xf32>
      %157 = vector.broadcast %156 : vector<8x1xf32> to vector<8x1024xf32>
      %158 = arith.mulf %155, %157 : vector<8x1024xf32>
      %159 = arith.addf %147, %158 : vector<8x1024xf32>
      %160 = vector.extract_strided_slice %98 {offsets = [0, 7], sizes = [8, 1], strides = [1, 1]} : vector<8x27xf32> to vector<8x1xf32>
      %161 = vector.broadcast %160 : vector<8x1xf32> to vector<8x1024xf32>
      %162 = arith.mulf %151, %161 : vector<8x1024xf32>
      %163 = arith.addf %159, %162 : vector<8x1024xf32>
      %c1023_i32_54 = arith.constant 1023 : i32
      %164 = tpu.dynamic_rotate %151 by %c1023_i32_54 dim 1 : vector<8x1024xf32>, i32 -> vector<8x1024xf32>
      %165 = vector.extract_strided_slice %96 {offsets = [1, 0], sizes = [1, 1024], strides = [1, 1]} : vector<8x1024xf32> to vector<1x1024xf32>
      %166 = vector.broadcast %165 : vector<1x1024xf32> to vector<8x1024xf32>
      %167 = arith.mulf %164, %166 : vector<8x1024xf32>
      %168 = vector.extract_strided_slice %98 {offsets = [0, 8], sizes = [8, 1], strides = [1, 1]} : vector<8x27xf32> to vector<8x1xf32>
      %169 = vector.broadcast %168 : vector<8x1xf32> to vector<8x1024xf32>
      %170 = arith.mulf %167, %169 : vector<8x1024xf32>
      %171 = arith.addf %163, %170 : vector<8x1024xf32>
      %c8_i32_55 = arith.constant 8 : i32
      %172 = tpu.dynamic_rotate %95 by %c8_i32_55 dim 1 : vector<8x1024xf32>, i32 -> vector<8x1024xf32>
      %173 = vector.extract_strided_slice %96 {offsets = [2, 0], sizes = [1, 1024], strides = [1, 1]} : vector<8x1024xf32> to vector<1x1024xf32>
      %174 = vector.broadcast %173 : vector<1x1024xf32> to vector<8x1024xf32>
      %175 = arith.mulf %172, %174 : vector<8x1024xf32>
      %c1_i32_56 = arith.constant 1 : i32
      %176 = tpu.dynamic_rotate %175 by %c1_i32_56 dim 1 : vector<8x1024xf32>, i32 -> vector<8x1024xf32>
      %177 = vector.extract_strided_slice %96 {offsets = [0, 0], sizes = [1, 1024], strides = [1, 1]} : vector<8x1024xf32> to vector<1x1024xf32>
      %178 = vector.broadcast %177 : vector<1x1024xf32> to vector<8x1024xf32>
      %179 = arith.mulf %176, %178 : vector<8x1024xf32>
      %180 = vector.extract_strided_slice %98 {offsets = [0, 9], sizes = [8, 1], strides = [1, 1]} : vector<8x27xf32> to vector<8x1xf32>
      %181 = vector.broadcast %180 : vector<8x1xf32> to vector<8x1024xf32>
      %182 = arith.mulf %179, %181 : vector<8x1024xf32>
      %183 = arith.addf %171, %182 : vector<8x1024xf32>
      %184 = vector.extract_strided_slice %98 {offsets = [0, 10], sizes = [8, 1], strides = [1, 1]} : vector<8x27xf32> to vector<8x1xf32>
      %185 = vector.broadcast %184 : vector<8x1xf32> to vector<8x1024xf32>
      %186 = arith.mulf %175, %185 : vector<8x1024xf32>
      %187 = arith.addf %183, %186 : vector<8x1024xf32>
      %c1023_i32_57 = arith.constant 1023 : i32
      %188 = tpu.dynamic_rotate %175 by %c1023_i32_57 dim 1 : vector<8x1024xf32>, i32 -> vector<8x1024xf32>
      %189 = vector.extract_strided_slice %96 {offsets = [1, 0], sizes = [1, 1024], strides = [1, 1]} : vector<8x1024xf32> to vector<1x1024xf32>
      %190 = vector.broadcast %189 : vector<1x1024xf32> to vector<8x1024xf32>
      %191 = arith.mulf %188, %190 : vector<8x1024xf32>
      %192 = vector.extract_strided_slice %98 {offsets = [0, 11], sizes = [8, 1], strides = [1, 1]} : vector<8x27xf32> to vector<8x1xf32>
      %193 = vector.broadcast %192 : vector<8x1xf32> to vector<8x1024xf32>
      %194 = arith.mulf %191, %193 : vector<8x1024xf32>
      %195 = arith.addf %187, %194 : vector<8x1024xf32>
      %c1_i32_58 = arith.constant 1 : i32
      %196 = tpu.dynamic_rotate %95 by %c1_i32_58 dim 1 : vector<8x1024xf32>, i32 -> vector<8x1024xf32>
      %197 = vector.extract_strided_slice %96 {offsets = [0, 0], sizes = [1, 1024], strides = [1, 1]} : vector<8x1024xf32> to vector<1x1024xf32>
      %198 = vector.broadcast %197 : vector<1x1024xf32> to vector<8x1024xf32>
      %199 = arith.mulf %196, %198 : vector<8x1024xf32>
      %200 = vector.extract_strided_slice %98 {offsets = [0, 12], sizes = [8, 1], strides = [1, 1]} : vector<8x27xf32> to vector<8x1xf32>
      %201 = vector.broadcast %200 : vector<8x1xf32> to vector<8x1024xf32>
      %202 = arith.mulf %199, %201 : vector<8x1024xf32>
      %203 = arith.addf %195, %202 : vector<8x1024xf32>
      %204 = vector.extract_strided_slice %98 {offsets = [0, 13], sizes = [8, 1], strides = [1, 1]} : vector<8x27xf32> to vector<8x1xf32>
      %205 = vector.broadcast %204 : vector<8x1xf32> to vector<8x1024xf32>
      %206 = arith.mulf %95, %205 : vector<8x1024xf32>
      %207 = arith.addf %203, %206 : vector<8x1024xf32>
      %c1023_i32_59 = arith.constant 1023 : i32
      %208 = tpu.dynamic_rotate %95 by %c1023_i32_59 dim 1 : vector<8x1024xf32>, i32 -> vector<8x1024xf32>
      %209 = vector.extract_strided_slice %96 {offsets = [1, 0], sizes = [1, 1024], strides = [1, 1]} : vector<8x1024xf32> to vector<1x1024xf32>
      %210 = vector.broadcast %209 : vector<1x1024xf32> to vector<8x1024xf32>
      %211 = arith.mulf %208, %210 : vector<8x1024xf32>
      %212 = vector.extract_strided_slice %98 {offsets = [0, 14], sizes = [8, 1], strides = [1, 1]} : vector<8x27xf32> to vector<8x1xf32>
      %213 = vector.broadcast %212 : vector<8x1xf32> to vector<8x1024xf32>
      %214 = arith.mulf %211, %213 : vector<8x1024xf32>
      %215 = arith.addf %207, %214 : vector<8x1024xf32>
      %c1016_i32_60 = arith.constant 1016 : i32
      %216 = tpu.dynamic_rotate %95 by %c1016_i32_60 dim 1 : vector<8x1024xf32>, i32 -> vector<8x1024xf32>
      %217 = vector.extract_strided_slice %96 {offsets = [3, 0], sizes = [1, 1024], strides = [1, 1]} : vector<8x1024xf32> to vector<1x1024xf32>
      %218 = vector.broadcast %217 : vector<1x1024xf32> to vector<8x1024xf32>
      %219 = arith.mulf %216, %218 : vector<8x1024xf32>
      %c1_i32_61 = arith.constant 1 : i32
      %220 = tpu.dynamic_rotate %219 by %c1_i32_61 dim 1 : vector<8x1024xf32>, i32 -> vector<8x1024xf32>
      %221 = vector.extract_strided_slice %96 {offsets = [0, 0], sizes = [1, 1024], strides = [1, 1]} : vector<8x1024xf32> to vector<1x1024xf32>
      %222 = vector.broadcast %221 : vector<1x1024xf32> to vector<8x1024xf32>
      %223 = arith.mulf %220, %222 : vector<8x1024xf32>
      %224 = vector.extract_strided_slice %98 {offsets = [0, 15], sizes = [8, 1], strides = [1, 1]} : vector<8x27xf32> to vector<8x1xf32>
      %225 = vector.broadcast %224 : vector<8x1xf32> to vector<8x1024xf32>
      %226 = arith.mulf %223, %225 : vector<8x1024xf32>
      %227 = arith.addf %215, %226 : vector<8x1024xf32>
      %228 = vector.extract_strided_slice %98 {offsets = [0, 16], sizes = [8, 1], strides = [1, 1]} : vector<8x27xf32> to vector<8x1xf32>
      %229 = vector.broadcast %228 : vector<8x1xf32> to vector<8x1024xf32>
      %230 = arith.mulf %219, %229 : vector<8x1024xf32>
      %231 = arith.addf %227, %230 : vector<8x1024xf32>
      %c1023_i32_62 = arith.constant 1023 : i32
      %232 = tpu.dynamic_rotate %219 by %c1023_i32_62 dim 1 : vector<8x1024xf32>, i32 -> vector<8x1024xf32>
      %233 = vector.extract_strided_slice %96 {offsets = [1, 0], sizes = [1, 1024], strides = [1, 1]} : vector<8x1024xf32> to vector<1x1024xf32>
      %234 = vector.broadcast %233 : vector<1x1024xf32> to vector<8x1024xf32>
      %235 = arith.mulf %232, %234 : vector<8x1024xf32>
      %236 = vector.extract_strided_slice %98 {offsets = [0, 17], sizes = [8, 1], strides = [1, 1]} : vector<8x27xf32> to vector<8x1xf32>
      %237 = vector.broadcast %236 : vector<8x1xf32> to vector<8x1024xf32>
      %238 = arith.mulf %235, %237 : vector<8x1024xf32>
      %239 = arith.addf %231, %238 : vector<8x1024xf32>
      %c960_i32 = arith.constant 960 : i32
      %240 = tpu.dynamic_rotate %95 by %c960_i32 dim 1 : vector<8x1024xf32>, i32 -> vector<8x1024xf32>
      %241 = vector.extract_strided_slice %96 {offsets = [5, 0], sizes = [1, 1024], strides = [1, 1]} : vector<8x1024xf32> to vector<1x1024xf32>
      %242 = vector.broadcast %241 : vector<1x1024xf32> to vector<8x1024xf32>
      %243 = arith.mulf %240, %242 : vector<8x1024xf32>
      %c8_i32_63 = arith.constant 8 : i32
      %244 = tpu.dynamic_rotate %243 by %c8_i32_63 dim 1 : vector<8x1024xf32>, i32 -> vector<8x1024xf32>
      %245 = vector.extract_strided_slice %96 {offsets = [2, 0], sizes = [1, 1024], strides = [1, 1]} : vector<8x1024xf32> to vector<1x1024xf32>
      %246 = vector.broadcast %245 : vector<1x1024xf32> to vector<8x1024xf32>
      %247 = arith.mulf %244, %246 : vector<8x1024xf32>
      %c1_i32_64 = arith.constant 1 : i32
      %248 = tpu.dynamic_rotate %247 by %c1_i32_64 dim 1 : vector<8x1024xf32>, i32 -> vector<8x1024xf32>
      %249 = vector.extract_strided_slice %96 {offsets = [0, 0], sizes = [1, 1024], strides = [1, 1]} : vector<8x1024xf32> to vector<1x1024xf32>
      %250 = vector.broadcast %249 : vector<1x1024xf32> to vector<8x1024xf32>
      %251 = arith.mulf %248, %250 : vector<8x1024xf32>
      %252 = vector.extract_strided_slice %98 {offsets = [0, 18], sizes = [8, 1], strides = [1, 1]} : vector<8x27xf32> to vector<8x1xf32>
      %253 = vector.broadcast %252 : vector<8x1xf32> to vector<8x1024xf32>
      %254 = arith.mulf %251, %253 : vector<8x1024xf32>
      %255 = arith.addf %239, %254 : vector<8x1024xf32>
      %256 = vector.extract_strided_slice %98 {offsets = [0, 19], sizes = [8, 1], strides = [1, 1]} : vector<8x27xf32> to vector<8x1xf32>
      %257 = vector.broadcast %256 : vector<8x1xf32> to vector<8x1024xf32>
      %258 = arith.mulf %247, %257 : vector<8x1024xf32>
      %259 = arith.addf %255, %258 : vector<8x1024xf32>
      %c1023_i32_65 = arith.constant 1023 : i32
      %260 = tpu.dynamic_rotate %247 by %c1023_i32_65 dim 1 : vector<8x1024xf32>, i32 -> vector<8x1024xf32>
      %261 = vector.extract_strided_slice %96 {offsets = [1, 0], sizes = [1, 1024], strides = [1, 1]} : vector<8x1024xf32> to vector<1x1024xf32>
      %262 = vector.broadcast %261 : vector<1x1024xf32> to vector<8x1024xf32>
      %263 = arith.mulf %260, %262 : vector<8x1024xf32>
      %264 = vector.extract_strided_slice %98 {offsets = [0, 20], sizes = [8, 1], strides = [1, 1]} : vector<8x27xf32> to vector<8x1xf32>
      %265 = vector.broadcast %264 : vector<8x1xf32> to vector<8x1024xf32>
      %266 = arith.mulf %263, %265 : vector<8x1024xf32>
      %267 = arith.addf %259, %266 : vector<8x1024xf32>
      %c1_i32_66 = arith.constant 1 : i32
      %268 = tpu.dynamic_rotate %243 by %c1_i32_66 dim 1 : vector<8x1024xf32>, i32 -> vector<8x1024xf32>
      %269 = vector.extract_strided_slice %96 {offsets = [0, 0], sizes = [1, 1024], strides = [1, 1]} : vector<8x1024xf32> to vector<1x1024xf32>
      %270 = vector.broadcast %269 : vector<1x1024xf32> to vector<8x1024xf32>
      %271 = arith.mulf %268, %270 : vector<8x1024xf32>
      %272 = vector.extract_strided_slice %98 {offsets = [0, 21], sizes = [8, 1], strides = [1, 1]} : vector<8x27xf32> to vector<8x1xf32>
      %273 = vector.broadcast %272 : vector<8x1xf32> to vector<8x1024xf32>
      %274 = arith.mulf %271, %273 : vector<8x1024xf32>
      %275 = arith.addf %267, %274 : vector<8x1024xf32>
      %276 = vector.extract_strided_slice %98 {offsets = [0, 22], sizes = [8, 1], strides = [1, 1]} : vector<8x27xf32> to vector<8x1xf32>
      %277 = vector.broadcast %276 : vector<8x1xf32> to vector<8x1024xf32>
      %278 = arith.mulf %243, %277 : vector<8x1024xf32>
      %279 = arith.addf %275, %278 : vector<8x1024xf32>
      %c1023_i32_67 = arith.constant 1023 : i32
      %280 = tpu.dynamic_rotate %243 by %c1023_i32_67 dim 1 : vector<8x1024xf32>, i32 -> vector<8x1024xf32>
      %281 = vector.extract_strided_slice %96 {offsets = [1, 0], sizes = [1, 1024], strides = [1, 1]} : vector<8x1024xf32> to vector<1x1024xf32>
      %282 = vector.broadcast %281 : vector<1x1024xf32> to vector<8x1024xf32>
      %283 = arith.mulf %280, %282 : vector<8x1024xf32>
      %284 = vector.extract_strided_slice %98 {offsets = [0, 23], sizes = [8, 1], strides = [1, 1]} : vector<8x27xf32> to vector<8x1xf32>
      %285 = vector.broadcast %284 : vector<8x1xf32> to vector<8x1024xf32>
      %286 = arith.mulf %283, %285 : vector<8x1024xf32>
      %287 = arith.addf %279, %286 : vector<8x1024xf32>
      %c1016_i32_68 = arith.constant 1016 : i32
      %288 = tpu.dynamic_rotate %243 by %c1016_i32_68 dim 1 : vector<8x1024xf32>, i32 -> vector<8x1024xf32>
      %289 = vector.extract_strided_slice %96 {offsets = [3, 0], sizes = [1, 1024], strides = [1, 1]} : vector<8x1024xf32> to vector<1x1024xf32>
      %290 = vector.broadcast %289 : vector<1x1024xf32> to vector<8x1024xf32>
      %291 = arith.mulf %288, %290 : vector<8x1024xf32>
      %c1_i32_69 = arith.constant 1 : i32
      %292 = tpu.dynamic_rotate %291 by %c1_i32_69 dim 1 : vector<8x1024xf32>, i32 -> vector<8x1024xf32>
      %293 = vector.extract_strided_slice %96 {offsets = [0, 0], sizes = [1, 1024], strides = [1, 1]} : vector<8x1024xf32> to vector<1x1024xf32>
      %294 = vector.broadcast %293 : vector<1x1024xf32> to vector<8x1024xf32>
      %295 = arith.mulf %292, %294 : vector<8x1024xf32>
      %296 = vector.extract_strided_slice %98 {offsets = [0, 24], sizes = [8, 1], strides = [1, 1]} : vector<8x27xf32> to vector<8x1xf32>
      %297 = vector.broadcast %296 : vector<8x1xf32> to vector<8x1024xf32>
      %298 = arith.mulf %295, %297 : vector<8x1024xf32>
      %299 = arith.addf %287, %298 : vector<8x1024xf32>
      %300 = vector.extract_strided_slice %98 {offsets = [0, 25], sizes = [8, 1], strides = [1, 1]} : vector<8x27xf32> to vector<8x1xf32>
      %301 = vector.broadcast %300 : vector<8x1xf32> to vector<8x1024xf32>
      %302 = arith.mulf %291, %301 : vector<8x1024xf32>
      %303 = arith.addf %299, %302 : vector<8x1024xf32>
      %c1023_i32_70 = arith.constant 1023 : i32
      %304 = tpu.dynamic_rotate %291 by %c1023_i32_70 dim 1 : vector<8x1024xf32>, i32 -> vector<8x1024xf32>
      %305 = vector.extract_strided_slice %96 {offsets = [1, 0], sizes = [1, 1024], strides = [1, 1]} : vector<8x1024xf32> to vector<1x1024xf32>
      %306 = vector.broadcast %305 : vector<1x1024xf32> to vector<8x1024xf32>
      %307 = arith.mulf %304, %306 : vector<8x1024xf32>
      %308 = vector.extract_strided_slice %98 {offsets = [0, 26], sizes = [8, 1], strides = [1, 1]} : vector<8x27xf32> to vector<8x1xf32>
      %309 = vector.broadcast %308 : vector<8x1xf32> to vector<8x1024xf32>
      %310 = arith.mulf %307, %309 : vector<8x1024xf32>
      %311 = arith.addf %303, %310 : vector<8x1024xf32>
      %312 = arith.index_cast %59 : i32 to index
      %c0_71 = arith.constant 0 : index
      %313 = vector.load %arg6[%312, %c0_71] : memref<32x1xf32, #tpu.memory_space<vmem>>, vector<8x1xf32>
      %314 = arith.index_cast %59 : i32 to index
      %c0_72 = arith.constant 0 : index
      %315 = vector.load %arg7[%314, %c0_72] : memref<32x1xf32, #tpu.memory_space<vmem>>, vector<8x1xf32>
      %cst_73 = arith.constant dense<0.000000e+00> : vector<8xf32>
      %316 = vector.multi_reduction <add>, %311, %cst_73 [1] : vector<8x1024xf32> to vector<8xf32>
      %317 = vector.shape_cast %316 : vector<8xf32> to vector<8x1xf32>
      %cst_74 = arith.constant 1.024000e+03 : f32
      %318 = vector.broadcast %cst_74 : f32 to vector<8x1xf32>
      %319 = arith.divf %317, %318 : vector<8x1xf32>
      %320 = vector.broadcast %319 : vector<8x1xf32> to vector<8x1024xf32>
      %321 = arith.subf %311, %320 : vector<8x1024xf32>
      %322 = arith.mulf %321, %321 : vector<8x1024xf32>
      %cst_75 = arith.constant dense<0.000000e+00> : vector<8xf32>
      %323 = vector.multi_reduction <add>, %322, %cst_75 [1] : vector<8x1024xf32> to vector<8xf32>
      %324 = vector.shape_cast %323 : vector<8xf32> to vector<8x1xf32>
      %cst_76 = arith.constant 1.024000e+03 : f32
      %325 = vector.broadcast %cst_76 : f32 to vector<8x1xf32>
      %326 = arith.divf %324, %325 : vector<8x1xf32>
      %327 = vector.broadcast %319 : vector<8x1xf32> to vector<8x1024xf32>
      %328 = arith.subf %311, %327 : vector<8x1024xf32>
      %cst_77 = arith.constant 9.99999974E-6 : f32
      %329 = vector.broadcast %cst_77 : f32 to vector<8x1xf32>
      %330 = arith.addf %326, %329 : vector<8x1xf32>
      %331 = math.rsqrt %330 : vector<8x1xf32>
      %332 = vector.broadcast %331 : vector<8x1xf32> to vector<8x1024xf32>
      %333 = arith.mulf %328, %332 : vector<8x1024xf32>
      %334 = vector.broadcast %313 : vector<8x1xf32> to vector<8x1024xf32>
      %335 = arith.mulf %333, %334 : vector<8x1024xf32>
      %336 = vector.broadcast %315 : vector<8x1xf32> to vector<8x1024xf32>
      %337 = arith.addf %335, %336 : vector<8x1024xf32>
      %338 = arith.negf %337 : vector<8x1024xf32>
      %339 = math.exp %338 : vector<8x1024xf32>
      %cst_78 = arith.constant 1.000000e+00 : f32
      %340 = vector.broadcast %cst_78 : f32 to vector<8x1024xf32>
      %341 = arith.addf %340, %339 : vector<8x1024xf32>
      %342 = arith.divf %340, %341 : vector<8x1024xf32>
      %343 = arith.mulf %337, %342 : vector<8x1024xf32>
      %344 = arith.index_cast %59 : i32 to index
      %c0_79 = arith.constant 0 : index
      %345 = vector.load %arg16[%344, %c0_79] : memref<32x1024xf32, #tpu.memory_space<vmem>>, vector<8x1024xf32>
      tpu.vector_store %arg16[%344, %c0_79], %343 {strides = array<i32>} : memref<32x1024xf32, #tpu.memory_space<vmem>>, vector<8x1024xf32>,
      %346 = vector.extract_strided_slice %343 {offsets = [0, 0], sizes = [8, 512], strides = [1, 1]} : vector<8x1024xf32> to vector<8x512xf32>
      %cst_80 = arith.constant dense<0.000000e+00> : vector<8xf32>
      %347 = vector.multi_reduction <add>, %346, %cst_80 [1] : vector<8x512xf32> to vector<8xf32>
      %348 = vector.shape_cast %347 : vector<8xf32> to vector<8x1xf32>
      %cst_81 = arith.constant 0.001953125 : f32
      %349 = vector.broadcast %cst_81 : f32 to vector<8x1xf32>
      %350 = arith.mulf %348, %349 : vector<8x1xf32>
      %351 = arith.index_cast %59 : i32 to index
      %c0_82 = arith.constant 0 : index
      %352 = vector.load %arg17[%351, %c0_82] : memref<32x128xf32, #tpu.memory_space<vmem>>, vector<8x1xf32>
      tpu.vector_store %arg17[%351, %c0_82], %350 {strides = array<i32>} : memref<32x128xf32, #tpu.memory_space<vmem>>, vector<8x1xf32>,
      %353 = vector.extract_strided_slice %343 {offsets = [0, 512], sizes = [8, 512], strides = [1, 1]} : vector<8x1024xf32> to vector<8x512xf32>
      %cst_83 = arith.constant dense<0.000000e+00> : vector<8xf32>
      %354 = vector.multi_reduction <add>, %353, %cst_83 [1] : vector<8x512xf32> to vector<8xf32>
      %355 = vector.shape_cast %354 : vector<8xf32> to vector<8x1xf32>
      %cst_84 = arith.constant 0.001953125 : f32
      %356 = vector.broadcast %cst_84 : f32 to vector<8x1xf32>
      %357 = arith.mulf %355, %356 : vector<8x1xf32>
      %358 = arith.index_cast %59 : i32 to index
      %c1 = arith.constant 1 : index
      %359 = vector.load %arg17[%358, %c1] : memref<32x128xf32, #tpu.memory_space<vmem>>, vector<8x1xf32>
      tpu.vector_store %arg17[%358, %c1], %357 {strides = array<i32>} : memref<32x128xf32, #tpu.memory_space<vmem>>, vector<8x1xf32>,
    }
    %c4_i32_0 = arith.constant 4 : i32
    %c0 = arith.constant 0 : index
    %c0_1 = arith.constant 0 : index
    %1 = vector.load %arg17[%c0, %c0_1] : memref<32x128xf32, #tpu.memory_space<vmem>>, vector<32x2xf32>
    %c0_2 = arith.constant 0 : index
    %c0_3 = arith.constant 0 : index
    %2 = vector.load %arg8[%c0_2, %c0_3] : memref<16x32xf32, #tpu.memory_space<vmem>>, vector<16x32xf32>
    %cst = arith.constant dense<0.000000e+00> : vector<16x2xf32>
    %3 = tpu.matmul %2, %1, %cst {dimension_numbers = #tpu.dot_dimension_numbers<[1], [0], [0], [1], [0, 0, 1, 1], [], []>} : vector<16x32xf32>, vector<32x2xf32>, vector<16x2xf32> -> vector<16x2xf32>
    %c0_4 = arith.constant 0 : index
    %c0_5 = arith.constant 0 : index
    %4 = vector.load %arg9[%c0_4, %c0_5] : memref<16x1xf32, #tpu.memory_space<vmem>>, vector<16x1xf32>
    %5 = vector.broadcast %4 : vector<16x1xf32> to vector<16x2xf32>
    %6 = arith.addf %3, %5 : vector<16x2xf32>
    %cst_6 = arith.constant 0.000000e+00 : f32
    %7 = vector.broadcast %cst_6 : f32 to vector<16x2xf32>
    %8 = arith.maximumf %6, %7 : vector<16x2xf32>
    %c0_7 = arith.constant 0 : index
    %c0_8 = arith.constant 0 : index
    %9 = vector.load %arg10[%c0_7, %c0_8] : memref<32x16xf32, #tpu.memory_space<vmem>>, vector<32x16xf32>
    %cst_9 = arith.constant dense<0.000000e+00> : vector<32x2xf32>
    %10 = tpu.matmul %9, %8, %cst_9 {dimension_numbers = #tpu.dot_dimension_numbers<[1], [0], [0], [1], [0, 0, 1, 1], [], []>} : vector<32x16xf32>, vector<16x2xf32>, vector<32x2xf32> -> vector<32x2xf32>
    %c0_10 = arith.constant 0 : index
    %c0_11 = arith.constant 0 : index
    %11 = vector.load %arg11[%c0_10, %c0_11] : memref<32x1xf32, #tpu.memory_space<vmem>>, vector<32x1xf32>
    %12 = vector.broadcast %11 : vector<32x1xf32> to vector<32x2xf32>
    %13 = arith.addf %10, %12 : vector<32x2xf32>
    %14 = arith.negf %13 : vector<32x2xf32>
    %15 = math.exp %14 : vector<32x2xf32>
    %cst_12 = arith.constant 1.000000e+00 : f32
    %16 = vector.broadcast %cst_12 : f32 to vector<32x2xf32>
    %17 = arith.addf %16, %15 : vector<32x2xf32>
    %18 = arith.divf %16, %17 : vector<32x2xf32>
    %c0_13 = arith.constant 0 : index
    %c0_14 = arith.constant 0 : index
    %19 = vector.load %arg12[%c0_13, %c0_14] : memref<8x32xf32, #tpu.memory_space<vmem>>, vector<8x32xf32>
    %c0_15 = arith.constant 0 : index
    %c0_16 = arith.constant 0 : index
    %20 = vector.load %arg16[%c0_15, %c0_16] : memref<32x1024xf32, #tpu.memory_space<vmem>>, vector<32x512xf32>
    %21 = vector.extract_strided_slice %18 {offsets = [0, 0], sizes = [32, 1], strides = [1, 1]} : vector<32x2xf32> to vector<32x1xf32>
    %22 = vector.broadcast %21 : vector<32x1xf32> to vector<32x512xf32>
    %23 = arith.mulf %20, %22 : vector<32x512xf32>
    %cst_17 = arith.constant dense<0.000000e+00> : vector<8x512xf32>
    %24 = tpu.matmul %19, %23, %cst_17 {dimension_numbers = #tpu.dot_dimension_numbers<[1], [0], [0], [1], [0, 0, 1, 1], [], []>} : vector<8x32xf32>, vector<32x512xf32>, vector<8x512xf32> -> vector<8x512xf32>
    %c0_18 = arith.constant 0 : index
    %c512 = arith.constant 512 : index
    %25 = vector.load %arg16[%c0_18, %c512] : memref<32x1024xf32, #tpu.memory_space<vmem>>, vector<32x512xf32>
    %26 = vector.extract_strided_slice %18 {offsets = [0, 1], sizes = [32, 1], strides = [1, 1]} : vector<32x2xf32> to vector<32x1xf32>
    %27 = vector.broadcast %26 : vector<32x1xf32> to vector<32x512xf32>
    %28 = arith.mulf %25, %27 : vector<32x512xf32>
    %cst_19 = arith.constant dense<0.000000e+00> : vector<8x512xf32>
    %29 = tpu.matmul %19, %28, %cst_19 {dimension_numbers = #tpu.dot_dimension_numbers<[1], [0], [0], [1], [0, 0, 1, 1], [], []>} : vector<8x32xf32>, vector<32x512xf32>, vector<8x512xf32> -> vector<8x512xf32>
    %30 = tpu.concatenate %24, %29 in 1 : vector<8x512xf32>, vector<8x512xf32> -> vector<8x1024xf32>
    %c0_20 = arith.constant 0 : index
    %c0_21 = arith.constant 0 : index
    %31 = vector.load %arg13[%c0_20, %c0_21] : memref<8x1xf32, #tpu.memory_space<vmem>>, vector<8x1xf32>
    %c0_22 = arith.constant 0 : index
    %c0_23 = arith.constant 0 : index
    %32 = vector.load %arg14[%c0_22, %c0_23] : memref<8x1xf32, #tpu.memory_space<vmem>>, vector<8x1xf32>
    %cst_24 = arith.constant dense<0.000000e+00> : vector<8xf32>
    %33 = vector.multi_reduction <add>, %30, %cst_24 [1] : vector<8x1024xf32> to vector<8xf32>
    %34 = vector.shape_cast %33 : vector<8xf32> to vector<8x1xf32>
    %cst_25 = arith.constant 1.024000e+03 : f32
    %35 = vector.broadcast %cst_25 : f32 to vector<8x1xf32>
    %36 = arith.divf %34, %35 : vector<8x1xf32>
    %37 = vector.broadcast %36 : vector<8x1xf32> to vector<8x1024xf32>
    %38 = arith.subf %30, %37 : vector<8x1024xf32>
    %39 = arith.mulf %38, %38 : vector<8x1024xf32>
    %cst_26 = arith.constant dense<0.000000e+00> : vector<8xf32>
    %40 = vector.multi_reduction <add>, %39, %cst_26 [1] : vector<8x1024xf32> to vector<8xf32>
    %41 = vector.shape_cast %40 : vector<8xf32> to vector<8x1xf32>
    %cst_27 = arith.constant 1.024000e+03 : f32
    %42 = vector.broadcast %cst_27 : f32 to vector<8x1xf32>
    %43 = arith.divf %41, %42 : vector<8x1xf32>
    %44 = vector.broadcast %36 : vector<8x1xf32> to vector<8x1024xf32>
    %45 = arith.subf %30, %44 : vector<8x1024xf32>
    %cst_28 = arith.constant 9.99999974E-6 : f32
    %46 = vector.broadcast %cst_28 : f32 to vector<8x1xf32>
    %47 = arith.addf %43, %46 : vector<8x1xf32>
    %48 = math.rsqrt %47 : vector<8x1xf32>
    %49 = vector.broadcast %48 : vector<8x1xf32> to vector<8x1024xf32>
    %50 = arith.mulf %45, %49 : vector<8x1024xf32>
    %51 = vector.broadcast %31 : vector<8x1xf32> to vector<8x1024xf32>
    %52 = arith.mulf %50, %51 : vector<8x1024xf32>
    %53 = vector.broadcast %32 : vector<8x1xf32> to vector<8x1024xf32>
    %54 = arith.addf %52, %53 : vector<8x1024xf32>
    %c0_29 = arith.constant 0 : index
    %c0_30 = arith.constant 0 : index
    %55 = vector.load %arg0[%c0_29, %c0_30] : memref<8x1024xf32, #tpu.memory_space<vmem>>, vector<8x1024xf32>
    %56 = arith.addf %54, %55 : vector<8x1024xf32>
    %c0_31 = arith.constant 0 : index
    %c0_32 = arith.constant 0 : index
    %57 = vector.load %arg15[%c0_31, %c0_32] : memref<8x1024xf32, #tpu.memory_space<vmem>>, vector<8x1024xf32>
    tpu.vector_store %arg15[%c0_31, %c0_32], %56 {strides = array<i32>} : memref<8x1024xf32, #tpu.memory_space<vmem>>, vector<8x1024xf32>,
    return
  }
}

</mosaic_0001>

<bundles_post_ra>
// kernel: tpu_custom_call.1
= control target key start
LH: loop header
LB: loop body
LE: loop exit
PB: predicated region body
PF: predicated region fallthrough
CT: control target
= control target key end

     0   :  { %20 = vsyncpa [#allocation5], 0  ;;  %s3367_s18 = smov 0   ;;  %s6140_s0 = inlined_call_operand.vmem [shape: f32[8,1024], index: 0, kind: input, shape index: {}]   ;;  %s6141_s1 = inlined_call_operand.vmem [shape: f32[8,1024], index: 1, kind: input, shape index: {}]   ;;  %s6142_s2 = inlined_call_operand.vmem [shape: f32[32,8], index: 2, kind: input, shape index: {}]   ;;  %s6143_s3 = inlined_call_operand.vmem [shape: f32[32,1], index: 3, kind: input, shape index: {}]   ;;  %s6144_s4 = inlined_call_operand.vmem [shape: f32[32,1], index: 4, kind: input, shape index: {}]   ;;  %s6145_s5 = inlined_call_operand.vmem [shape: f32[32,27], index: 5, kind: input, shape index: {}]   ;;  %s6146_s6 = inlined_call_operand.vmem [shape: f32[32,1], index: 6, kind: input, shape index: {}]   ;;  %s6147_s7 = inlined_call_operand.vmem [shape: f32[32,1], index: 7, kind: input, shape index: {}]   ;;  %s6148_s8 = inlined_call_operand.vmem [shape: f32[16,32], index: 8, kind: input, shape index: {}]   ;;  %s6149_s9 = inlined_call_operand.vmem [shape: f32[16,1], index: 9, kind: input, shape index: {}]   ;;  %s6150_s10 = inlined_call_operand.vmem [shape: f32[32,16], index: 10, kind: input, shape index: {}]   ;;  %s6151_s11 = inlined_call_operand.vmem [shape: f32[32,1], index: 11, kind: input, shape index: {}]   ;;  %s6152_s12 = inlined_call_operand.vmem [shape: f32[8,32], index: 12, kind: input, shape index: {}]   ;;  %s6153_s13 = inlined_call_operand.vmem [shape: f32[8,1], index: 13, kind: input, shape index: {}]   ;;  %s6154_s14 = inlined_call_operand.vmem [shape: f32[8,1], index: 14, kind: input, shape index: {}]   ;;  %s6155_s15 = inlined_call_operand.hbm [shape: f32[8,1024], index: 15, kind: output, shape index: {}]  }
   0x1 LB: > { %v59_v0 = vld [vmem:[%s6140_s0 + $0x8] sm:$0xff]  ;;  %v58_v1 = vld [vmem:[%s6140_s0] sm:$0xff]  ;;  %v61_v2 = vld [vmem:[%s6140_s0 + $0x18] sm:$0xff]  ;;  %v3250_v3 = vmov 0.0   ;;  %s3388_s29 = sshll.u32 %s3248_s18, 3  ;;  %vm68_vm0 = vcmask 64512   ;;  %s3248_s18 = sphi %s3367_s18, %s56_s18  }
   0x2   : > { %102 = vmatprep.subr.mxu0 %v59_v0  ;;  %136 = vmatprep.mubr.f32.mxu0 %v3250_v3  ;;  %v60_v4 = vld [vmem:[%s6140_s0 + $0x10] sm:$0xff]  ;;  %v63_v5 = vld [vmem:[%s6140_s0 + $0x28] sm:$0xff]  ;;  %v65_v6 = vld [vmem:[%s6140_s0 + $0x38] sm:$0xff]  ;;  %s66_s20 = scalar_lea.vmem %s6142_s2, %s3388_s29  ;;  %s497_s25 = scalar_lea.vmem %s6145_s5, %s3388_s29  ;;  %v3251_v11 = vmov 1   ;;  %v3252_v12 = vmov 2   ;;  %v3253_v13 = vmov 3  }
   0x3   : > { %103 = vmatpush1.msra.mxu0 %v58_v1  ;;  %173 = vmatprep.subr.mxu1 %v61_v2  ;;  %v62_v7 = vld [vmem:[%s6140_s0 + $0x20] sm:$0xff]  ;;  %v64_v9 = vld [vmem:[%s6140_s0 + $0x30] sm:$0xff]  ;;  %v3254_v14 = vmov 4   ;;  %v3255_v15 = vmov 6   ;;  %v3256_v16 = vmov 7   ;;  %v3257_v17 = vmov 8   ;;  %s356_s16 = scalar_lea.vmem %s6143_s3, %s3388_s29  ;;  %s2047_s17 = scalar_lea.vmem %s6146_s6, %s3388_s29 }
   0x4   : > { %174 = vmatpush1.msra.mxu1 %v60_v4  ;;  %207 = vmatprep.mubr.f32.mxu1 %v3250_v3  ;;  %v67_v8 = vld [vmem:[%s66_s20] sm:$0xff]  ;;  %v3258_v18 = vmov 10   ;;  %v3259_v19 = vmov 11   ;;  %v3260_v20 = vmov 12   ;;  %v3261_v21 = vmov 13   ;;  %s358_s20 = scalar_lea.vmem %s6144_s4, %s3388_s29  ;;  %s3280_s26 = smov 120  }
   0x5   : > { %244 = vmatprep.subr.mxu0 %v63_v5  ;;  %315 = vmatprep.subr.mxu1 %v65_v6  ;;  %v3409_v10 = vld [vmem:[%s497_s25] sm:$0xff]  ;;  %v3262_v22 = vmov 14   ;;  %v3263_v23 = vmov 15   ;;  %v3264_v24 = vmov 16   ;;  %v3265_v25 = vmov 17   ;;  %s3279_s25 = smov 8   ;;  %s2049_s21 = scalar_lea.vmem %s6147_s7, %s3388_s29 }
   0x6   : > { %2984 = vmatmul.mubr.msk.f32.vlgmr.msra.gmra.mxu0 %vm68_vm0, %v67_v8  ;;  %2985 = vmatmul.mubr.msk.f32.vlgmr.msra.gmra.mxu1 %vm68_vm0, %v67_v8  ;;  %v3266_v26 = vmov 18   ;;  %v3267_v27 = vmov 19   ;;  %v3268_v28 = vmov 20   ;;  %v3269_v29 = vmov 21   ;;  %v357_v57 = vld [vmem:[%s356_s16] sm:$0xff]  ;;  %s3281_s27 = smov 1  }
   0x7   : > { %245 = vmatpush1.msra.mxu0 %v62_v7  ;;  %278 = vmatprep.mubr.f32.mxu0 %v3250_v3  ;;  %v3270_v30 = vmov 22   ;;  %v3271_v31 = vmov 23   ;;  %v3272_v32 = vmov 24   ;;  %v3273_v33 = vmov 25   ;;  %v359_v58 = vld [vmem:[%s358_s20] sm:$0xff]  ;;  %s3278_s20 = smov 64  }
   0x8   : > { %316 = vmatpush1.msra.mxu1 %v64_v9  ;;  %349 = vmatprep.mubr.f32.mxu1 %v3250_v3  ;;  %v3274_v34 = vmov 26   ;;  %v3275_v56 = vmov 0   ;;  %s3282_s28 = smov 127   ;;  %s2179_s22 = sshra.s32 %s3388_s29, 3  ;;  %vm2199_vm6 = vcmask 7168   ;;  %vm2207_vm7 = vcmask 15368  }
   0x9   : > { %3100 = vset.pattern.permute.xlu0 %v3251_v11  ;;  %3099 = vset.pattern.permute.xlu1 %v3275_v56  ;;  %s3020_s23 = sshll.u32 %s2179_s22, 6  ;;  %s56_s18 = sadd.s32 1, %s3248_s18  }
   0xa   : > { %2986 = vmatmul.mubr.msk.f32.vlgmr.msra.gmra.mxu0 %vm68_vm0, %v67_v8  ;;  %2987 = vmatmul.mubr.msk.f32.vlgmr.msra.gmra.mxu1 %vm68_vm0, %v67_v8  ;;  %s2183_s24 = scalar_lea.vmem [#allocation2], %s3020_s23  ;;  %p53_p0 = scmp.ge.s32.totalorder %s56_s18, 4  }
   0xb   : > { %718 = vperm.xlu0 %3100, %v3409_v10   ;;  %409 = vperm.xlu1 %3099, %v357_v57   ;;  %vm2227_vm8 = vcmask (%p53_p0), 261120   ;;  %vm2339_vm9 = vcmask (%p53_p0), 130048   ;;  %s3286_s19 = smov (%p53_p0), [#allocation4]  }
   0xf   : > { %3101 = vset.pattern.permute.xlu0 %v3252_v12  ;;  %422 = vperm.xlu1 %3099, %v359_v58  }
  0x10   : > { %803 = vperm.xlu0 %3101, %v3409_v10  }
  0x13   : > { %698 = vperm.xlu1 %3099, %v3409_v10  }
  0x14   : > { %3102 = vset.pattern.permute.xlu0 %v3253_v13 }
  0x15   : > { %855 = vperm.xlu0 %3102, %v3409_v10  }
  0x19   : > { %3103 = vset.pattern.permute.xlu0 %v3254_v14 }
  0x1a   : > { %875 = vperm.xlu0 %3103, %v3409_v10  }
  0x1e   : > { %3105 = vset.pattern.permute.xlu0 %v3255_v15 }
  0x1f   : > { %1044 = vperm.xlu0 %3105, %v3409_v10  }
  0x23   : > { %3106 = vset.pattern.permute.xlu0 %v3256_v16 }
  0x24   : > { %1064 = vperm.xlu0 %3106, %v3409_v10  }
  0x28   : > { %3107 = vset.pattern.permute.xlu0 %v3257_v17 }
  0x29   : > { %1116 = vperm.xlu0 %3107, %v3409_v10  }
  0x2d   : > { %3109 = vset.pattern.permute.xlu0 %v3258_v18 }
  0x2e   : > { %1220 = vperm.xlu0 %3109, %v3409_v10  }
  0x32   : > { %3110 = vset.pattern.permute.xlu0 %v3259_v19 }
  0x33   : > { %1272 = vperm.xlu0 %3110, %v3409_v10  }
  0x37   : > { %3111 = vset.pattern.permute.xlu0 %v3260_v20 }
  0x38   : > { %1324 = vperm.xlu0 %3111, %v3409_v10  }
  0x3c   : > { %3112 = vset.pattern.permute.xlu0 %v3261_v21 }
  0x3d   : > { %1344 = vperm.xlu0 %3112, %v3409_v10  }
  0x41   : > { %3113 = vset.pattern.permute.xlu0 %v3262_v22 }
  0x42   : > { %1396 = vperm.xlu0 %3113, %v3409_v10  }
  0x46   : > { %3114 = vset.pattern.permute.xlu0 %v3263_v23 }
  0x47   : > { %1480 = vperm.xlu0 %3114, %v3409_v10  }
  0x4b   : > { %3115 = vset.pattern.permute.xlu0 %v3264_v24 }
  0x4c   : > { %1500 = vperm.xlu0 %3115, %v3409_v10  }
  0x50   : > { %3116 = vset.pattern.permute.xlu0 %v3265_v25 }
  0x51   : > { %1552 = vperm.xlu0 %3116, %v3409_v10  }
  0x55   : > { %3117 = vset.pattern.permute.xlu0 %v3266_v26 }
  0x56   : > { %1676 = vperm.xlu0 %3117, %v3409_v10  }
  0x5a   : > { %3118 = vset.pattern.permute.xlu0 %v3267_v27 }
  0x5b   : > { %1696 = vperm.xlu0 %3118, %v3409_v10  }
  0x5f   : > { %3119 = vset.pattern.permute.xlu0 %v3268_v28 }
  0x60   : > { %1748 = vperm.xlu0 %3119, %v3409_v10  }
  0x64   : > { %3120 = vset.pattern.permute.xlu0 %v3269_v29 }
  0x65   : > { %1800 = vperm.xlu0 %3120, %v3409_v10  }
  0x69   : > { %3121 = vset.pattern.permute.xlu0 %v3270_v30 }
  0x6a   : > { %1820 = vperm.xlu0 %3121, %v3409_v10  }
  0x6e   : > { %3122 = vset.pattern.permute.xlu0 %v3271_v31 }
  0x6f   : > { %1872 = vperm.xlu0 %3122, %v3409_v10  }
  0x73   : > { %3123 = vset.pattern.permute.xlu0 %v3272_v32 }
  0x74   : > { %1956 = vperm.xlu0 %3123, %v3409_v10  }
  0x78   : > { %3124 = vset.pattern.permute.xlu0 %v3273_v33 }
  0x79   : > { %1976 = vperm.xlu0 %3124, %v3409_v10  }
  0x7d   : > { %3125 = vset.pattern.permute.xlu0 %v3274_v34 }
  0x86   : > { %v3436_v50 = vpop.permute.xlu0 %718 }
  0x87   : > { %6332 = vst [vmem:[#allocation7_spill] sm:$0xff] %v3436_v50 }
  0x8b   : > { %v3438_v51 = vpop.permute.xlu0 %803 }
  0x8c   : > { %6333 = vst [vmem:[#allocation8_spill] sm:$0xff] %v3438_v51 }
  0x90   : > { %v3440_v52 = vpop.permute.xlu0 %855 }
  0x91   : > { %6334 = vst [vmem:[#allocation9_spill] sm:$0xff] %v3440_v52 }
  0x95   : > { %v3442_v53 = vpop.permute.xlu0 %875 }
  0x96   : > { %6335 = vst [vmem:[#allocation10_spill] sm:$0xff] %v3442_v53 }
  0x9a   : > { %v3445_v54 = vpop.permute.xlu0 %1044 }
  0x9b   : > { %6336 = vst [vmem:[#allocation11_spill] sm:$0xff] %v3445_v54 }
  0x9f   : > { %v3455_v55 = vpop.permute.xlu0 %1064 }
  0xa0   : > { %6337 = vst [vmem:[#allocation12_spill] sm:$0xff] %v3455_v55  ;;  %v6390_v55 = vlaneseq }
  0xa4   : > { %v3457_v59 = vpop.permute.xlu0 %1116 }
  0xa5   : > { %6338 = vst [vmem:[#allocation13_spill] sm:$0xff] %v3457_v59 }
  0xa9   : > { %v3460_v60 = vpop.permute.xlu0 %1220 }
  0xaa   : > { %6339 = vst [vmem:[#allocation14_spill] sm:$0xff] %v3460_v60 }
  0xae   : > { %v3462_v61 = vpop.permute.xlu0 %1272 }
  0xaf   : > { %6340 = vst [vmem:[#allocation15_spill] sm:$0xff] %v3462_v61 }
  0xb3   : > { %v3464_v62 = vpop.permute.xlu0 %1324 }
  0xb4   : > { %6341 = vst [vmem:[#allocation16_spill] sm:$0xff] %v3464_v62 }
  0xb8   : > { %v3466_v63 = vpop.permute.xlu0 %1344 }
  0xb9   : > { %6342 = vst [vmem:[#allocation17_spill] sm:$0xff] %v3466_v63 }
  0xbd   : > { %v3468_v0 = vpop.permute.xlu0 %1396 }
  0xbe   : > { %6343 = vst [vmem:[#allocation18_spill] sm:$0xff] %v3468_v0  ;;  %v3774_v0 = vand.u32 127, %v6390_v55 }
  0xc0   : > { %vm517_vm1 = vcmp.lt.s32.totalorder %v3774_v0, 64  ;;  %vm647_vm2 = vcmp.lt.s32.totalorder %v3774_v0, 1  ;;  %vm753_vm3 = vcmp.lt.s32.totalorder %v3774_v0, 127  ;;  %vm582_vm4 = vcmp.lt.s32.totalorder %v3774_v0, 8 }
  0xc1   : > { %vm962_vm5 = vcmp.lt.s32.totalorder %v3774_v0, 120  ;;  %v2048_v0 = vld [vmem:[%s2047_s17] sm:$0xff] }
  0xc2   : > { %v3470_v1 = vpop.permute.xlu0 %1480 }
  0xc3   : > { %6344 = vst [vmem:[#allocation19_spill] sm:$0xff] %v3470_v1 }
  0xc6   : > { %v138_v35 = vpop.f32.mrf.mxu0  ;;  %v209_v37 = vpop.f32.mrf.mxu1 }
  0xc7   : > { %v3472_v2 = vpop.permute.xlu0 %1500 }
  0xc8   : > { %v140_v36 = vpop.f32.mrf.mxu0  ;;  %v211_v40 = vpop.f32.mrf.mxu1  ;;  %6345 = vst [vmem:[#allocation20_spill] sm:$0xff] %v3472_v2 }
  0xc9   : > { %v360_v38 = vadd.f32 %v140_v36, %v138_v35 }
  0xca   : > { %v280_v41 = vpop.f32.mrf.mxu0  ;;  %v351_v45 = vpop.f32.mrf.mxu1 }
  0xcb   : > { %v361_v39 = vadd.f32 %v360_v38, %v209_v37  ;;  %v3276_v38 = vmov 5  }
  0xcc   : > { %v282_v44 = vpop.f32.mrf.mxu0  ;;  %v353_v48 = vpop.f32.mrf.mxu1  ;;  %3104 = vset.pattern.permute.xlu1 %v3276_v38 }
  0xcd   : > { %v362_v42 = vadd.f32 %v361_v39, %v211_v40  ;;  %v3474_v3 = vpop.permute.xlu0 %1552  ;;  %927 = vperm.xlu1 %3104, %v3409_v10   ;;  %v3277_v39 = vmov 9  }
  0xce   : > { %6346 = vst [vmem:[#allocation21_spill] sm:$0xff] %v3474_v3 }
  0xcf   : > { %v363_v43 = vadd.f32 %v362_v42, %v280_v41 }
  0xd1   : > { %v364_v46 = vadd.f32 %v363_v43, %v282_v44  ;;  %v3476_v4 = vpop.permute.xlu0 %1676  ;;  %3108 = vset.pattern.permute.xlu1 %v3277_v39 }
  0xd2   : > { %6347 = vst [vmem:[#allocation22_spill] sm:$0xff] %v3476_v4  ;;  %1200 = vperm.xlu1 %3108, %v3409_v10  }
  0xd3   : > { %v365_v47 = vadd.f32 %v364_v46, %v351_v45 }
  0xd5   : > { %v366_v49 = vadd.f32 %v365_v47, %v353_v48 }
  0xd6   : > { %v3478_v5 = vpop.permute.xlu0 %1696  ;;  %3127 = vset.pattern.permute.xlu1 %v3275_v56 }
  0xd7   : > { %367 = vadd.xlane.f32.xlu0 %v366_v49  ;;  %6348 = vst [vmem:[#allocation23_spill] sm:$0xff] %v3478_v5 }
  0xdb   : > { %v3480_v6 = vpop.permute.xlu0 %1748 }
  0xdc   : > { %6349 = vst [vmem:[#allocation24_spill] sm:$0xff] %v3480_v6 }
  0xe0   : > { %v3482_v7 = vpop.permute.xlu0 %1800 }
  0xe1   : > { %6350 = vst [vmem:[#allocation25_spill] sm:$0xff] %v3482_v7 }
  0xe5   : > { %v3484_v8 = vpop.permute.xlu0 %1820 }
  0xe6   : > { %6351 = vst [vmem:[#allocation26_spill] sm:$0xff] %v3484_v8 }
  0xea   : > { %v3486_v9 = vpop.permute.xlu0 %1872 }
  0xeb   : > { %6352 = vst [vmem:[#allocation27_spill] sm:$0xff] %v3486_v9 }
  0xed   : > { %2028 = vperm.xlu0 %3125, %v3409_v10  }
  0xef   : > { %v3488_v11 = vpop.permute.xlu0 %1956 }
  0xf0   : > { %6353 = vst [vmem:[#allocation28_spill] sm:$0xff] %v3488_v11 }
  0xf1   : > { %3126 = vset.pattern.permute.xlu0 %v3275_v56 }
  0xf4   : > { %v3490_v12 = vpop.permute.xlu0 %1976 }
  0xf5   : > { %6354 = vst [vmem:[#allocation29_spill] sm:$0xff] %v3490_v12 }
 0x160   : > { %v368_v13 = vpop.xlane.xlu0 %367 }
 0x161   : > { %v370_v14 = vmul.f32 0.0009765625, %v368_v13 }
 0x163   : > { %v371_v15 = vsub.f32 %v138_v35, %v370_v14  ;;  %v372_v16 = vsub.f32 %v140_v36, %v370_v14  ;;  %v373_v17 = vsub.f32 %v209_v37, %v370_v14  ;;  %v374_v18 = vsub.f32 %v211_v40, %v370_v14 }
 0x164   : > { %v375_v21 = vsub.f32 %v280_v41, %v370_v14  ;;  %v376_v24 = vsub.f32 %v282_v44, %v370_v14  ;;  %v377_v27 = vsub.f32 %v351_v45, %v370_v14  ;;  %v378_v30 = vsub.f32 %v353_v48, %v370_v14  ;;  %v410_v44 = vpop.permute.xlu1 %409 }
 0x165   : > { %v379_v19 = vmul.f32 %v371_v15, %v371_v15  ;;  %v380_v20 = vmul.f32 %v372_v16, %v372_v16  ;;  %v381_v22 = vmul.f32 %v373_v17, %v373_v17  ;;  %v382_v25 = vmul.f32 %v374_v18, %v374_v18 }
 0x166   : > { %v383_v28 = vmul.f32 %v375_v21, %v375_v21  ;;  %v384_v31 = vmul.f32 %v376_v24, %v376_v24  ;;  %v385_v33 = vmul.f32 %v377_v27, %v377_v27  ;;  %v386_v35 = vmul.f32 %v378_v30, %v378_v30 }
 0x167   : > { %v387_v23 = vadd.f32 %v380_v20, %v379_v19 }
 0x168   : > { %v3494_v40 = vpop.permute.xlu0 %2028  ;;  %v423_v56 = vpop.permute.xlu1 %422 }
 0x169   : > { %v388_v26 = vadd.f32 %v387_v23, %v381_v22  ;;  %6355 = vst [vmem:[#allocation30_spill] sm:$0xff] %v3494_v40 }
 0x16b   : > { %v389_v29 = vadd.f32 %v388_v26, %v382_v25 }
 0x16d   : > { %v390_v32 = vadd.f32 %v389_v29, %v383_v28 }
 0x16f   : > { %v391_v34 = vadd.f32 %v390_v32, %v384_v31 }
 0x171   : > { %v392_v36 = vadd.f32 %v391_v34, %v385_v33 }
 0x173   : > { %v393_v37 = vadd.f32 %v392_v36, %v386_v35 }
 0x175   : > { %394 = vadd.xlane.f32.xlu0 %v393_v37 }
 0x1fe   : > { %v395_v41 = vpop.xlane.xlu0 %394 }
 0x1ff   : > { %v396_v42 = vmul.f32 0.0009765625, %v395_v41 }
 0x201   : > { %v397_v43 = vadd.f32 1e-05, %v396_v42 }
 0x203   : > { %3128 = vrsqrt.f32 %v397_v43 }
 0x210   : > { %v3129_v45 = vpop.eup %3128 }
 0x211   : > { %v400_v46 = vmul.f32 %v3129_v45, %v372_v16  ;;  %v399_v47 = vmul.f32 %v3129_v45, %v371_v15  ;;  %v401_v48 = vmul.f32 %v3129_v45, %v373_v17  ;;  %v406_v49 = vmul.f32 %v3129_v45, %v378_v30 }
 0x212   : > { %v402_v57 = vmul.f32 %v3129_v45, %v374_v18  ;;  %v403_v58 = vmul.f32 %v3129_v45, %v375_v21  ;;  %v404_v13 = vmul.f32 %v3129_v45, %v376_v24  ;;  %v405_v18 = vmul.f32 %v3129_v45, %v377_v27 }
 0x213   : > { %v413_v14 = vmul.f32 %v410_v44, %v400_v46  ;;  %v412_v19 = vmul.f32 %v410_v44, %v399_v47  ;;  %v414_v20 = vmul.f32 %v410_v44, %v401_v48  ;;  %v419_v10 = vmul.f32 %v410_v44, %v406_v49 }
 0x214   : > { %v415_v22 = vmul.f32 %v410_v44, %v402_v57  ;;  %v416_v23 = vmul.f32 %v410_v44, %v403_v58  ;;  %v417_v17 = vmul.f32 %v410_v44, %v404_v13  ;;  %v418_v27 = vmul.f32 %v410_v44, %v405_v18 }
 0x215   : > { %v3496_v25 = vadd.f32 %v423_v56, %v413_v14  ;;  %v3498_v26 = vadd.f32 %v423_v56, %v412_v19  ;;  %v3500_v28 = vadd.f32 %v423_v56, %v414_v20  ;;  %v3502_v16 = vadd.f32 %v423_v56, %v419_v10  ;;  %v3527_v20 = vld [vmem:[%s6141_s1] sm:$0xff]  ;;  %v3532_v10 = vld [vmem:[%s6141_s1 + $0x8] sm:$0xff] }
 0x216   : > { %v3504_v15 = vadd.f32 %v423_v56, %v415_v22  ;;  %v3509_v30 = vadd.f32 %v423_v56, %v416_v23  ;;  %v3513_v33 = vadd.f32 %v423_v56, %v417_v17  ;;  %v3517_v36 = vadd.f32 %v423_v56, %v418_v27  ;;  %v3538_v22 = vld [vmem:[%s6141_s1 + $0x10] sm:$0xff] }
 0x217   : > { %v2989_v21 = vmul.f32 -1.442695, %v3496_v25  ;;  %v2988_v24 = vmul.f32 -1.442695, %v3498_v26  ;;  %v2990_v29 = vmul.f32 -1.442695, %v3500_v28  ;;  %v6156_v49 = vlaneseq }
 0x218   : > { %v2995_v31 = vmul.f32 -1.442695, %v3502_v16  ;;  %v2991_v32 = vmul.f32 -1.442695, %v3504_v15  ;;  %v2992_v34 = vmul.f32 -1.442695, %v3509_v30 }
 0x219   : > { %3130 = vpow2.f32 %v2989_v21  ;;  %v2993_v35 = vmul.f32 -1.442695, %v3513_v33  ;;  %v2994_v37 = vmul.f32 -1.442695, %v3517_v36  ;;  %v3521_v58 = vshrl.u32 %v6156_v49, 7 }
 0x21a   : > { %3132 = vpow2.f32 %v2988_v24 }
 0x21b   : > { %3134 = vpow2.f32 %v2990_v29  ;;  %v658_v19 = vsub.s32 0, %v3521_v58  ;;  %v764_v56 = vsub.s32 1, %v3521_v58  ;;  %v528_v62 = vsub.s32 4, %v3521_v58 }
 0x21c   : > { %3136 = vpow2.f32 %v2995_v31 }
 0x21d   : > { %3138 = vpow2.f32 %v2991_v32  ;;  %v3541_v17 = vrot.slane %v3527_v20, %v658_v19  ;;  %v3544_v18 = vrot.slane %v3532_v10, %v658_v19  ;;  %v3547_v21 = vrot.slane %v3538_v22, %v658_v19  ;;  %v3561_v32 = vld [vmem:[%s6141_s1 + $0x38] sm:$0xff] }
 0x21e   : > { %3140 = vpow2.f32 %v2992_v34  ;;  %v3550_v24 = vrot.slane %v3527_v20, %v764_v56  ;;  %v3553_v29 = vrot.slane %v3532_v10, %v764_v56  ;;  %v3556_v31 = vrot.slane %v3538_v22, %v764_v56 }
 0x21f   : > { %3142 = vpow2.f32 %v2993_v35  ;;  %6356 = vst [vmem:[#allocation31_spill] sm:$0xff] %v3541_v17  ;;  %6357 = vst [vmem:[#allocation32_spill] sm:$0xff] %v3547_v21  ;;  %v3564_v27 = vrot.slane %v3561_v32, %v658_v19  ;;  %v3567_v35 = vrot.slane %v3561_v32, %v764_v56  ;;  %v533_v54 = vrot.slane %v3532_v10, %v528_v62 }
 0x220   : > { %3144 = vpow2.f32 %v2994_v37  ;;  %6358 = vst [vmem:[#allocation33_spill] sm:$0xff] %v3550_v24  ;;  %6359 = vst [vmem:[#allocation34_spill] sm:$0xff] %v3553_v29  ;;  %v3572_v37 = vld [vmem:[%s6141_s1 + $0x18] sm:$0xff]  ;;  %v537_v8 = vrot.slane %v3538_v22, %v528_v62 }
 0x221   : > { %6360 = vst [vmem:[#allocation35_spill] sm:$0xff] %v3556_v31  ;;  %6361 = vst [vmem:[#allocation36_spill] sm:$0xff] %v3564_v27  ;;  %v541_v60 = vrot.slane %v3572_v37, %v528_v62 }
 0x226   : > { %v3131_v38 = vpop.eup %3130 }
 0x227   : > { %v3133_v39 = vpop.eup %3132  ;;  %v458_v41 = vadd.f32 1.0, %v3131_v38  ;;  %v3575_v38 = vrot.slane %v3572_v37, %v658_v19 }
 0x228   : > { %v3135_v42 = vpop.eup %3134  ;;  %v457_v43 = vadd.f32 1.0, %v3133_v39  ;;  %v3578_v39 = vrot.slane %v3572_v37, %v764_v56 }
 0x229   : > { %v3137_v45 = vpop.eup %3136  ;;  %3146 = vrcp.f32 %v458_v41  ;;  %v459_v46 = vadd.f32 1.0, %v3135_v42  ;;  %6362 = vst [vmem:[#allocation37_spill] sm:$0xff] %v3575_v38  ;;  %v3583_v41 = vld [vmem:[%s6141_s1 + $0x20] sm:$0xff] }
 0x22a   : > { %v3139_v44 = vpop.eup %3138  ;;  %3148 = vrcp.f32 %v457_v43  ;;  %v464_v47 = vadd.f32 1.0, %v3137_v45  ;;  %6363 = vst [vmem:[#allocation38_spill] sm:$0xff] %v3578_v39  ;;  %v3586_v43 = vrot.slane %v3583_v41, %v658_v19  ;;  %v3589_v45 = vrot.slane %v3583_v41, %v764_v56 }
 0x22b   : > { %3150 = vrcp.f32 %v459_v46  ;;  %v460_v48 = vadd.f32 1.0, %v3139_v44  ;;  %v3141_v57 = vpop.eup %3140 }
 0x22c   : > { %3152 = vrcp.f32 %v464_v47  ;;  %v3143_v13 = vpop.eup %3142  ;;  %v461_v14 = vadd.f32 1.0, %v3141_v57  ;;  %6364 = vst [vmem:[#allocation39_spill] sm:$0xff] %v3586_v43 }
 0x22d   : > { %3154 = vrcp.f32 %v460_v48  ;;  %v462_v23 = vadd.f32 1.0, %v3143_v13  ;;  %v3145_v34 = vpop.eup %3144 }
 0x22e   : > { %3156 = vrcp.f32 %v461_v14  ;;  %v463_v47 = vadd.f32 1.0, %v3145_v34  ;;  %v3602_v14 = vld [vmem:[%s6141_s1 + $0x28] sm:$0xff] }
 0x22f   : > { %3158 = vrcp.f32 %v462_v23  ;;  %v3610_v23 = vrot.slane %v3602_v14, %v764_v56 }
 0x230   : > { %3160 = vrcp.f32 %v463_v47 }
 0x236   : > { %v3147_v42 = vpop.eup %3146 }
 0x237   : > { %v3149_v46 = vpop.eup %3148  ;;  %v3592_v44 = vmul.f32 %v3147_v42, %v3496_v25  ;;  %v3607_v25 = vrot.slane %v3602_v14, %v658_v19 }
 0x238   : > { %v3151_v48 = vpop.eup %3150  ;;  %v3595_v57 = vmul.f32 %v3149_v46, %v3498_v26  ;;  %v593_v46 = vsub.s32 2, %v3521_v58 }
 0x239   : > { %6365 = vst [vmem:[#allocation40_spill] sm:$0xff] %v3592_v44  ;;  %v3153_v13 = vpop.eup %3152  ;;  %501 = vrot.lane.b32.xlu1 %v3592_v44, %s3278_s20  ;;  %6367 = vst [vmem:[#allocation42_spill] sm:$0xff] %v3607_v25  ;;  %v3613_v26 = vmul.f32 %v3151_v48, %v3500_v28 }
 0x23a   : > { %6366 = vst [vmem:[#allocation41_spill] sm:$0xff] %v3595_v57  ;;  %499 = vrot.lane.b32.xlu0 %v3595_v57, %s3278_s20  ;;  %v3155_v34 = vpop.eup %3154  ;;  %v3616_v42 = vmul.f32 %v3153_v13, %v3502_v16  ;;  %v3627_v40 = vrot.slane %v3538_v22, %v593_v46  ;;  %v3632_v16 = vld [vmem:[%s6141_s1 + $0x30] sm:$0xff]  ;;  %v3648_v13 = vrot.slane %v3532_v10, %v593_v46 }
 0x23b   : > { %6368 = vst [vmem:[#allocation43_spill] sm:$0xff] %v3613_v26  ;;  %v3624_v49 = vmul.f32 %v3155_v34, %v3504_v15  ;;  %v3157_v28 = vpop.eup %3156  ;;  %v3637_v47 = vrot.slane %v3632_v16, %v658_v19  ;;  %v3640_v48 = vrot.slane %v3632_v16, %v764_v56  ;;  %v3645_v15 = vrot.slane %v3527_v20, %v593_v46 }
 0x23c   : > { %6369 = vst [vmem:[#allocation44_spill] sm:$0xff] %v3616_v42  ;;  %6371 = vst [vmem:[#allocation46_spill] sm:$0xff] %v3627_v40  ;;  %v3651_v34 = vmul.f32 %v3157_v28, %v3509_v30  ;;  %v3159_v12 = vpop.eup %3158  ;;  %v3661_v56 = vrot.slane %v3561_v32, %v593_v46  ;;  %v3671_v28 = vrot.slane %v3572_v37, %v593_v46  ;;  %v3898_v40 = vsub.s32 5, %v3521_v58 }
 0x23d   : > { %503 = vrot.lane.b32.xlu1 %v3613_v26, %s3278_s20  ;;  %6370 = vst [vmem:[#allocation45_spill] sm:$0xff] %v3624_v49  ;;  %6372 = vst [vmem:[#allocation47_spill] sm:$0xff] %v3637_v47  ;;  %v3658_v19 = vmul.f32 %v3159_v12, %v3513_v33  ;;  %v3161_v11 = vpop.eup %3160  ;;  %v3674_v9 = vrot.slane %v3583_v41, %v593_v46  ;;  %v973_v12 = vsub.s32 3, %v3521_v58 }
 0x23e   : > { %513 = vrot.lane.b32.xlu0 %v3616_v42, %s3278_s20  ;;  %6373 = vst [vmem:[#allocation48_spill] sm:$0xff] %v3645_v15  ;;  %6374 = vst [vmem:[#allocation49_spill] sm:$0xff] %v3651_v34  ;;  %v3668_v30 = vmul.f32 %v3161_v11, %v3517_v36  ;;  %v3682_v33 = vrot.slane %v3602_v14, %v593_v46  ;;  %v3685_v11 = vrot.slane %v3632_v16, %v593_v46 }
 0x23f   : > { %6375 = vst [vmem:[#allocation50_spill] sm:$0xff] %v3658_v19  ;;  %6376 = vst [vmem:[#allocation51_spill] sm:$0xff] %v3661_v56  ;;  %v3690_v36 = vrot.slane %v3538_v22, %v973_v12  ;;  %v3695_v6 = vrot.slane %v3527_v20, %v973_v12  ;;  %v3698_v7 = vrot.slane %v3532_v10, %v973_v12 }
 0x240   : > { %6377 = vst [vmem:[#allocation52_spill] sm:$0xff] %v3668_v30  ;;  %6378 = vst [vmem:[#allocation53_spill] sm:$0xff] %v3682_v33  ;;  %v3705_v46 = vrot.slane %v3561_v32, %v973_v12  ;;  %v3712_v4 = vrot.slane %v3572_v37, %v973_v12  ;;  %v3715_v1 = vrot.slane %v3583_v41, %v973_v12 }
 0x241   : > { %505 = vrot.lane.b32.xlu1 %v3624_v49, %s3278_s20  ;;  %6379 = vst [vmem:[#allocation54_spill] sm:$0xff] %v3685_v11  ;;  %6380 = vst [vmem:[#allocation55_spill] sm:$0xff] %v3690_v36  ;;  %v3722_v3 = vrot.slane %v3602_v14, %v973_v12  ;;  %v3725_v61 = vrot.slane %v3632_v16, %v973_v12  ;;  %v3767_v12 = vpop.permute.xlu1 %698 }
 0x242   : > { %1137 = vrot.lane.b32.xlu0 %v3592_v44, %s3279_s25  ;;  %6381 = vst [vmem:[#allocation56_spill] sm:$0xff] %v3695_v6  ;;  %6382 = vst [vmem:[#allocation57_spill] sm:$0xff] %v3705_v46 }
 0x243   : > { %6383 = vst [vmem:[#allocation58_spill] sm:$0xff] %v3712_v4  ;;  %6384 = vst [vmem:[#allocation59_spill] sm:$0xff] %v3715_v1 }
 0x244   : > { %6385 = vst [vmem:[#allocation60_spill] sm:$0xff] %v3722_v3  ;;  %6386 = vst [vmem:[#allocation61_spill] sm:$0xff] %v3725_v61 }
 0x245   : > { %507 = vrot.lane.b32.xlu1 %v3651_v34, %s3278_s20  ;;  %6387 = vst [vmem:[#allocation62_spill] sm:$0xff] %v3767_v12  ;;  %v3769_v59 = vpop.permute.xlu1 %927 }
 0x246   : > { %1149 = vrot.lane.b32.xlu0 %v3616_v42, %s3279_s25  ;;  %6388 = vst [vmem:[#allocation63_spill] sm:$0xff] %v3769_v59 }
 0x249   : > { %509 = vrot.lane.b32.xlu1 %v3658_v19, %s3278_s20  ;;  %v3771_v5 = vpop.permute.xlu1 %1200 }
 0x24a   : > { %1139 = vrot.lane.b32.xlu0 %v3613_v26, %s3279_s25  ;;  %6389 = vst [vmem:[#allocation64_spill] sm:$0xff] %v3771_v5  ;;  %v529_v5 = vrot.slane %v3527_v20, %v528_v62 }
 0x24d   : > { %511 = vrot.lane.b32.xlu1 %v3668_v30, %s3278_s20  ;;  %s2954_s20 = sshll.u32 (%p53_p0), %s3286_s19, 4  ;;  %s2955_s20 = int_to_ptr.vmem [resolvable:$true] %s2954_s20 }
 0x24e   : > { %1143 = vrot.lane.b32.xlu0 %v3651_v34, %s3279_s25  ;;  %p3225_p2 = scmp.lt.s32.totalorder (%p53_p0), %s2955_s20, %s2955_s20 }
 0x251   : > { %1135 = vrot.lane.b32.xlu1 %v3595_v57, %s3279_s25 }
 0x252   : > { %1415 = vrot.lane.b32.xlu0 %v3595_v57, %s3280_s26 }
 0x255   : > { %1147 = vrot.lane.b32.xlu1 %v3668_v30, %s3279_s25 }
 0x256   : > { %1419 = vrot.lane.b32.xlu0 %v3613_v26, %s3280_s26 }
 0x259   : > { %1141 = vrot.lane.b32.xlu1 %v3624_v49, %s3279_s25 }
 0x25a   : > { %1421 = vrot.lane.b32.xlu0 %v3624_v49, %s3280_s26 }
 0x25d   : > { %1145 = vrot.lane.b32.xlu1 %v3658_v19, %s3279_s25 }
 0x25e   : > { %1425 = vrot.lane.b32.xlu0 %v3658_v19, %s3280_s26 }
 0x261   : > { %1417 = vrot.lane.b32.xlu1 %v3592_v44, %s3280_s26 }
 0x262   : > { %1293 = vrot.lane.b32.xlu0 %v3592_v44, %s3281_s27 }
 0x265   : > { %1429 = vrot.lane.b32.xlu1 %v3616_v42, %s3280_s26 }
 0x266   : > { %1297 = vrot.lane.b32.xlu0 %v3624_v49, %s3281_s27 }
 0x269   : > { %1423 = vrot.lane.b32.xlu1 %v3651_v34, %s3280_s26 }
 0x26a   : > { %1365 = vrot.lane.b32.xlu0 %v3592_v44, %s3282_s28  ;;  %v553_v44 = vrot.slane %v3632_v16, %v528_v62 }
 0x26d   : > { %1427 = vrot.lane.b32.xlu1 %v3668_v30, %s3280_s26 }
 0x26e   : > { %1369 = vrot.lane.b32.xlu0 %v3624_v49, %s3282_s28 }
 0x271   : > { %1291 = vrot.lane.b32.xlu1 %v3595_v57, %s3281_s27 }
 0x272   : > { %1371 = vrot.lane.b32.xlu0 %v3651_v34, %s3282_s28 }
 0x275   : > { %1305 = vrot.lane.b32.xlu1 %v3616_v42, %s3281_s27 }
 0x279   : > { %1295 = vrot.lane.b32.xlu1 %v3613_v26, %s3281_s27 }
 0x27d   : > { %1363 = vrot.lane.b32.xlu1 %v3595_v57, %s3282_s28 }
 0x281   : > { %1367 = vrot.lane.b32.xlu1 %v3613_v26, %s3282_s28  ;;  %v549_v26 = vrot.slane %v3602_v14, %v528_v62 }
 0x285   : > { %1299 = vrot.lane.b32.xlu1 %v3651_v34, %s3281_s27  ;;  %v545_v34 = vrot.slane %v3583_v41, %v528_v62 }
 0x289   : > { %1301 = vrot.lane.b32.xlu1 %v3658_v19, %s3281_s27 }
 0x28d   : > { %1303 = vrot.lane.b32.xlu1 %v3668_v30, %s3281_s27 }
 0x291   : > { %1373 = vrot.lane.b32.xlu1 %v3658_v19, %s3282_s28 }
 0x295   : > { %1375 = vrot.lane.b32.xlu1 %v3668_v30, %s3282_s28 }
 0x299   : > { %1377 = vrot.lane.b32.xlu1 %v3616_v42, %s3282_s28 }
 0x2ab   : > { %v502_v51 = vpop.permute.xlu1 %501 }
 0x2ac   : > { %v500_v52 = vpop.permute.xlu0 %499 }
 0x2ad   : > { %v3781_v50 = vsel %vm517_vm1, %v500_v52, %v502_v51 }
 0x2ae   : > { %v3784_v12 = vmul.f32 %v533_v54, %v3781_v50 }
 0x2af   : > { %v504_v59 = vpop.permute.xlu1 %503 }
 0x2b0   : > { %6391 = vst [vmem:[#allocation65_spill] sm:$0xff] %v3784_v12  ;;  %568 = vrot.lane.b32.xlu0 %v3784_v12, %s3279_s25  ;;  %v514_v55 = vpop.permute.xlu0 %513  ;;  %v523_v54 = vsel %vm517_vm1, %v502_v51, %v504_v59 }
 0x2b1   : > { %v3791_v2 = vsel %vm517_vm1, %v514_v55, %v500_v52 }
 0x2b2   : > { %v3796_v30 = vmul.f32 %v529_v5, %v3791_v2  ;;  %v3812_v5 = vmul.f32 %v537_v8, %v523_v54 }
 0x2b3   : > { %v506_v19 = vpop.permute.xlu1 %505 }
 0x2b4   : > { %6392 = vst [vmem:[#allocation66_spill] sm:$0xff] %v3796_v30  ;;  %v3802_v53 = vsel %vm517_vm1, %v504_v59, %v506_v19  ;;  %566 = vrot.lane.b32.xlu1 %v3796_v30, %s3279_s25  ;;  %v3806_v52 = vpop.permute.xlu0 %1137  ;;  %6394 = vst [vmem:[#allocation68_spill] sm:$0xff] %v3812_v5 }
 0x2b5   : > { %v3809_v42 = vmul.f32 %v541_v60, %v3802_v53 }
 0x2b7   : > { %6393 = vst [vmem:[#allocation67_spill] sm:$0xff] %v3809_v42  ;;  %v508_v49 = vpop.permute.xlu1 %507  ;;  %572 = vrot.lane.b32.xlu0 %v3809_v42, %s3279_s25 }
 0x2b8   : > { %v3818_v51 = vsel %vm517_vm1, %v506_v19, %v508_v49  ;;  %570 = vrot.lane.b32.xlu1 %v3812_v5, %s3279_s25  ;;  %v3822_v59 = vpop.permute.xlu0 %1149 }
 0x2b9   : > { %6395 = vst [vmem:[#allocation69_spill] sm:$0xff] %v3822_v59  ;;  %v3825_v60 = vmul.f32 %v545_v34, %v3818_v51  ;;  %v557_v34 = vrot.slane %v3561_v32, %v528_v62 }
 0x2bb   : > { %6396 = vst [vmem:[#allocation70_spill] sm:$0xff] %v3825_v60  ;;  %v510_v8 = vpop.permute.xlu1 %509 }
 0x2bc   : > { %v3830_v57 = vsel %vm517_vm1, %v508_v49, %v510_v8  ;;  %574 = vrot.lane.b32.xlu1 %v3825_v60, %s3279_s25  ;;  %v3834_v19 = vpop.permute.xlu0 %1139 }
 0x2bd   : > { %v3837_v63 = vmul.f32 %v549_v26, %v3830_v57 }
 0x2bf   : > { %6397 = vst [vmem:[#allocation71_spill] sm:$0xff] %v3837_v63  ;;  %v512_v61 = vpop.permute.xlu1 %511  ;;  %576 = vrot.lane.b32.xlu0 %v3837_v63, %s3279_s25 }
 0x2c0   : > { %v3845_v49 = vsel %vm517_vm1, %v512_v61, %v514_v55  ;;  %v3849_v3 = vsel %vm517_vm1, %v510_v8, %v512_v61  ;;  %v3851_v36 = vpop.permute.xlu0 %1143 }
 0x2c1   : > { %v3854_v26 = vmul.f32 %v553_v44, %v3849_v3  ;;  %v3857_v46 = vmul.f32 %v557_v34, %v3845_v49 }
 0x2c3   : > { %6398 = vst [vmem:[#allocation72_spill] sm:$0xff] %v3854_v26  ;;  %6399 = vst [vmem:[#allocation73_spill] sm:$0xff] %v3857_v46  ;;  %v3859_v62 = vpop.permute.xlu1 %1135  ;;  %578 = vrot.lane.b32.xlu1 %v3854_v26, %s3279_s25  ;;  %580 = vrot.lane.b32.xlu0 %v3857_v46, %s3279_s25 }
 0x2c4   : > { %v3865_v55 = vpop.permute.xlu0 %1415 }
 0x2c5   : > { %6400 = vst [vmem:[#allocation74_spill] sm:$0xff] %v3865_v55 }
 0x2c7   : > { %v3867_v61 = vpop.permute.xlu1 %1147  ;;  %822 = vrot.lane.b32.xlu1 %v3796_v30, %s3281_s27  ;;  %826 = vrot.lane.b32.xlu0 %v3812_v5, %s3281_s27 }
 0x2c8   : > { %6401 = vst [vmem:[#allocation75_spill] sm:$0xff] %v3867_v61  ;;  %v3873_v44 = vpop.permute.xlu0 %1419  ;;  %v1602_v61 = vrot.slane %v3561_v32, %v3898_v40 }
 0x2ca   : > { %v3926_v59 = vmul.f32 %v1602_v61, %v3791_v2  ;;  %v1590_v2 = vrot.slane %v3583_v41, %v3898_v40  ;;  %v1574_v41 = vrot.slane %v3527_v20, %v3898_v40 }
 0x2cb   : > { %v3875_v8 = vpop.permute.xlu1 %1141  ;;  %824 = vrot.lane.b32.xlu1 %v3784_v12, %s3281_s27  ;;  %830 = vrot.lane.b32.xlu0 %v3825_v60, %s3281_s27 }
 0x2cc   : > { %v3881_v34 = vpop.permute.xlu0 %1421  ;;  %6407 = vst [vmem:[#allocation81_spill] sm:$0xff] %v3926_v59  ;;  %v3973_v20 = vmul.f32 %v1574_v41, %v3781_v50 }
 0x2cf   : > { %v3883_v6 = vpop.permute.xlu1 %1145  ;;  %828 = vrot.lane.b32.xlu1 %v3809_v42, %s3281_s27  ;;  %834 = vrot.lane.b32.xlu0 %v3854_v26, %s3281_s27 }
 0x2d0   : > { %6402 = vst [vmem:[#allocation76_spill] sm:$0xff] %v3883_v6  ;;  %v3889_v55 = vpop.permute.xlu0 %1425 }
 0x2d1   : > { %6403 = vst [vmem:[#allocation77_spill] sm:$0xff] %v3889_v55  ;;  %v1578_v55 = vrot.slane %v3532_v10, %v3898_v40 }
 0x2d3   : > { %v3891_v11 = vpop.permute.xlu1 %1417  ;;  %832 = vrot.lane.b32.xlu1 %v3837_v63, %s3281_s27  ;;  %950 = vrot.lane.b32.xlu0 %v3812_v5, %s3280_s26 }
 0x2d4   : > { %v1294_v33 = vpop.permute.xlu0 %1293 }
 0x2d7   : > { %v3900_v6 = vpop.permute.xlu1 %1429  ;;  %836 = vrot.lane.b32.xlu1 %v3857_v46, %s3281_s27  ;;  %952 = vrot.lane.b32.xlu0 %v3809_v42, %s3280_s26 }
 0x2d8   : > { %6404 = vst [vmem:[#allocation78_spill] sm:$0xff] %v3900_v6  ;;  %v1298_v1 = vpop.permute.xlu0 %1297  ;;  %v3914_v6 = vmul.f32 %v1578_v55, %v523_v54  ;;  %v1582_v54 = vrot.slane %v3538_v22, %v3898_v40 }
 0x2da   : > { %6405 = vst [vmem:[#allocation79_spill] sm:$0xff] %v3914_v6 }
 0x2db   : > { %v3908_v56 = vpop.permute.xlu1 %1423  ;;  %946 = vrot.lane.b32.xlu1 %v3796_v30, %s3280_s26  ;;  %956 = vrot.lane.b32.xlu0 %v3837_v63, %s3280_s26  ;;  %v3938_v63 = vmul.f32 %v1582_v54, %v3802_v53  ;;  %v3959_v54 = vmul.f32 %v1590_v2, %v3830_v57  ;;  %v1598_v57 = vrot.slane %v3632_v16, %v3898_v40 }
 0x2dc   : > { %v1366_v58 = vpop.permute.xlu0 %1365 }
 0x2dd   : > { %6408 = vst [vmem:[#allocation82_spill] sm:$0xff] %v3938_v63  ;;  %6411 = vst [vmem:[#allocation85_spill] sm:$0xff] %v3959_v54  ;;  %v3992_v16 = vmul.f32 %v1598_v57, %v3845_v49  ;;  %v1594_v49 = vrot.slane %v3602_v14, %v3898_v40 }
 0x2df   : > { %v3918_v15 = vpop.permute.xlu1 %1427  ;;  %948 = vrot.lane.b32.xlu1 %v3784_v12, %s3280_s26  ;;  %1613 = vrot.lane.b32.xlu0 %v3914_v6, %s3279_s25  ;;  %6415 = vst [vmem:[#allocation89_spill] sm:$0xff] %v3992_v16 }
 0x2e0   : > { %6406 = vst [vmem:[#allocation80_spill] sm:$0xff] %v3918_v15  ;;  %v1370_v10 = vpop.permute.xlu0 %1369 }
 0x2e3   : > { %v1292_v32 = vpop.permute.xlu1 %1291  ;;  %960 = vrot.lane.b32.xlu1 %v3857_v46, %s3280_s26  ;;  %1625 = vrot.lane.b32.xlu0 %v3926_v59, %s3279_s25 }
 0x2e4   : > { %v1313_v55 = vsel %vm647_vm2, %v1292_v32, %v1294_v33  ;;  %v1372_v15 = vpop.permute.xlu0 %1371 }
 0x2e5   : > { %v3943_v22 = vmul.f32 %v1313_v55, %v3544_v18  ;;  %v1382_v61 = vsel %vm753_vm3, %v1370_v10, %v1372_v15 }
 0x2e6   : > { %v3948_v46 = vmul.f32 %v1382_v61, %v3578_v39 }
 0x2e7   : > { %6409 = vst [vmem:[#allocation83_spill] sm:$0xff] %v3943_v22  ;;  %v1306_v4 = vpop.permute.xlu1 %1305  ;;  %954 = vrot.lane.b32.xlu1 %v3825_v60, %s3280_s26  ;;  %1615 = vrot.lane.b32.xlu0 %v3938_v63, %s3279_s25 }
 0x2e8   : > { %6410 = vst [vmem:[#allocation84_spill] sm:$0xff] %v3948_v46  ;;  %v1314_v53 = vsel %vm647_vm2, %v1306_v4, %v1292_v32 }
 0x2e9   : > { %v3962_v55 = vmul.f32 %v1314_v53, %v3541_v17 }
 0x2eb   : > { %6412 = vst [vmem:[#allocation86_spill] sm:$0xff] %v3962_v55  ;;  %v1296_v61 = vpop.permute.xlu1 %1295  ;;  %958 = vrot.lane.b32.xlu1 %v3854_v26, %s3280_s26  ;;  %1619 = vrot.lane.b32.xlu0 %v3959_v54, %s3279_s25 }
 0x2ec   : > { %v1311_v46 = vsel %vm647_vm2, %v1296_v61, %v1298_v1  ;;  %v1312_v32 = vsel %vm647_vm2, %v1294_v33, %v1296_v61  ;;  %v1586_v33 = vrot.slane %v3572_v37, %v3898_v40 }
 0x2ed   : > { %v3978_v2 = vmul.f32 %v1312_v32, %v3547_v21  ;;  %v3981_v53 = vmul.f32 %v1311_v46, %v3575_v38 }
 0x2ee   : > { %v4006_v37 = vmul.f32 %v1586_v33, %v3818_v51 }
 0x2ef   : > { %6413 = vst [vmem:[#allocation87_spill] sm:$0xff] %v3978_v2  ;;  %6414 = vst [vmem:[#allocation88_spill] sm:$0xff] %v3981_v53  ;;  %v1364_v55 = vpop.permute.xlu1 %1363  ;;  %1611 = vrot.lane.b32.xlu1 %v3973_v20, %s3279_s25  ;;  %1891 = vrot.lane.b32.xlu0 %v3973_v20, %s3280_s26  ;;  %v6446_v2 = vld [vmem:[#allocation46_spill] sm:$0xff] }
 0x2f0   : > { %v1385_v50 = vsel %vm753_vm3, %v1364_v55, %v1366_v58  ;;  %6417 = vst [vmem:[#allocation91_spill] sm:$0xff] %v4006_v37 }
 0x2f1   : > { %v3995_v41 = vmul.f32 %v1385_v50, %v3550_v24 }
 0x2f3   : > { %6416 = vst [vmem:[#allocation90_spill] sm:$0xff] %v3995_v41  ;;  %v1368_v46 = vpop.permute.xlu1 %1367  ;;  %1623 = vrot.lane.b32.xlu1 %v3992_v16, %s3279_s25  ;;  %1895 = vrot.lane.b32.xlu0 %v3938_v63, %s3280_s26 }
 0x2f4   : > { %v1383_v61 = vsel %vm753_vm3, %v1368_v46, %v1370_v10  ;;  %v1384_v32 = vsel %vm753_vm3, %v1366_v58, %v1368_v46  ;;  %v4023_v58 = vmul.f32 %v1594_v49, %v3849_v3 }
 0x2f5   : > { %v4011_v57 = vmul.f32 %v1384_v32, %v3553_v29  ;;  %v4014_v50 = vmul.f32 %v1383_v61, %v3556_v31  ;;  %v1157_v32 = vsel %vm582_vm4, %v3859_v62, %v3806_v52 }
 0x2f6   : > { %6420 = vst [vmem:[#allocation94_spill] sm:$0xff] %v4023_v58 }
 0x2f7   : > { %6418 = vst [vmem:[#allocation92_spill] sm:$0xff] %v4011_v57  ;;  %6419 = vst [vmem:[#allocation93_spill] sm:$0xff] %v4014_v50  ;;  %v1300_v41 = vpop.permute.xlu1 %1299  ;;  %1617 = vrot.lane.b32.xlu1 %v4006_v37, %s3279_s25  ;;  %1897 = vrot.lane.b32.xlu0 %v4006_v37, %s3280_s26 }
 0x2f8   : > { %v1310_v51 = vsel %vm647_vm2, %v1298_v1, %v1300_v41 }
 0x2f9   : > { %v4026_v40 = vmul.f32 %v1310_v51, %v3586_v43  ;;  %v4063_v51 = vmul.f32 %v1157_v32, %v3648_v13 }
 0x2fb   : > { %6421 = vst [vmem:[#allocation95_spill] sm:$0xff] %v4026_v40  ;;  %v1302_v14 = vpop.permute.xlu1 %1301  ;;  %1621 = vrot.lane.b32.xlu1 %v4023_v58, %s3279_s25  ;;  %1901 = vrot.lane.b32.xlu0 %v4023_v58, %s3280_s26  ;;  %6425 = vst [vmem:[#allocation99_spill] sm:$0xff] %v4063_v51  ;;  %s2198_s25 = scalar_lea.vmem [#allocation3], %s3388_s29 }
 0x2fc   : > { %v1309_v10 = vsel %vm647_vm2, %v1300_v41, %v1302_v14 }
 0x2fd   : > { %v4035_v33 = vmul.f32 %v1309_v10, %v3607_v25  ;;  %v1155_v10 = vsel %vm582_vm4, %v3834_v19, %v3875_v8 }
 0x2ff   : > { %6422 = vst [vmem:[#allocation96_spill] sm:$0xff] %v4035_v33  ;;  %v1304_v1 = vpop.permute.xlu1 %1303  ;;  %1893 = vrot.lane.b32.xlu1 %v3914_v6, %s3280_s26  ;;  %896 = vrot.lane.b32.xlu0 %v3784_v12, %s3282_s28  ;;  %v6442_v33 = vld [vmem:[#allocation77_spill] sm:$0xff] }
 0x300   : > { %v1307_v3 = vsel %vm647_vm2, %v1304_v1, %v1306_v4  ;;  %v1308_v46 = vsel %vm647_vm2, %v1302_v14, %v1304_v1 }
 0x301   : > { %v4047_v41 = vmul.f32 %v1308_v46, %v3637_v47  ;;  %v4050_v61 = vmul.f32 %v1307_v3, %v3564_v27  ;;  %v4079_v3 = vmul.f32 %v1155_v10, %v3671_v28 }
 0x303   : > { %6423 = vst [vmem:[#allocation97_spill] sm:$0xff] %v4047_v41  ;;  %6424 = vst [vmem:[#allocation98_spill] sm:$0xff] %v4050_v61  ;;  %v1374_v49 = vpop.permute.xlu1 %1373  ;;  %1905 = vrot.lane.b32.xlu1 %v3926_v59, %s3280_s26  ;;  %906 = vrot.lane.b32.xlu0 %v3854_v26, %s3282_s28  ;;  %v6439_v61 = vld [vmem:[#allocation75_spill] sm:$0xff] }
 0x304   : > { %v1381_v4 = vsel %vm753_vm3, %v1372_v15, %v1374_v49  ;;  %6427 = vst [vmem:[#allocation101_spill] sm:$0xff] %v4079_v3 }
 0x305   : > { %v4066_v14 = vmul.f32 %v1381_v4, %v3589_v45 }
 0x307   : > { %6426 = vst [vmem:[#allocation100_spill] sm:$0xff] %v4066_v14  ;;  %v1376_v1 = vpop.permute.xlu1 %1375  ;;  %1899 = vrot.lane.b32.xlu1 %v3959_v54, %s3280_s26  ;;  %1169 = vrot.lane.b32.xlu0 %v4063_v51, %s3281_s27 }
 0x308   : > { %v1380_v15 = vsel %vm753_vm3, %v1374_v49, %v1376_v1 }
 0x309   : > { %v4082_v46 = vmul.f32 %v1380_v15, %v3610_v23  ;;  %v1434_v15 = vsel %vm962_vm5, %v3881_v34, %v3908_v56 }
 0x30b   : > { %6428 = vst [vmem:[#allocation102_spill] sm:$0xff] %v4082_v46  ;;  %v1378_v32 = vpop.permute.xlu1 %1377  ;;  %1903 = vrot.lane.b32.xlu1 %v3992_v16, %s3280_s26  ;;  %1173 = vrot.lane.b32.xlu0 %v4079_v3, %s3281_s27 }
 0x30c   : > { %v1379_v4 = vsel %vm753_vm3, %v1376_v1, %v1378_v32  ;;  %v1386_v14 = vsel %vm753_vm3, %v1378_v32, %v1364_v55  ;;  %v1154_v1 = vsel %vm582_vm4, %v3875_v8, %v3851_v36  ;;  %v6433_v32 = vld [vmem:[#allocation58_spill] sm:$0xff] }
 0x30d   : > { %v4093_v49 = vmul.f32 %v1379_v4, %v3640_v48  ;;  %v4096_v10 = vmul.f32 %v1386_v14, %v3567_v35  ;;  %v4112_v55 = vmul.f32 %v1154_v1, %v3674_v9  ;;  %v1436_v14 = vsel %vm962_vm5, %v3891_v11, %v3873_v44  ;;  %v6435_v1 = vld [vmem:[#allocation69_spill] sm:$0xff] }
 0x30e   : > { %v4123_v8 = vmul.f32 %v1436_v14, %v3698_v7  ;;  %v4134_v4 = vmul.f32 %v1434_v15, %v6433_v32  ;;  %v1158_v14 = vsel %vm582_vm4, %v6435_v1, %v3859_v62  ;;  %v1151_v15 = vsel %vm582_vm4, %v6439_v61, %v6435_v1  ;;  %v6440_v62 = vld [vmem:[#allocation51_spill] sm:$0xff] }
 0x30f   : > { %6429 = vst [vmem:[#allocation103_spill] sm:$0xff] %v4093_v49  ;;  %6430 = vst [vmem:[#allocation104_spill] sm:$0xff] %v4096_v10  ;;  %894 = vrot.lane.b32.xlu1 %v3796_v30, %s3282_s28  ;;  %1241 = vrot.lane.b32.xlu0 %v4063_v51, %s3282_s28  ;;  %v6436_v10 = vld [vmem:[#allocation71_spill] sm:$0xff]  ;;  %v6437_v49 = vld [vmem:[#allocation48_spill] sm:$0xff]  ;;  %v4156_v41 = vmul.f32 %v1151_v15, %v6440_v62  ;;  %v1156_v15 = vsel %vm582_vm4, %v3806_v52, %v3834_v19 }
 0x310   : > { %6431 = vst [vmem:[#allocation105_spill] sm:$0xff] %v4112_v55  ;;  %6432 = vst [vmem:[#allocation106_spill] sm:$0xff] %v4123_v8  ;;  %v4145_v46 = vmul.f32 %v1158_v14, %v6437_v49  ;;  %v1433_v14 = vsel %vm962_vm5, %v3908_v56, %v6442_v33  ;;  %v6443_v1 = vld [vmem:[#allocation59_spill] sm:$0xff]  ;;  %v6445_v56 = vld [vmem:[#allocation73_spill] sm:$0xff]  ;;  %v4184_v22 = vmul.f32 %v1156_v15, %v6446_v2 }
 0x311   : > { %6434 = vst [vmem:[#allocation58_spill] sm:$0xff] %v4134_v4  ;;  %6441 = vst [vmem:[#allocation48_spill] sm:$0xff] %v4156_v41  ;;  %v4169_v50 = vmul.f32 %v1433_v14, %v6443_v1  ;;  %v6449_v51 = vld [vmem:[#allocation53_spill] sm:$0xff] }
 0x312   : > { %6438 = vst [vmem:[#allocation69_spill] sm:$0xff] %v4145_v46  ;;  %6447 = vst [vmem:[#allocation77_spill] sm:$0xff] %v4184_v22 }
 0x313   : > { %898 = vrot.lane.b32.xlu1 %v3812_v5, %s3282_s28  ;;  %1245 = vrot.lane.b32.xlu0 %v4079_v3, %s3282_s28  ;;  %6444 = vst [vmem:[#allocation75_spill] sm:$0xff] %v4169_v50 }
 0x317   : > { %900 = vrot.lane.b32.xlu1 %v3809_v42, %s3282_s28  ;;  %1247 = vrot.lane.b32.xlu0 %v4112_v55, %s3282_s28 }
 0x31b   : > { %902 = vrot.lane.b32.xlu1 %v3825_v60, %s3282_s28  ;;  %1449 = vrot.lane.b32.xlu0 %v4123_v8, %s3281_s27 }
 0x31f   : > { %904 = vrot.lane.b32.xlu1 %v6436_v10, %s3282_s28  ;;  %1453 = vrot.lane.b32.xlu0 %v4134_v4, %s3281_s27 }
 0x322   : > { %v4171_v57 = vpop.permute.xlu0 %568 }
 0x323   : > { %1167 = vrot.lane.b32.xlu1 %v4145_v46, %s3281_s27  ;;  %1521 = vrot.lane.b32.xlu0 %v4123_v8, %s3282_s28 }
 0x326   : > { %v4162_v40 = vpop.permute.xlu1 %566 }
 0x327   : > { %1181 = vrot.lane.b32.xlu1 %v4156_v41, %s3281_s27  ;;  %1525 = vrot.lane.b32.xlu0 %v4134_v4, %s3282_s28 }
 0x329   : > { %v4186_v14 = vpop.permute.xlu0 %572 }
 0x32a   : > { %v4177_v53 = vpop.permute.xlu1 %570 }
 0x32b   : > { %908 = vrot.lane.b32.xlu1 %v6445_v56, %s3282_s28  ;;  %1527 = vrot.lane.b32.xlu0 %v4169_v50, %s3282_s28  ;;  %v6448_v56 = vld [vmem:[#allocation76_spill] sm:$0xff] }
 0x32c   : > { %v1153_v26 = vsel %vm582_vm4, %v3851_v36, %v6448_v56 }
 0x32e   : > { %v4192_v52 = vpop.permute.xlu1 %574 }
 0x32f   : > { %1171 = vrot.lane.b32.xlu1 %v4184_v22, %s3281_s27  ;;  %1769 = vrot.lane.b32.xlu0 %v3914_v6, %s3281_s27 }
 0x331   : > { %v4194_v19 = vpop.permute.xlu0 %576 }
 0x333   : > { %1239 = vrot.lane.b32.xlu1 %v4145_v46, %s3282_s28  ;;  %1773 = vrot.lane.b32.xlu0 %v4006_v37, %s3281_s27  ;;  %v4217_v46 = vmul.f32 %v1153_v26, %v6449_v51  ;;  %v6453_v26 = vld [vmem:[#allocation54_spill] sm:$0xff] }
 0x335   : > { %v4200_v15 = vpop.permute.xlu1 %578  ;;  %v4202_v4 = vpop.permute.xlu0 %580  ;;  %6450 = vst [vmem:[#allocation76_spill] sm:$0xff] %v4217_v46 }
 0x337   : > { %1243 = vrot.lane.b32.xlu1 %v4184_v22, %s3282_s28  ;;  %1841 = vrot.lane.b32.xlu0 %v3914_v6, %s3282_s28  ;;  %v1152_v6 = vsel %vm582_vm4, %v6448_v56, %v6439_v61 }
 0x338   : > { %v4238_v61 = vmul.f32 %v1152_v6, %v6453_v26 }
 0x339   : > { %v823_v8 = vpop.permute.xlu1 %822  ;;  %v827_v3 = vpop.permute.xlu0 %826 }
 0x33a   : > { %6454 = vst [vmem:[#allocation109_spill] sm:$0xff] %v4238_v61 }
 0x33b   : > { %1175 = vrot.lane.b32.xlu1 %v4112_v55, %s3281_s27  ;;  %1845 = vrot.lane.b32.xlu0 %v4006_v37, %s3282_s28 }
 0x33d   : > { %v825_v10 = vpop.permute.xlu1 %824  ;;  %v831_v60 = vpop.permute.xlu0 %830 }
 0x33e   : > { %v843_v22 = vsel %vm647_vm2, %v825_v10, %v827_v3  ;;  %v844_v36 = vsel %vm647_vm2, %v823_v8, %v825_v10  ;;  %v589_v10 = vsel %vm582_vm4, %v4162_v40, %v4171_v57 }
 0x33f   : > { %v4228_v55 = vmul.f32 %v844_v36, %v3544_v18  ;;  %v4231_v37 = vmul.f32 %v843_v22, %v3547_v21  ;;  %1177 = vrot.lane.b32.xlu1 %v4217_v46, %s3281_s27  ;;  %1847 = vrot.lane.b32.xlu0 %v3959_v54, %s3282_s28  ;;  %v4259_v6 = vmul.f32 %v3648_v13, %v589_v10 }
 0x341   : > { %6451 = vst [vmem:[#allocation107_spill] sm:$0xff] %v4228_v55  ;;  %6452 = vst [vmem:[#allocation108_spill] sm:$0xff] %v4231_v37  ;;  %v829_v56 = vpop.permute.xlu1 %828  ;;  %v835_v42 = vpop.permute.xlu0 %834 }
 0x342   : > { %v841_v22 = vsel %vm647_vm2, %v829_v56, %v831_v60  ;;  %v842_v36 = vsel %vm647_vm2, %v827_v3, %v829_v56  ;;  %6457 = vst [vmem:[#allocation112_spill] sm:$0xff] %v4259_v6  ;;  %v587_v3 = vsel %vm582_vm4, %v4177_v53, %v4186_v14 }
 0x343   : > { %v4249_v37 = vmul.f32 %v842_v36, %v3575_v38  ;;  %v4252_v55 = vmul.f32 %v841_v22, %v3586_v43  ;;  %1179 = vrot.lane.b32.xlu1 %v4238_v61, %s3281_s27  ;;  %1851 = vrot.lane.b32.xlu0 %v3992_v16, %s3282_s28 }
 0x345   : > { %6455 = vst [vmem:[#allocation110_spill] sm:$0xff] %v4249_v37  ;;  %6456 = vst [vmem:[#allocation111_spill] sm:$0xff] %v4252_v55  ;;  %v833_v30 = vpop.permute.xlu1 %832  ;;  %v4261_v5 = vpop.permute.xlu0 %950  ;;  %v4282_v55 = vmul.f32 %v3671_v28, %v587_v3 }
 0x346   : > { %v839_v56 = vsel %vm647_vm2, %v833_v30, %v835_v42  ;;  %v840_v22 = vsel %vm647_vm2, %v831_v60, %v833_v30  ;;  %v6460_v30 = vld [vmem:[#allocation74_spill] sm:$0xff] }
 0x347   : > { %v4272_v36 = vmul.f32 %v840_v22, %v3607_v25  ;;  %v4275_v10 = vmul.f32 %v839_v56, %v3637_v47  ;;  %1249 = vrot.lane.b32.xlu1 %v4217_v46, %s3282_s28  ;;  %633 = vrot.lane.b32.xlu0 %v4259_v6, %s3281_s27  ;;  %v1437_v60 = vsel %vm962_vm5, %v6460_v30, %v3891_v11  ;;  %v6463_v11 = vld [vmem:[#allocation56_spill] sm:$0xff] }
 0x348   : > { %v585_v56 = vsel %vm582_vm4, %v4192_v52, %v4194_v19  ;;  %v4309_v46 = vmul.f32 %v1437_v60, %v6463_v11  ;;  %v6467_v60 = vld [vmem:[#allocation57_spill] sm:$0xff] }
 0x349   : > { %6458 = vst [vmem:[#allocation113_spill] sm:$0xff] %v4272_v36  ;;  %6459 = vst [vmem:[#allocation114_spill] sm:$0xff] %v4275_v10  ;;  %v837_v37 = vpop.permute.xlu1 %836  ;;  %v4284_v12 = vpop.permute.xlu0 %952 }
 0x34a   : > { %v838_v22 = vsel %vm647_vm2, %v835_v42, %v837_v37  ;;  %v845_v3 = vsel %vm647_vm2, %v837_v37, %v823_v8  ;;  %6464 = vst [vmem:[#allocation116_spill] sm:$0xff] %v4309_v46  ;;  %v4312_v42 = vmul.f32 %v6449_v51, %v585_v56  ;;  %v6466_v8 = vld [vmem:[#allocation78_spill] sm:$0xff] }
 0x34b   : > { %v4299_v10 = vmul.f32 %v845_v3, %v3541_v17  ;;  %v4302_v36 = vmul.f32 %v838_v22, %v3564_v27  ;;  %1251 = vrot.lane.b32.xlu1 %v4238_v61, %s3282_s28  ;;  %637 = vrot.lane.b32.xlu0 %v4282_v55, %s3281_s27  ;;  %v1438_v22 = vsel %vm962_vm5, %v6466_v8, %v6460_v30 }
 0x34c   : > { %v583_v3 = vsel %vm582_vm4, %v4200_v15, %v4202_v4  ;;  %v4331_v56 = vmul.f32 %v1438_v22, %v6467_v60  ;;  %v588_v30 = vsel %vm582_vm4, %v4171_v57, %v4177_v53  ;;  %v586_v53 = vsel %vm582_vm4, %v4186_v14, %v4192_v52  ;;  %v6471_v57 = vld [vmem:[#allocation55_spill] sm:$0xff] }
 0x34d   : > { %6461 = vst [vmem:[#allocation74_spill] sm:$0xff] %v4299_v10  ;;  %6462 = vst [vmem:[#allocation115_spill] sm:$0xff] %v4302_v36  ;;  %v4314_v6 = vpop.permute.xlu1 %946  ;;  %v4316_v37 = vpop.permute.xlu0 %956  ;;  %v4334_v36 = vmul.f32 %v6440_v62, %v583_v3  ;;  %v4347_v22 = vmul.f32 %v6446_v2, %v588_v30  ;;  %v1435_v62 = vsel %vm962_vm5, %v3873_v44, %v3881_v34 }
 0x34e   : > { %6465 = vst [vmem:[#allocation117_spill] sm:$0xff] %v4316_v37  ;;  %v4366_v30 = vmul.f32 %v1435_v62, %v6471_v57  ;;  %v4369_v2 = vmul.f32 %v3674_v9, %v586_v53  ;;  %v584_v44 = vsel %vm582_vm4, %v4194_v19, %v4200_v15 }
 0x34f   : > { %1447 = vrot.lane.b32.xlu1 %v4309_v46, %s3281_s27  ;;  %641 = vrot.lane.b32.xlu0 %v4312_v42, %s3281_s27  ;;  %6468 = vst [vmem:[#allocation78_spill] sm:$0xff] %v4334_v36  ;;  %v4382_v34 = vmul.f32 %v6453_v26, %v584_v44  ;;  %v6480_v26 = vld [vmem:[#allocation80_spill] sm:$0xff] }
 0x350   : > { %6472 = vst [vmem:[#allocation120_spill] sm:$0xff] %v4366_v30 }
 0x351   : > { %v949_v10 = vpop.permute.xlu1 %948  ;;  %v4336_v61 = vpop.permute.xlu0 %1613 }
 0x352   : > { %6469 = vst [vmem:[#allocation118_spill] sm:$0xff] %v4336_v61  ;;  %v968_v52 = vsel %vm962_vm5, %v949_v10, %v4261_v5  ;;  %v969_v44 = vsel %vm962_vm5, %v4314_v6, %v949_v10  ;;  %v967_v10 = vsel %vm962_vm5, %v4261_v5, %v4284_v12 }
 0x353   : > { %1461 = vrot.lane.b32.xlu1 %v4331_v56, %s3281_s27  ;;  %645 = vrot.lane.b32.xlu0 %v4334_v36, %s3281_s27  ;;  %v4396_v19 = vmul.f32 %v3698_v7, %v968_v52 }
 0x355   : > { %v4349_v51 = vpop.permute.xlu1 %960  ;;  %v4351_v3 = vpop.permute.xlu0 %1625  ;;  %6475 = vst [vmem:[#allocation123_spill] sm:$0xff] %v4396_v19 }
 0x356   : > { %6470 = vst [vmem:[#allocation119_spill] sm:$0xff] %v4351_v3 }
 0x357   : > { %1253 = vrot.lane.b32.xlu1 %v4156_v41, %s3282_s28  ;;  %741 = vrot.lane.b32.xlu0 %v4347_v22, %s3282_s28 }
 0x359   : > { %v955_v3 = vpop.permute.xlu1 %954  ;;  %v4371_v60 = vpop.permute.xlu0 %1615 }
 0x35a   : > { %6473 = vst [vmem:[#allocation121_spill] sm:$0xff] %v4371_v60  ;;  %v966_v5 = vsel %vm962_vm5, %v4284_v12, %v955_v3  ;;  %v965_v12 = vsel %vm962_vm5, %v955_v3, %v4316_v37 }
 0x35b   : > { %1451 = vrot.lane.b32.xlu1 %v4366_v30, %s3281_s27  ;;  %745 = vrot.lane.b32.xlu0 %v4369_v2, %s3282_s28 }
 0x35d   : > { %v4384_v62 = vpop.permute.xlu1 %958  ;;  %v4386_v14 = vpop.permute.xlu0 %1619 }
 0x35e   : > { %6474 = vst [vmem:[#allocation122_spill] sm:$0xff] %v4384_v62 }
 0x35f   : > { %1519 = vrot.lane.b32.xlu1 %v4309_v46, %s3282_s28  ;;  %749 = vrot.lane.b32.xlu0 %v4382_v34, %s3282_s28  ;;  %v4410_v46 = vmul.f32 %v6463_v11, %v969_v44  ;;  %v6481_v44 = vld [vmem:[#allocation60_spill] sm:$0xff]  ;;  %v4430_v11 = vmul.f32 %v6471_v57, %v967_v10  ;;  %v4451_v57 = vmul.f32 %v6433_v32, %v966_v5 }
 0x361   : > { %v4398_v15 = vpop.permute.xlu1 %1611  ;;  %v4400_v53 = vpop.permute.xlu0 %1891  ;;  %6478 = vst [vmem:[#allocation126_spill] sm:$0xff] %v4410_v46  ;;  %6483 = vst [vmem:[#allocation60_spill] sm:$0xff] %v4430_v11 }
 0x362   : > { %6476 = vst [vmem:[#allocation124_spill] sm:$0xff] %v4398_v15  ;;  %6477 = vst [vmem:[#allocation125_spill] sm:$0xff] %v4400_v53  ;;  %v1432_v53 = vsel %vm962_vm5, %v6442_v33, %v6480_v26  ;;  %v1431_v33 = vsel %vm962_vm5, %v6480_v26, %v6466_v8 }
 0x363   : > { %1523 = vrot.lane.b32.xlu1 %v4366_v30, %s3282_s28  ;;  %1013 = vrot.lane.b32.xlu0 %v4396_v19, %s3281_s27  ;;  %v4427_v30 = vmul.f32 %v1432_v53, %v6481_v44  ;;  %v6485_v53 = vld [vmem:[#allocation61_spill] sm:$0xff]  ;;  %6487 = vst [vmem:[#allocation129_spill] sm:$0xff] %v4451_v57 }
 0x364   : > { %v4448_v10 = vmul.f32 %v1431_v33, %v6485_v53  ;;  %v4465_v33 = vmul.f32 %v6443_v1, %v965_v12 }
 0x365   : > { %v4412_v41 = vpop.permute.xlu1 %1623  ;;  %v1896_v52 = vpop.permute.xlu0 %1895  ;;  %6482 = vst [vmem:[#allocation80_spill] sm:$0xff] %v4427_v30 }
 0x366   : > { %6479 = vst [vmem:[#allocation127_spill] sm:$0xff] %v4412_v41  ;;  %6486 = vst [vmem:[#allocation61_spill] sm:$0xff] %v4448_v10 }
 0x367   : > { %1455 = vrot.lane.b32.xlu1 %v4169_v50, %s3281_s27  ;;  %1083 = vrot.lane.b32.xlu0 %v4410_v46, %s3282_s28  ;;  %6490 = vst [vmem:[#allocation132_spill] sm:$0xff] %v4465_v33 }
 0x369   : > { %v1618_v41 = vpop.permute.xlu1 %1617  ;;  %v1898_v62 = vpop.permute.xlu0 %1897 }
 0x36a   : > { %v4441_v50 = vsel %vm962_vm5, %v1896_v52, %v1898_v62  ;;  %v1631_v1 = vsel %vm582_vm4, %v4371_v60, %v1618_v41 }
 0x36b   : > { %6484 = vst [vmem:[#allocation128_spill] sm:$0xff] %v4441_v50  ;;  %1457 = vrot.lane.b32.xlu1 %v4427_v30, %s3281_s27  ;;  %1087 = vrot.lane.b32.xlu0 %v4430_v11, %s3282_s28 }
 0x36d   : > { %v4453_v26 = vpop.permute.xlu1 %1621  ;;  %v4455_v8 = vpop.permute.xlu0 %1901 }
 0x36e   : > { %6488 = vst [vmem:[#allocation130_spill] sm:$0xff] %v4453_v26  ;;  %6489 = vst [vmem:[#allocation131_spill] sm:$0xff] %v4455_v8  ;;  %v1633_v26 = vsel %vm582_vm4, %v4398_v15, %v4336_v61 }
 0x36f   : > { %1459 = vrot.lane.b32.xlu1 %v4448_v10, %s3281_s27  ;;  %1089 = vrot.lane.b32.xlu0 %v4451_v57, %s3282_s28  ;;  %v4478_v3 = vmul.f32 %v1633_v26, %v3648_v13 }
 0x371   : > { %v4467_v50 = vpop.permute.xlu1 %1893  ;;  %v897_v5 = vpop.permute.xlu0 %896  ;;  %6491 = vst [vmem:[#allocation133_spill] sm:$0xff] %v4478_v3 }
 0x373   : > { %1529 = vrot.lane.b32.xlu1 %v4427_v30, %s3282_s28  ;;  %1091 = vrot.lane.b32.xlu0 %v4465_v33, %s3282_s28  ;;  %v4492_v30 = vmul.f32 %v1631_v1, %v3671_v28 }
 0x375   : > { %v4480_v37 = vpop.permute.xlu1 %1905  ;;  %v4482_v12 = vpop.permute.xlu0 %906  ;;  %6492 = vst [vmem:[#allocation134_spill] sm:$0xff] %v4492_v30 }
 0x377   : > { %1531 = vrot.lane.b32.xlu1 %v4448_v10, %s3282_s28  ;;  %1645 = vrot.lane.b32.xlu0 %v4478_v3, %s3281_s27  ;;  %v1630_v10 = vsel %vm582_vm4, %v1618_v41, %v4386_v14  ;;  %v1912_v41 = vsel %vm962_vm5, %v4467_v50, %v1896_v52 }
 0x379   : > { %v4494_v61 = vpop.permute.xlu1 %1899  ;;  %v4496_v13 = vpop.permute.xlu0 %1169 }
 0x37a   : > { %6493 = vst [vmem:[#allocation135_spill] sm:$0xff] %v4494_v61  ;;  %v1910_v52 = vsel %vm962_vm5, %v1898_v62, %v4494_v61 }
 0x37b   : > { %1767 = vrot.lane.b32.xlu1 %v3973_v20, %s3281_s27  ;;  %1649 = vrot.lane.b32.xlu0 %v4492_v30, %s3281_s27  ;;  %v4564_v62 = vmul.f32 %v1910_v52, %v6433_v32 }
 0x37d   : > { %v1904_v26 = vpop.permute.xlu1 %1903  ;;  %v4502_v60 = vpop.permute.xlu0 %1173  ;;  %6500 = vst [vmem:[#allocation142_spill] sm:$0xff] %v4564_v62 }
 0x37f   : > { %1781 = vrot.lane.b32.xlu1 %v3926_v59, %s3281_s27  ;;  %1717 = vrot.lane.b32.xlu0 %v4478_v3, %s3282_s28  ;;  %v4523_v3 = vmul.f32 %v1630_v10, %v3674_v9  ;;  %v4540_v9 = vmul.f32 %v1912_v41, %v3698_v7 }
 0x381   : > { %v895_v28 = vpop.permute.xlu1 %894  ;;  %v4508_v1 = vpop.permute.xlu0 %1241  ;;  %6495 = vst [vmem:[#allocation137_spill] sm:$0xff] %v4523_v3  ;;  %6497 = vst [vmem:[#allocation139_spill] sm:$0xff] %v4540_v9 }
 0x382   : > { %v916_v15 = vsel %vm753_vm3, %v895_v28, %v897_v5 }
 0x383   : > { %v4516_v33 = vmul.f32 %v916_v15, %v3550_v24  ;;  %1533 = vrot.lane.b32.xlu1 %v4331_v56, %s3282_s28  ;;  %1721 = vrot.lane.b32.xlu0 %v4492_v30, %s3282_s28 }
 0x385   : > { %6494 = vst [vmem:[#allocation136_spill] sm:$0xff] %v4516_v33  ;;  %v899_v19 = vpop.permute.xlu1 %898  ;;  %v4525_v57 = vpop.permute.xlu0 %1245 }
 0x386   : > { %v915_v15 = vsel %vm753_vm3, %v897_v5, %v899_v19 }
 0x387   : > { %v4533_v33 = vmul.f32 %v915_v15, %v3553_v29  ;;  %1771 = vrot.lane.b32.xlu1 %v3938_v63, %s3281_s27  ;;  %1723 = vrot.lane.b32.xlu0 %v4523_v3, %s3282_s28 }
 0x389   : > { %6496 = vst [vmem:[#allocation138_spill] sm:$0xff] %v4533_v33  ;;  %v901_v10 = vpop.permute.xlu1 %900  ;;  %v4542_v30 = vpop.permute.xlu0 %1247 }
 0x38a   : > { %v914_v5 = vsel %vm753_vm3, %v899_v19, %v901_v10  ;;  %v1258_v15 = vsel %vm753_vm3, %v4525_v57, %v4542_v30 }
 0x38b   : > { %v4554_v33 = vmul.f32 %v914_v5, %v3556_v31  ;;  %v4557_v7 = vmul.f32 %v1258_v15, %v3578_v39  ;;  %1839 = vrot.lane.b32.xlu1 %v3973_v20, %s3282_s28  ;;  %1925 = vrot.lane.b32.xlu0 %v4540_v9, %s3281_s27 }
 0x38d   : > { %6498 = vst [vmem:[#allocation140_spill] sm:$0xff] %v4554_v33  ;;  %6499 = vst [vmem:[#allocation141_spill] sm:$0xff] %v4557_v7  ;;  %v903_v19 = vpop.permute.xlu1 %902  ;;  %v4566_v41 = vpop.permute.xlu0 %1449  ;;  %v1908_v33 = vsel %vm962_vm5, %v4455_v8, %v1904_v26 }
 0x38e   : > { %v913_v61 = vsel %vm753_vm3, %v901_v10, %v903_v19 }
 0x38f   : > { %v4571_v5 = vmul.f32 %v913_v61, %v3578_v39  ;;  %1843 = vrot.lane.b32.xlu1 %v3938_v63, %s3282_s28  ;;  %1929 = vrot.lane.b32.xlu0 %v4564_v62, %s3281_s27 }
 0x391   : > { %6501 = vst [vmem:[#allocation143_spill] sm:$0xff] %v4571_v5  ;;  %v905_v15 = vpop.permute.xlu1 %904  ;;  %v4577_v7 = vpop.permute.xlu0 %1453 }
 0x392   : > { %v911_v32 = vsel %vm753_vm3, %v905_v15, %v4482_v12  ;;  %v912_v52 = vsel %vm753_vm3, %v903_v19, %v905_v15 }
 0x393   : > { %v4585_v10 = vmul.f32 %v912_v52, %v3589_v45  ;;  %v4588_v61 = vmul.f32 %v911_v32, %v3610_v23  ;;  %1775 = vrot.lane.b32.xlu1 %v3959_v54, %s3281_s27  ;;  %1997 = vrot.lane.b32.xlu0 %v4540_v9, %s3282_s28  ;;  %v4610_v32 = vmul.f32 %v1908_v33, %v6481_v44 }
 0x394   : > { %v1907_v54 = vsel %vm962_vm5, %v1904_v26, %v4480_v37 }
 0x395   : > { %6502 = vst [vmem:[#allocation144_spill] sm:$0xff] %v4585_v10  ;;  %6503 = vst [vmem:[#allocation145_spill] sm:$0xff] %v4588_v61  ;;  %v1168_v63 = vpop.permute.xlu1 %1167  ;;  %v4594_v5 = vpop.permute.xlu0 %1521  ;;  %v4627_v33 = vmul.f32 %v1907_v54, %v6485_v53 }
 0x396   : > { %v1189_v19 = vsel %vm647_vm2, %v1168_v63, %v4496_v13  ;;  %6505 = vst [vmem:[#allocation147_spill] sm:$0xff] %v4610_v32 }
 0x397   : > { %v4603_v15 = vmul.f32 %v1189_v19, %v3544_v18  ;;  %1777 = vrot.lane.b32.xlu1 %v4023_v58, %s3281_s27  ;;  %2001 = vrot.lane.b32.xlu0 %v4564_v62, %s3282_s28  ;;  %6507 = vst [vmem:[#allocation149_spill] sm:$0xff] %v4627_v33 }
 0x399   : > { %6504 = vst [vmem:[#allocation146_spill] sm:$0xff] %v4603_v15  ;;  %v1182_v52 = vpop.permute.xlu1 %1181  ;;  %v4612_v9 = vpop.permute.xlu0 %1525 }
 0x39a   : > { %v1190_v19 = vsel %vm647_vm2, %v1182_v52, %v1168_v63 }
 0x39b   : > { %v4620_v15 = vmul.f32 %v1190_v19, %v3541_v17  ;;  %1779 = vrot.lane.b32.xlu1 %v3992_v16, %s3281_s27  ;;  %1933 = vrot.lane.b32.xlu0 %v4610_v32, %s3281_s27 }
 0x39d   : > { %6506 = vst [vmem:[#allocation148_spill] sm:$0xff] %v4620_v15  ;;  %v909_v62 = vpop.permute.xlu1 %908  ;;  %v4629_v61 = vpop.permute.xlu0 %1527 }
 0x39e   : > { %v910_v26 = vsel %vm753_vm3, %v4482_v12, %v909_v62  ;;  %v917_v63 = vsel %vm753_vm3, %v909_v62, %v895_v28  ;;  %v1538_v19 = vsel %vm753_vm3, %v4612_v9, %v4629_v61  ;;  %v590_v62 = vsel %vm582_vm4, %v4202_v4, %v4162_v40 }
 0x39f   : > { %v4641_v16 = vmul.f32 %v910_v26, %v3640_v48  ;;  %v4644_v54 = vmul.f32 %v917_v63, %v3567_v35  ;;  %v4647_v15 = vmul.f32 %v1538_v19, %v3578_v39  ;;  %1849 = vrot.lane.b32.xlu1 %v4023_v58, %s3282_s28  ;;  %1935 = vrot.lane.b32.xlu0 %v4627_v33, %s3281_s27 }
 0x3a0   : > { %v4676_v40 = vmul.f32 %v6437_v49, %v590_v62 }
 0x3a1   : > { %6508 = vst [vmem:[#allocation150_spill] sm:$0xff] %v4641_v16  ;;  %6509 = vst [vmem:[#allocation151_spill] sm:$0xff] %v4644_v54  ;;  %v1172_v12 = vpop.permute.xlu1 %1171  ;;  %v4653_v28 = vpop.permute.xlu0 %1769 }
 0x3a2   : > { %6510 = vst [vmem:[#allocation152_spill] sm:$0xff] %v4647_v15  ;;  %v1187_v26 = vsel %vm647_vm2, %v1172_v12, %v4502_v60  ;;  %v1188_v63 = vsel %vm647_vm2, %v4496_v13, %v1172_v12 }
 0x3a3   : > { %v4666_v19 = vmul.f32 %v1188_v63, %v3547_v21  ;;  %v4669_v58 = vmul.f32 %v1187_v26, %v3575_v38  ;;  %1853 = vrot.lane.b32.xlu1 %v3926_v59, %s3282_s28  ;;  %2007 = vrot.lane.b32.xlu0 %v4627_v33, %s3282_s28 }
 0x3a5   : > { %6511 = vst [vmem:[#allocation153_spill] sm:$0xff] %v4666_v19  ;;  %6512 = vst [vmem:[#allocation154_spill] sm:$0xff] %v4669_v58  ;;  %v1240_v4 = vpop.permute.xlu1 %1239  ;;  %v4678_v15 = vpop.permute.xlu0 %1773 }
 0x3a6   : > { %v1261_v13 = vsel %vm753_vm3, %v1240_v4, %v4508_v1 }
 0x3a7   : > { %v4684_v12 = vmul.f32 %v1261_v13, %v3550_v24  ;;  %631 = vrot.lane.b32.xlu1 %v4676_v40, %s3281_s27 }
 0x3a9   : > { %6513 = vst [vmem:[#allocation155_spill] sm:$0xff] %v4684_v12  ;;  %v1244_v26 = vpop.permute.xlu1 %1243  ;;  %v4688_v63 = vpop.permute.xlu0 %1841 }
 0x3aa   : > { %v1259_v62 = vsel %vm753_vm3, %v1244_v26, %v4525_v57  ;;  %v1260_v33 = vsel %vm753_vm3, %v4508_v1, %v1244_v26 }
 0x3ab   : > { %v4697_v59 = vmul.f32 %v1260_v33, %v3553_v29  ;;  %v4700_v13 = vmul.f32 %v1259_v62, %v3556_v31  ;;  %635 = vrot.lane.b32.xlu1 %v4347_v22, %s3281_s27 }
 0x3ad   : > { %6514 = vst [vmem:[#allocation156_spill] sm:$0xff] %v4697_v59  ;;  %6515 = vst [vmem:[#allocation157_spill] sm:$0xff] %v4700_v13  ;;  %v1176_v12 = vpop.permute.xlu1 %1175  ;;  %v4704_v58 = vpop.permute.xlu0 %1845 }
 0x3ae   : > { %v1186_v57 = vsel %vm647_vm2, %v4502_v60, %v1176_v12 }
 0x3af   : > { %v4710_v19 = vmul.f32 %v1186_v57, %v3586_v43  ;;  %639 = vrot.lane.b32.xlu1 %v4369_v2, %s3281_s27 }
 0x3b1   : > { %6516 = vst [vmem:[#allocation158_spill] sm:$0xff] %v4710_v19  ;;  %v1178_v1 = vpop.permute.xlu1 %1177  ;;  %v4714_v33 = vpop.permute.xlu0 %1847 }
 0x3b2   : > { %v1185_v26 = vsel %vm647_vm2, %v1176_v12, %v1178_v1  ;;  %v1858_v62 = vsel %vm753_vm3, %v4704_v58, %v4714_v33 }
 0x3b3   : > { %v4723_v59 = vmul.f32 %v1185_v26, %v3607_v25  ;;  %v4726_v60 = vmul.f32 %v1858_v62, %v3578_v39  ;;  %643 = vrot.lane.b32.xlu1 %v4382_v34, %s3281_s27 }
 0x3b5   : > { %6517 = vst [vmem:[#allocation159_spill] sm:$0xff] %v4723_v59  ;;  %6518 = vst [vmem:[#allocation160_spill] sm:$0xff] %v4726_v60  ;;  %v1180_v57 = vpop.permute.xlu1 %1179  ;;  %v4730_v19 = vpop.permute.xlu0 %1851 }
 0x3b6   : > { %v1183_v12 = vsel %vm647_vm2, %v1180_v57, %v1182_v52  ;;  %v1184_v13 = vsel %vm647_vm2, %v1178_v1, %v1180_v57  ;;  %v6522_v1 = vld [vmem:[#allocation112_spill] sm:$0xff] }
 0x3b7   : > { %v4737_v54 = vmul.f32 %v1184_v13, %v3637_v47  ;;  %v4740_v26 = vmul.f32 %v1183_v12, %v3564_v27  ;;  %737 = vrot.lane.b32.xlu1 %v4676_v40, %s3282_s28 }
 0x3b9   : > { %6519 = vst [vmem:[#allocation161_spill] sm:$0xff] %v4737_v54  ;;  %6520 = vst [vmem:[#allocation162_spill] sm:$0xff] %v4740_v26  ;;  %v1250_v62 = vpop.permute.xlu1 %1249  ;;  %v4744_v60 = vpop.permute.xlu0 %633 }
 0x3ba   : > { %v1257_v59 = vsel %vm753_vm3, %v4542_v30, %v1250_v62 }
 0x3bb   : > { %v4750_v52 = vmul.f32 %v1257_v59, %v3589_v45  ;;  %739 = vrot.lane.b32.xlu1 %v6522_v1, %s3282_s28 }
 0x3bd   : > { %6521 = vst [vmem:[#allocation163_spill] sm:$0xff] %v4750_v52  ;;  %v1252_v13 = vpop.permute.xlu1 %1251  ;;  %v4754_v57 = vpop.permute.xlu0 %637 }
 0x3be   : > { %v1256_v12 = vsel %vm753_vm3, %v1250_v62, %v1252_v13 }
 0x3bf   : > { %v4759_v26 = vmul.f32 %v1256_v12, %v3610_v23  ;;  %743 = vrot.lane.b32.xlu1 %v4282_v55, %s3282_s28 }
 0x3c1   : > { %6523 = vst [vmem:[#allocation112_spill] sm:$0xff] %v4759_v26  ;;  %v1448_v54 = vpop.permute.xlu1 %1447  ;;  %v4763_v30 = vpop.permute.xlu0 %641 }
 0x3c2   : > { %v1469_v59 = vsel %vm647_vm2, %v1448_v54, %v4566_v41 }
 0x3c3   : > { %v4769_v52 = vmul.f32 %v1469_v59, %v3544_v18  ;;  %747 = vrot.lane.b32.xlu1 %v4312_v42, %s3282_s28  ;;  %v970_v59 = vsel %vm962_vm5, %v4349_v51, %v4314_v6 }
 0x3c5   : > { %6524 = vst [vmem:[#allocation164_spill] sm:$0xff] %v4769_v52  ;;  %v1462_v62 = vpop.permute.xlu1 %1461  ;;  %v4773_v16 = vpop.permute.xlu0 %645 }
 0x3c6   : > { %v1470_v12 = vsel %vm647_vm2, %v1462_v62, %v1448_v54 }
 0x3c7   : > { %v4778_v26 = vmul.f32 %v1470_v12, %v3541_v17  ;;  %751 = vrot.lane.b32.xlu1 %v4334_v36, %s3282_s28 }
 0x3c9   : > { %6525 = vst [vmem:[#allocation165_spill] sm:$0xff] %v4778_v26  ;;  %v1254_v32 = vpop.permute.xlu1 %1253  ;;  %v4782_v10 = vpop.permute.xlu0 %741 }
 0x3ca   : > { %6526 = vst [vmem:[#allocation166_spill] sm:$0xff] %v4782_v10  ;;  %v1255_v52 = vsel %vm753_vm3, %v1252_v13, %v1254_v32  ;;  %v1262_v54 = vsel %vm753_vm3, %v1254_v32, %v1240_v4  ;;  %v6529_v10 = vld [vmem:[#allocation57_spill] sm:$0xff] }
 0x3cb   : > { %v4793_v12 = vmul.f32 %v1255_v52, %v3640_v48  ;;  %v4796_v26 = vmul.f32 %v1262_v54, %v3567_v35  ;;  %1011 = vrot.lane.b32.xlu1 %v4410_v46, %s3281_s27  ;;  %v4801_v8 = vmul.f32 %v6529_v10, %v970_v59 }
 0x3cd   : > { %6527 = vst [vmem:[#allocation167_spill] sm:$0xff] %v4793_v12  ;;  %6528 = vst [vmem:[#allocation168_spill] sm:$0xff] %v4796_v26  ;;  %v1452_v36 = vpop.permute.xlu1 %1451  ;;  %v4803_v6 = vpop.permute.xlu0 %745 }
 0x3ce   : > { %6530 = vst [vmem:[#allocation57_spill] sm:$0xff] %v4801_v8  ;;  %v1467_v13 = vsel %vm647_vm2, %v1452_v36, %v4577_v7  ;;  %v1468_v32 = vsel %vm647_vm2, %v4566_v41, %v1452_v36 }
 0x3cf   : > { %v4812_v4 = vmul.f32 %v1468_v32, %v3547_v21  ;;  %v4815_v52 = vmul.f32 %v1467_v13, %v3575_v38  ;;  %1025 = vrot.lane.b32.xlu1 %v4801_v8, %s3281_s27 }
 0x3d1   : > { %6531 = vst [vmem:[#allocation169_spill] sm:$0xff] %v4812_v4  ;;  %6532 = vst [vmem:[#allocation170_spill] sm:$0xff] %v4815_v52  ;;  %v4819_v59 = vpop.permute.xlu1 %1519  ;;  %v4821_v54 = vpop.permute.xlu0 %749 }
 0x3d2   : > { %v1541_v26 = vsel %vm753_vm3, %v4819_v59, %v4594_v5 }
 0x3d3   : > { %v4828_v36 = vmul.f32 %v1541_v26, %v3550_v24  ;;  %1015 = vrot.lane.b32.xlu1 %v4430_v11, %s3281_s27 }
 0x3d5   : > { %6533 = vst [vmem:[#allocation171_spill] sm:$0xff] %v4828_v36  ;;  %v1524_v41 = vpop.permute.xlu1 %1523  ;;  %v4832_v13 = vpop.permute.xlu0 %1013  ;;  %v6537_v36 = vld [vmem:[#allocation129_spill] sm:$0xff] }
 0x3d6   : > { %6534 = vst [vmem:[#allocation172_spill] sm:$0xff] %v4832_v13  ;;  %v1539_v32 = vsel %vm753_vm3, %v1524_v41, %v4612_v9  ;;  %v1540_v12 = vsel %vm753_vm3, %v4594_v5, %v1524_v41  ;;  %v6540_v5 = vld [vmem:[#allocation123_spill] sm:$0xff] }
 0x3d7   : > { %v4841_v52 = vmul.f32 %v1540_v12, %v3553_v29  ;;  %v4844_v26 = vmul.f32 %v1539_v32, %v3556_v31  ;;  %1017 = vrot.lane.b32.xlu1 %v6537_v36, %s3281_s27  ;;  %v6542_v32 = vld [vmem:[#allocation122_spill] sm:$0xff] }
 0x3d8   : > { %v963_v13 = vsel %vm962_vm5, %v6542_v32, %v4349_v51 }
 0x3d9   : > { %6535 = vst [vmem:[#allocation173_spill] sm:$0xff] %v4841_v52  ;;  %6536 = vst [vmem:[#allocation174_spill] sm:$0xff] %v4844_v26  ;;  %v1456_v4 = vpop.permute.xlu1 %1455  ;;  %v4848_v46 = vpop.permute.xlu0 %1083  ;;  %v6543_v52 = vld [vmem:[#allocation117_spill] sm:$0xff]  ;;  %v4897_v51 = vmul.f32 %v6485_v53, %v963_v13 }
 0x3da   : > { %6538 = vst [vmem:[#allocation175_spill] sm:$0xff] %v4848_v46  ;;  %v1466_v9 = vsel %vm647_vm2, %v4577_v7, %v1456_v4  ;;  %v964_v26 = vsel %vm962_vm5, %v6543_v52, %v6542_v32  ;;  %v6545_v7 = vld [vmem:[#allocation132_spill] sm:$0xff] }
 0x3db   : > { %v4854_v11 = vmul.f32 %v1466_v9, %v3586_v43  ;;  %1085 = vrot.lane.b32.xlu1 %v6540_v5, %s3282_s28  ;;  %v4872_v9 = vmul.f32 %v6481_v44, %v964_v26  ;;  %6550 = vst [vmem:[#allocation181_spill] sm:$0xff] %v4897_v51 }
 0x3dd   : > { %6539 = vst [vmem:[#allocation176_spill] sm:$0xff] %v4854_v11  ;;  %v1458_v12 = vpop.permute.xlu1 %1457  ;;  %v4858_v41 = vpop.permute.xlu0 %1087  ;;  %6546 = vst [vmem:[#allocation117_spill] sm:$0xff] %v4872_v9 }
 0x3de   : > { %6541 = vst [vmem:[#allocation177_spill] sm:$0xff] %v4858_v41  ;;  %v1465_v46 = vsel %vm647_vm2, %v1456_v4, %v1458_v12 }
 0x3df   : > { %v4867_v36 = vmul.f32 %v1465_v46, %v3607_v25  ;;  %1019 = vrot.lane.b32.xlu1 %v6545_v7, %s3281_s27 }
 0x3e1   : > { %6544 = vst [vmem:[#allocation122_spill] sm:$0xff] %v4867_v36  ;;  %v1460_v11 = vpop.permute.xlu1 %1459  ;;  %v1090_v5 = vpop.permute.xlu0 %1089 }
 0x3e2   : > { %v1463_v52 = vsel %vm647_vm2, %v1460_v11, %v1462_v62  ;;  %v1464_v46 = vsel %vm647_vm2, %v1458_v12, %v1460_v11  ;;  %v1103_v4 = vsel %vm753_vm3, %v4858_v41, %v1090_v5 }
 0x3e3   : > { %v4886_v44 = vmul.f32 %v1464_v46, %v3637_v47  ;;  %v4889_v26 = vmul.f32 %v1463_v52, %v3564_v27  ;;  %v4892_v36 = vmul.f32 %v1103_v4, %v3556_v31  ;;  %1021 = vrot.lane.b32.xlu1 %v4872_v9, %s3281_s27 }
 0x3e5   : > { %6547 = vst [vmem:[#allocation178_spill] sm:$0xff] %v4886_v44  ;;  %6548 = vst [vmem:[#allocation179_spill] sm:$0xff] %v4889_v26  ;;  %v1530_v11 = vpop.permute.xlu1 %1529  ;;  %v4899_v62 = vpop.permute.xlu0 %1091 }
 0x3e6   : > { %6549 = vst [vmem:[#allocation180_spill] sm:$0xff] %v4892_v36  ;;  %6551 = vst [vmem:[#allocation182_spill] sm:$0xff] %v4899_v62  ;;  %v1537_v12 = vsel %vm753_vm3, %v4629_v61, %v1530_v11  ;;  %v1102_v32 = vsel %vm753_vm3, %v1090_v5, %v4899_v62  ;;  %v6571_v36 = vld [vmem:[#allocation118_spill] sm:$0xff] }
 0x3e7   : > { %v4908_v52 = vmul.f32 %v1537_v12, %v3589_v45  ;;  %v4911_v46 = vmul.f32 %v1102_v32, %v3578_v39  ;;  %1023 = vrot.lane.b32.xlu1 %v4897_v51, %s3281_s27 }
 0x3e9   : > { %6552 = vst [vmem:[#allocation183_spill] sm:$0xff] %v4908_v52  ;;  %6553 = vst [vmem:[#allocation184_spill] sm:$0xff] %v4911_v46  ;;  %v1532_v53 = vpop.permute.xlu1 %1531  ;;  %v4915_v13 = vpop.permute.xlu0 %1645 }
 0x3ea   : > { %6554 = vst [vmem:[#allocation185_spill] sm:$0xff] %v4915_v13  ;;  %v1536_v4 = vsel %vm753_vm3, %v1530_v11, %v1532_v53 }
 0x3eb   : > { %v4920_v61 = vmul.f32 %v1536_v4, %v3610_v23  ;;  %1093 = vrot.lane.b32.xlu1 %v4872_v9, %s3282_s28  ;;  %v6559_v4 = vld [vmem:[#allocation124_spill] sm:$0xff] }
 0x3ed   : > { %6555 = vst [vmem:[#allocation186_spill] sm:$0xff] %v4920_v61  ;;  %v1768_v5 = vpop.permute.xlu1 %1767  ;;  %v4924_v12 = vpop.permute.xlu0 %1649  ;;  %v6560_v61 = vld [vmem:[#allocation119_spill] sm:$0xff] }
 0x3ee   : > { %6556 = vst [vmem:[#allocation187_spill] sm:$0xff] %v4924_v12  ;;  %v1789_v32 = vsel %vm647_vm2, %v1768_v5, %v4653_v28  ;;  %v1634_v44 = vsel %vm582_vm4, %v6560_v61, %v6559_v4 }
 0x3ef   : > { %v4930_v52 = vmul.f32 %v1789_v32, %v3544_v18  ;;  %1095 = vrot.lane.b32.xlu1 %v4897_v51, %s3282_s28  ;;  %v4948_v32 = vmul.f32 %v1634_v44, %v6437_v49  ;;  %v6567_v44 = vld [vmem:[#allocation51_spill] sm:$0xff]  ;;  %v6679_v51 = vld [vmem:[#allocation114_spill] sm:$0xff] }
 0x3f1   : > { %6557 = vst [vmem:[#allocation188_spill] sm:$0xff] %v4930_v52  ;;  %v1782_v11 = vpop.permute.xlu1 %1781  ;;  %v4934_v26 = vpop.permute.xlu0 %1717  ;;  %6562 = vst [vmem:[#allocation119_spill] sm:$0xff] %v4948_v32 }
 0x3f2   : > { %6558 = vst [vmem:[#allocation189_spill] sm:$0xff] %v4934_v26  ;;  %v1790_v12 = vsel %vm647_vm2, %v1782_v11, %v1768_v5  ;;  %v6564_v26 = vld [vmem:[#allocation127_spill] sm:$0xff] }
 0x3f3   : > { %v4943_v13 = vmul.f32 %v1790_v12, %v3541_v17  ;;  %1097 = vrot.lane.b32.xlu1 %v4801_v8, %s3282_s28  ;;  %v1627_v4 = vsel %vm582_vm4, %v6564_v26, %v6560_v61 }
 0x3f4   : > { %v4970_v46 = vmul.f32 %v1627_v4, %v6567_v44 }
 0x3f5   : > { %6561 = vst [vmem:[#allocation124_spill] sm:$0xff] %v4943_v13  ;;  %v1534_v52 = vpop.permute.xlu1 %1533  ;;  %v4950_v62 = vpop.permute.xlu0 %1721 }
 0x3f6   : > { %6563 = vst [vmem:[#allocation190_spill] sm:$0xff] %v4950_v62  ;;  %v1535_v5 = vsel %vm753_vm3, %v1532_v53, %v1534_v52  ;;  %v1542_v12 = vsel %vm753_vm3, %v1534_v52, %v4819_v59  ;;  %6568 = vst [vmem:[#allocation51_spill] sm:$0xff] %v4970_v46  ;;  %v6570_v53 = vld [vmem:[#allocation121_spill] sm:$0xff] }
 0x3f7   : > { %v4962_v13 = vmul.f32 %v1535_v5, %v3640_v48  ;;  %v4965_v49 = vmul.f32 %v1542_v12, %v3567_v35  ;;  %1643 = vrot.lane.b32.xlu1 %v4948_v32, %s3281_s27  ;;  %v1632_v59 = vsel %vm582_vm4, %v6571_v36, %v6570_v53  ;;  %v6575_v53 = vld [vmem:[#allocation46_spill] sm:$0xff] }
 0x3f9   : > { %6565 = vst [vmem:[#allocation127_spill] sm:$0xff] %v4962_v13  ;;  %6566 = vst [vmem:[#allocation191_spill] sm:$0xff] %v4965_v49  ;;  %v1772_v61 = vpop.permute.xlu1 %1771  ;;  %v4972_v41 = vpop.permute.xlu0 %1723  ;;  %v5000_v49 = vmul.f32 %v1632_v59, %v6575_v53 }
 0x3fa   : > { %6569 = vst [vmem:[#allocation192_spill] sm:$0xff] %v4972_v41  ;;  %v1787_v52 = vsel %vm647_vm2, %v1772_v61, %v4678_v15  ;;  %v1788_v5 = vsel %vm647_vm2, %v4653_v28, %v1772_v61  ;;  %v1734_v4 = vsel %vm753_vm3, %v4950_v62, %v4972_v41  ;;  %v6619_v62 = vld [vmem:[#allocation50_spill] sm:$0xff] }
 0x3fb   : > { %v4989_v12 = vmul.f32 %v1788_v5, %v3547_v21  ;;  %v4992_v44 = vmul.f32 %v1787_v52, %v3575_v38  ;;  %v4995_v36 = vmul.f32 %v1734_v4, %v3578_v39  ;;  %1657 = vrot.lane.b32.xlu1 %v4970_v46, %s3281_s27  ;;  %6576 = vst [vmem:[#allocation46_spill] sm:$0xff] %v5000_v49 }
 0x3fd   : > { %6572 = vst [vmem:[#allocation121_spill] sm:$0xff] %v4989_v12  ;;  %6573 = vst [vmem:[#allocation118_spill] sm:$0xff] %v4992_v44  ;;  %v1840_v28 = vpop.permute.xlu1 %1839  ;;  %v5002_v61 = vpop.permute.xlu0 %1925  ;;  %v6624_v12 = vld [vmem:[#allocation26_spill] sm:$0xff] }
 0x3fe   : > { %6574 = vst [vmem:[#allocation193_spill] sm:$0xff] %v4995_v36  ;;  %6577 = vst [vmem:[#allocation194_spill] sm:$0xff] %v5002_v61  ;;  %v1861_v5 = vsel %vm753_vm3, %v1840_v28, %v4688_v63  ;;  %v6621_v36 = vld [vmem:[#allocation52_spill] sm:$0xff] }
 0x3ff   : > { %v5008_v41 = vmul.f32 %v1861_v5, %v3550_v24  ;;  %1647 = vrot.lane.b32.xlu1 %v5000_v49, %s3281_s27 }
 0x401   : > { %6578 = vst [vmem:[#allocation195_spill] sm:$0xff] %v5008_v41  ;;  %v1844_v52 = vpop.permute.xlu1 %1843  ;;  %v5012_v4 = vpop.permute.xlu0 %1929 }
 0x402   : > { %6579 = vst [vmem:[#allocation196_spill] sm:$0xff] %v5012_v4  ;;  %v1859_v59 = vsel %vm753_vm3, %v1844_v52, %v4704_v58  ;;  %v1860_v53 = vsel %vm753_vm3, %v4688_v63, %v1844_v52 }
 0x403   : > { %v5021_v61 = vmul.f32 %v1860_v53, %v3553_v29  ;;  %v5024_v5 = vmul.f32 %v1859_v59, %v3556_v31  ;;  %1715 = vrot.lane.b32.xlu1 %v4948_v32, %s3282_s28  ;;  %v6585_v59 = vld [vmem:[#allocation130_spill] sm:$0xff] }
 0x404   : > { %v1629_v53 = vsel %vm582_vm4, %v4386_v14, %v6585_v59  ;;  %v1628_v14 = vsel %vm582_vm4, %v6585_v59, %v6564_v26 }
 0x405   : > { %6580 = vst [vmem:[#allocation197_spill] sm:$0xff] %v5021_v61  ;;  %6581 = vst [vmem:[#allocation198_spill] sm:$0xff] %v5024_v5  ;;  %v1776_v41 = vpop.permute.xlu1 %1775  ;;  %v5028_v44 = vpop.permute.xlu0 %1997 }
 0x406   : > { %6582 = vst [vmem:[#allocation199_spill] sm:$0xff] %v5028_v44  ;;  %v1786_v58 = vsel %vm647_vm2, %v4678_v15, %v1776_v41  ;;  %v6587_v15 = vld [vmem:[#allocation53_spill] sm:$0xff] }
 0x407   : > { %v5034_v4 = vmul.f32 %v1786_v58, %v3586_v43  ;;  %1719 = vrot.lane.b32.xlu1 %v5000_v49, %s3282_s28  ;;  %v5052_v58 = vmul.f32 %v1629_v53, %v6587_v15  ;;  %v6592_v15 = vld [vmem:[#allocation54_spill] sm:$0xff] }
 0x409   : > { %6583 = vst [vmem:[#allocation200_spill] sm:$0xff] %v5034_v4  ;;  %v1778_v63 = vpop.permute.xlu1 %1777  ;;  %v5038_v52 = vpop.permute.xlu0 %2001  ;;  %6588 = vst [vmem:[#allocation53_spill] sm:$0xff] %v5052_v58 }
 0x40a   : > { %6584 = vst [vmem:[#allocation201_spill] sm:$0xff] %v5038_v52  ;;  %v1785_v44 = vsel %vm647_vm2, %v1776_v41, %v1778_v63 }
 0x40b   : > { %v5047_v5 = vmul.f32 %v1785_v44, %v3607_v25  ;;  %1651 = vrot.lane.b32.xlu1 %v4523_v3, %s3281_s27 }
 0x40d   : > { %6586 = vst [vmem:[#allocation130_spill] sm:$0xff] %v5047_v5  ;;  %v1780_v4 = vpop.permute.xlu1 %1779  ;;  %v5054_v61 = vpop.permute.xlu0 %1933  ;;  %v5073_v5 = vmul.f32 %v1628_v14, %v6592_v15 }
 0x40e   : > { %6589 = vst [vmem:[#allocation202_spill] sm:$0xff] %v5054_v61  ;;  %v1783_v41 = vsel %vm647_vm2, %v1780_v4, %v1782_v11  ;;  %v1784_v44 = vsel %vm647_vm2, %v1778_v63, %v1780_v4 }
 0x40f   : > { %v5065_v52 = vmul.f32 %v1784_v44, %v3637_v47  ;;  %v5068_v53 = vmul.f32 %v1783_v41, %v3564_v27  ;;  %1653 = vrot.lane.b32.xlu1 %v5052_v58, %s3281_s27  ;;  %6593 = vst [vmem:[#allocation54_spill] sm:$0xff] %v5073_v5 }
 0x411   : > { %6590 = vst [vmem:[#allocation203_spill] sm:$0xff] %v5065_v52  ;;  %6591 = vst [vmem:[#allocation204_spill] sm:$0xff] %v5068_v53  ;;  %v1850_v3 = vpop.permute.xlu1 %1849  ;;  %v5075_v26 = vpop.permute.xlu0 %1935  ;;  %v6608_v52 = vld [vmem:[#allocation43_spill] sm:$0xff] }
 0x412   : > { %6594 = vst [vmem:[#allocation205_spill] sm:$0xff] %v5075_v26  ;;  %v1856_v11 = vsel %vm753_vm3, %v1850_v3, %v4730_v19  ;;  %v1857_v4 = vsel %vm753_vm3, %v4714_v33, %v1850_v3  ;;  %v1940_v63 = vsel %vm647_vm2, %v5054_v61, %v5075_v26  ;;  %v6614_v26 = vld [vmem:[#allocation44_spill] sm:$0xff] }
 0x413   : > { %v5088_v59 = vmul.f32 %v1857_v4, %v3589_v45  ;;  %v5091_v14 = vmul.f32 %v1856_v11, %v3610_v23  ;;  %v5094_v41 = vmul.f32 %v1940_v63, %v3637_v47  ;;  %1655 = vrot.lane.b32.xlu1 %v5073_v5, %s3281_s27  ;;  %v6600_v63 = vld [vmem:[#allocation125_spill] sm:$0xff] }
 0x414   : > { %v1913_v61 = vsel %vm962_vm5, %v6600_v63, %v4467_v50 }
 0x415   : > { %6595 = vst [vmem:[#allocation206_spill] sm:$0xff] %v5088_v59  ;;  %6596 = vst [vmem:[#allocation207_spill] sm:$0xff] %v5091_v14  ;;  %v1854_v44 = vpop.permute.xlu1 %1853  ;;  %v6617_v59 = vld [vmem:[#allocation65_spill] sm:$0xff] }
 0x416   : > { %6597 = vst [vmem:[#allocation208_spill] sm:$0xff] %v5094_v41  ;;  %v1855_v3 = vsel %vm753_vm3, %v4730_v19, %v1854_v44  ;;  %v1862_v33 = vsel %vm753_vm3, %v1854_v44, %v1840_v28 }
 0x417   : > { %v5104_v15 = vmul.f32 %v1855_v3, %v3640_v48  ;;  %v5107_v11 = vmul.f32 %v1862_v33, %v3567_v35  ;;  %1725 = vrot.lane.b32.xlu1 %v5052_v58, %s3282_s28  ;;  %v6601_v33 = vld [vmem:[#allocation56_spill] sm:$0xff]  ;;  %v6618_v58 = vld [vmem:[#allocation10_spill] sm:$0xff] }
 0x418   : > { %v5130_v41 = vmul.f32 %v1913_v61, %v6601_v33  ;;  %v6603_v33 = vld [vmem:[#allocation40_spill] sm:$0xff] }
 0x419   : > { %6598 = vst [vmem:[#allocation209_spill] sm:$0xff] %v5104_v15  ;;  %6599 = vst [vmem:[#allocation210_spill] sm:$0xff] %v5107_v11  ;;  %v632_v4 = vpop.permute.xlu1 %631  ;;  %v1914_v11 = vsel %vm962_vm5, %v4480_v37, %v6600_v63  ;;  %v6604_v15 = vld [vmem:[#allocation17_spill] sm:$0xff] }
 0x41a   : > { %v654_v19 = vsel %vm647_vm2, %v632_v4, %v4744_v60  ;;  %v655_v28 = vsel %vm647_vm2, %v4773_v16, %v632_v4  ;;  %6602 = vst [vmem:[#allocation125_spill] sm:$0xff] %v5130_v41  ;;  %v5152_v37 = vmul.f32 %v6604_v15, %v6603_v33  ;;  %v6606_v63 = vld [vmem:[#allocation41_spill] sm:$0xff]  ;;  %v5172_v33 = vmul.f32 %v6604_v15, %v6614_v26 }
 0x41b   : > { %v5122_v44 = vmul.f32 %v3541_v17, %v655_v28  ;;  %v5125_v3 = vmul.f32 %v3544_v18, %v654_v19  ;;  %1727 = vrot.lane.b32.xlu1 %v5073_v5, %s3282_s28  ;;  %v5156_v53 = vmul.f32 %v6604_v15, %v6606_v63  ;;  %v5175_v14 = vmul.f32 %v1914_v11, %v6529_v10  ;;  %v6623_v11 = vld [vmem:[#allocation68_spill] sm:$0xff] }
 0x41c   : > { %6605 = vst [vmem:[#allocation56_spill] sm:$0xff] %v5152_v37 }
 0x41d   : > { %v636_v50 = vpop.permute.xlu1 %635  ;;  %6607 = vst [vmem:[#allocation40_spill] sm:$0xff] %v5156_v53  ;;  %v6637_v53 = vld [vmem:[#allocation99_spill] sm:$0xff] }
 0x41e   : > { %v652_v4 = vsel %vm647_vm2, %v636_v50, %v4754_v57  ;;  %v653_v19 = vsel %vm647_vm2, %v4744_v60, %v636_v50  ;;  %v5160_v60 = vmul.f32 %v6604_v15, %v6608_v52  ;;  %v6610_v50 = vld [vmem:[#allocation45_spill] sm:$0xff]  ;;  %v5179_v52 = vmul.f32 %v6618_v58, %v6617_v59 }
 0x41f   : > { %v5143_v28 = vmul.f32 %v3547_v21, %v653_v19  ;;  %v5146_v61 = vmul.f32 %v3575_v38, %v652_v4  ;;  %1923 = vrot.lane.b32.xlu1 %v5130_v41, %s3281_s27  ;;  %v5164_v19 = vmul.f32 %v6604_v15, %v6610_v50  ;;  %v6612_v4 = vld [vmem:[#allocation49_spill] sm:$0xff]  ;;  %6615 = vst [vmem:[#allocation45_spill] sm:$0xff] %v5172_v33  ;;  %v6687_v21 = vld [vmem:[#allocation63_spill] sm:$0xff] }
 0x420   : > { %6609 = vst [vmem:[#allocation17_spill] sm:$0xff] %v5160_v60  ;;  %v5168_v5 = vmul.f32 %v6604_v15, %v6612_v4  ;;  %6616 = vst [vmem:[#allocation49_spill] sm:$0xff] %v5175_v14  ;;  %v5183_v50 = vmul.f32 %v6604_v15, %v6619_v62  ;;  %v5187_v4 = vmul.f32 %v6604_v15, %v6621_v36  ;;  %v6626_v15 = vld [vmem:[#allocation66_spill] sm:$0xff]  ;;  %v6639_v60 = vld [vmem:[#allocation72_spill] sm:$0xff] }
 0x421   : > { %6611 = vst [vmem:[#allocation41_spill] sm:$0xff] %v5164_v19  ;;  %v640_v63 = vpop.permute.xlu1 %639  ;;  %v5197_v59 = vmul.f32 %v6618_v58, %v6623_v11  ;;  %v5201_v62 = vmul.f32 %v6624_v12, %v3973_v20  ;;  %v6629_v20 = vld [vmem:[#allocation14_spill] sm:$0xff]  ;;  %v6635_v19 = vld [vmem:[#allocation69_spill] sm:$0xff] }
 0x422   : > { %6613 = vst [vmem:[#allocation43_spill] sm:$0xff] %v5168_v5  ;;  %6620 = vst [vmem:[#allocation44_spill] sm:$0xff] %v5183_v50  ;;  %v650_v26 = vsel %vm647_vm2, %v640_v63, %v4763_v30  ;;  %v651_v10 = vsel %vm647_vm2, %v4754_v57, %v640_v63  ;;  %v5213_v57 = vmul.f32 %v6618_v58, %v6626_v15  ;;  %v6627_v63 = vld [vmem:[#allocation67_spill] sm:$0xff] }
 0x423   : > { %6622 = vst [vmem:[#allocation65_spill] sm:$0xff] %v5187_v4  ;;  %6625 = vst [vmem:[#allocation10_spill] sm:$0xff] %v5201_v62  ;;  %v5204_v33 = vmul.f32 %v3586_v43, %v651_v10  ;;  %v5207_v36 = vmul.f32 %v3607_v25, %v650_v26  ;;  %1937 = vrot.lane.b32.xlu1 %v5175_v14, %s3281_s27  ;;  %v5217_v11 = vmul.f32 %v6618_v58, %v6627_v63  ;;  %v6628_v4 = vld [vmem:[#allocation77_spill] sm:$0xff]  ;;  %v6631_v10 = vld [vmem:[#allocation70_spill] sm:$0xff] }
 0x424   : > { %v5221_v62 = vmul.f32 %v6629_v20, %v6628_v4  ;;  %v5225_v13 = vmul.f32 %v6618_v58, %v6631_v10  ;;  %v6632_v26 = vld [vmem:[#allocation71_spill] sm:$0xff]  ;;  %v5237_v63 = vmul.f32 %v6629_v20, %v6635_v19  ;;  %v5241_v4 = vmul.f32 %v6629_v20, %v6637_v53  ;;  %v6641_v25 = vld [vmem:[#allocation73_spill] sm:$0xff]  ;;  %v6643_v43 = vld [vmem:[#allocation48_spill] sm:$0xff] }
 0x425   : > { %v5229_v50 = vmul.f32 %v6618_v58, %v6632_v26  ;;  %v6633_v5 = vld [vmem:[#allocation91_spill] sm:$0xff]  ;;  %v644_v37 = vpop.permute.xlu1 %643  ;;  %v5245_v10 = vmul.f32 %v6618_v58, %v6639_v60  ;;  %v5249_v26 = vmul.f32 %v6618_v58, %v6641_v25  ;;  %v6649_v58 = vld [vmem:[#allocation120_spill] sm:$0xff] }
 0x426   : > { %6630 = vst [vmem:[#allocation50_spill] sm:$0xff] %v5221_v62  ;;  %v5233_v15 = vmul.f32 %v6624_v12, %v6633_v5  ;;  %6636 = vst [vmem:[#allocation68_spill] sm:$0xff] %v5237_v63  ;;  %v5253_v5 = vmul.f32 %v6629_v20, %v6643_v43  ;;  %v648_v53 = vsel %vm647_vm2, %v644_v37, %v4773_v16  ;;  %v6647_v12 = vld [vmem:[#allocation105_spill] sm:$0xff]  ;;  %v6652_v16 = vld [vmem:[#allocation76_spill] sm:$0xff] }
 0x427   : > { %6638 = vst [vmem:[#allocation66_spill] sm:$0xff] %v5241_v4  ;;  %6640 = vst [vmem:[#allocation67_spill] sm:$0xff] %v5245_v10  ;;  %v649_v60 = vsel %vm647_vm2, %v4763_v30, %v644_v37  ;;  %v5267_v25 = vmul.f32 %v6629_v20, %v6647_v12  ;;  %v6650_v4 = vld [vmem:[#allocation20_spill] sm:$0xff]  ;;  %1729 = vrot.lane.b32.xlu1 %v4970_v46, %s3282_s28  ;;  %v5283_v30 = vmul.f32 %v6629_v20, %v6652_v16  ;;  %v6654_v37 = vld [vmem:[#allocation109_spill] sm:$0xff] }
 0x428   : > { %6634 = vst [vmem:[#allocation52_spill] sm:$0xff] %v5233_v15  ;;  %6642 = vst [vmem:[#allocation77_spill] sm:$0xff] %v5249_v26  ;;  %v6645_v15 = vld [vmem:[#allocation101_spill] sm:$0xff]  ;;  %v5271_v43 = vmul.f32 %v6650_v4, %v6649_v58  ;;  %v5287_v12 = vmul.f32 %v6629_v20, %v6654_v37  ;;  %v6661_v46 = vld [vmem:[#allocation58_spill] sm:$0xff] }
 0x429   : > { %6644 = vst [vmem:[#allocation14_spill] sm:$0xff] %v5253_v5  ;;  %v5257_v19 = vmul.f32 %v6629_v20, %v6645_v15  ;;  %6648 = vst [vmem:[#allocation71_spill] sm:$0xff] %v5267_v25  ;;  %v5274_v5 = vmul.f32 %v3637_v47, %v649_v60  ;;  %v5277_v15 = vmul.f32 %v3564_v27, %v648_v53  ;;  %v6656_v25 = vld [vmem:[#allocation116_spill] sm:$0xff]  ;;  %v6658_v60 = vld [vmem:[#allocation106_spill] sm:$0xff] }
 0x42a   : > { %6651 = vst [vmem:[#allocation91_spill] sm:$0xff] %v5271_v43  ;;  %6653 = vst [vmem:[#allocation69_spill] sm:$0xff] %v5283_v30  ;;  %v5291_v58 = vmul.f32 %v6650_v4, %v6656_v25  ;;  %v5295_v43 = vmul.f32 %v6650_v4, %v6658_v60  ;;  %v5299_v53 = vmul.f32 %v6650_v4, %v4331_v56  ;;  %v6663_v30 = vld [vmem:[#allocation75_spill] sm:$0xff]  ;;  %v6673_v27 = vld [vmem:[#allocation110_spill] sm:$0xff] }
 0x42b   : > { %6646 = vst [vmem:[#allocation70_spill] sm:$0xff] %v5257_v19  ;;  %6655 = vst [vmem:[#allocation99_spill] sm:$0xff] %v5287_v12  ;;  %v5303_v16 = vmul.f32 %v6650_v4, %v6661_v46  ;;  %v5307_v20 = vmul.f32 %v6650_v4, %v6663_v30  ;;  %v6665_v37 = vld [vmem:[#allocation55_spill] sm:$0xff]  ;;  %v6666_v12 = vld [vmem:[#allocation128_spill] sm:$0xff] }
 0x42c   : > { %6657 = vst [vmem:[#allocation72_spill] sm:$0xff] %v5291_v58  ;;  %6659 = vst [vmem:[#allocation73_spill] sm:$0xff] %v5295_v43  ;;  %v5311_v25 = vmul.f32 %v6666_v12, %v6665_v37  ;;  %v5313_v58 = vpop.permute.xlu1 %737  ;;  %v6668_v60 = vld [vmem:[#allocation7_spill] sm:$0xff]  ;;  %v6688_v10 = vld [vmem:[#allocation138_spill] sm:$0xff] }
 0x42d   : > { %6660 = vst [vmem:[#allocation48_spill] sm:$0xff] %v5299_v53  ;;  %6662 = vst [vmem:[#allocation101_spill] sm:$0xff] %v5303_v16  ;;  %v722_v43 = vmul.f32 %v6668_v60, %v6522_v1  ;;  %v723_v56 = vmul.f32 %v6668_v60, %v4347_v22  ;;  %v724_v46 = vmul.f32 %v6668_v60, %v4282_v55  ;;  %v6669_v1 = vld [vmem:[#allocation78_spill] sm:$0xff]  ;;  %v6670_v55 = vld [vmem:[#allocation107_spill] sm:$0xff] }
 0x42e   : > { %6664 = vst [vmem:[#allocation105_spill] sm:$0xff] %v5307_v20  ;;  %6667 = vst [vmem:[#allocation120_spill] sm:$0xff] %v5311_v25  ;;  %v725_v53 = vmul.f32 %v6668_v60, %v4369_v2  ;;  %v721_v30 = vmul.f32 %v6668_v60, %v4676_v40  ;;  %v726_v12 = vmul.f32 %v6668_v60, %v4312_v42  ;;  %1927 = vrot.lane.b32.xlu1 %v5311_v25, %s3281_s27  ;;  %v6671_v22 = vld [vmem:[#allocation9_spill] sm:$0xff]  ;;  %v6672_v16 = vld [vmem:[#allocation108_spill] sm:$0xff] }
 0x42f   : > { %v5329_v37 = vmul.f32 %v6668_v60, %v4382_v34  ;;  %v5333_v20 = vmul.f32 %v6668_v60, %v6669_v1  ;;  %v859_v2 = vmul.f32 %v6671_v22, %v6670_v55  ;;  %v860_v40 = vmul.f32 %v6671_v22, %v6672_v16  ;;  %v6674_v47 = vld [vmem:[#allocation131_spill] sm:$0xff]  ;;  %v6677_v1 = vld [vmem:[#allocation113_spill] sm:$0xff]  ;;  %v6678_v55 = vld [vmem:[#allocation62_spill] sm:$0xff] }
 0x430   : > { %v861_v42 = vmul.f32 %v6671_v22, %v6673_v27  ;;  %v6675_v63 = vld [vmem:[#allocation135_spill] sm:$0xff]  ;;  %v5353_v62 = vmul.f32 %v6671_v22, %v6677_v1  ;;  %v701_v32 = vmul.f32 %v6678_v55, %v5122_v44  ;;  %v702_v16 = vmul.f32 %v6678_v55, %v5125_v3  ;;  %v740_v27 = vpop.permute.xlu1 %739 }
 0x431   : > { %v1909_v34 = vsel %vm962_vm5, %v6675_v63, %v6674_v47  ;;  %v6676_v19 = vld [vmem:[#allocation111_spill] sm:$0xff]  ;;  %v5361_v9 = vmul.f32 %v6671_v22, %v6679_v51  ;;  %v6680_v47 = vld [vmem:[#allocation74_spill] sm:$0xff]  ;;  %v760_v1 = vsel %vm753_vm3, %v5313_v58, %v740_v27 }
 0x432   : > { %v5349_v60 = vmul.f32 %v6671_v22, %v6676_v19  ;;  %v858_v63 = vmul.f32 %v6671_v22, %v6680_v47  ;;  %v6681_v19 = vld [vmem:[#allocation166_spill] sm:$0xff]  ;;  %v6682_v44 = vld [vmem:[#allocation115_spill] sm:$0xff]  ;;  %v794_v51 = vmul.f32 %v3550_v24, %v760_v1  ;;  %1995 = vrot.lane.b32.xlu1 %v5130_v41, %s3282_s28  ;;  %v6686_v47 = vld [vmem:[#allocation136_spill] sm:$0xff]  ;;  %v705_v41 = vmul.f32 %v6678_v55, %v5204_v33 }
 0x433   : > { %v759_v49 = vsel %vm753_vm3, %v740_v27, %v6681_v19  ;;  %v5373_v38 = vmul.f32 %v6671_v22, %v6682_v44  ;;  %v6684_v3 = vld [vmem:[#allocation59_spill] sm:$0xff]  ;;  %v930_v26 = vmul.f32 %v6687_v21, %v6686_v47  ;;  %v931_v27 = vmul.f32 %v6687_v21, %v6688_v10  ;;  %v6689_v1 = vld [vmem:[#allocation8_spill] sm:$0xff] }
 0x434   : > { %v5376_v7 = vmul.f32 %v1909_v34, %v6684_v3  ;;  %v795_v8 = vmul.f32 %v3553_v29, %v759_v49  ;;  %v703_v22 = vmul.f32 %v6678_v55, %v5143_v28  ;;  %v704_v34 = vmul.f32 %v6678_v55, %v5146_v61  ;;  %v744_v29 = vpop.permute.xlu1 %743  ;;  %v6690_v33 = vld [vmem:[#allocation140_spill] sm:$0xff] }
 0x435   : > { %6683 = vst [vmem:[#allocation20_spill] sm:$0xff] %v5373_v38  ;;  %v729_v44 = vadd.f32 %v721_v30, %v701_v32  ;;  %v730_v3 = vadd.f32 %v722_v43, %v702_v16  ;;  %v806_v24 = vmul.f32 %v6689_v1, %v794_v51  ;;  %v706_v47 = vmul.f32 %v6678_v55, %v5207_v36  ;;  %v6691_v30 = vld [vmem:[#allocation143_spill] sm:$0xff] }
 0x436   : > { %6685 = vst [vmem:[#allocation76_spill] sm:$0xff] %v5376_v7  ;;  %v807_v49 = vmul.f32 %v6689_v1, %v795_v8  ;;  %v757_v28 = vsel %vm753_vm3, %v744_v29, %v4803_v6  ;;  %v758_v32 = vsel %vm753_vm3, %v6681_v19, %v744_v29  ;;  %1999 = vrot.lane.b32.xlu1 %v5311_v25, %s3282_s28 }
 0x437   : > { %v814_v61 = vadd.f32 %v806_v24, %v729_v44  ;;  %v796_v43 = vmul.f32 %v3556_v31, %v758_v32  ;;  %v797_v8 = vmul.f32 %v3578_v39, %v757_v28  ;;  %v932_v36 = vmul.f32 %v6687_v21, %v6690_v33  ;;  %v6692_v33 = vld [vmem:[#allocation144_spill] sm:$0xff]  ;;  %v6750_v39 = vld [vmem:[#allocation134_spill] sm:$0xff] }
 0x438   : > { %v815_v10 = vadd.f32 %v807_v49, %v730_v3  ;;  %v933_v16 = vmul.f32 %v6687_v21, %v6691_v30  ;;  %v731_v51 = vadd.f32 %v723_v56, %v703_v22  ;;  %v732_v14 = vadd.f32 %v724_v46, %v704_v34  ;;  %v748_v19 = vpop.permute.xlu1 %747 }
 0x439   : > { %v866_v17 = vadd.f32 %v858_v63, %v814_v61  ;;  %v808_v24 = vmul.f32 %v6689_v1, %v796_v43  ;;  %v809_v29 = vmul.f32 %v6689_v1, %v797_v8  ;;  %v733_v44 = vadd.f32 %v725_v53, %v705_v41 }
 0x43a   : > { %v867_v38 = vadd.f32 %v859_v2, %v815_v10  ;;  %v734_v3 = vadd.f32 %v726_v12, %v706_v47  ;;  %v755_v49 = vsel %vm753_vm3, %v748_v19, %v4821_v54  ;;  %v756_v28 = vsel %vm753_vm3, %v4803_v6, %v748_v19  ;;  %1931 = vrot.lane.b32.xlu1 %v5376_v7, %s3281_s27 }
 0x43b   : > { %v816_v32 = vadd.f32 %v808_v24, %v731_v51  ;;  %v817_v56 = vadd.f32 %v809_v29, %v732_v14  ;;  %v798_v46 = vmul.f32 %v3589_v45, %v756_v28  ;;  %v799_v2 = vmul.f32 %v3610_v23, %v755_v49  ;;  %v6693_v51 = vld [vmem:[#allocation172_spill] sm:$0xff] }
 0x43c   : > { %v707_v41 = vmul.f32 %v6678_v55, %v5274_v5  ;;  %v708_v53 = vmul.f32 %v6678_v55, %v5277_v15  ;;  %v887_v12 = vadd.f32 %v5179_v52, %v867_v38  ;;  %v886_v63 = vadd.f32 %v5213_v57, %v866_v17  ;;  %v752_v47 = vpop.permute.xlu1 %751  ;;  %v6695_v29 = vld [vmem:[#allocation80_spill] sm:$0xff] }
 0x43d   : > { %v868_v6 = vadd.f32 %v860_v40, %v816_v32  ;;  %v869_v22 = vadd.f32 %v861_v42, %v817_v56  ;;  %v810_v14 = vmul.f32 %v6689_v1, %v798_v46  ;;  %v811_v34 = vmul.f32 %v6689_v1, %v799_v2  ;;  %v6700_v32 = vld [vmem:[#allocation20_spill] sm:$0xff]  ;;  %v6701_v46 = vld [vmem:[#allocation11_spill] sm:$0xff] }
 0x43e   : > { %v754_v61 = vsel %vm753_vm3, %v4821_v54, %v752_v47  ;;  %v761_v5 = vsel %vm753_vm3, %v752_v47, %v5313_v58  ;;  %v939_v15 = vadd.f32 %v931_v27, %v887_v12  ;;  %v938_v55 = vadd.f32 %v930_v26, %v886_v63  ;;  %2003 = vrot.lane.b32.xlu1 %v5376_v7, %s3282_s28  ;;  %v6706_v47 = vld [vmem:[#allocation67_spill] sm:$0xff] }
 0x43f   : > { %v818_v38 = vadd.f32 %v810_v14, %v733_v44  ;;  %v819_v52 = vadd.f32 %v811_v34, %v734_v3  ;;  %v800_v17 = vmul.f32 %v3640_v48, %v754_v61  ;;  %v801_v57 = vmul.f32 %v3567_v35, %v761_v5  ;;  %v6697_v44 = vld [vmem:[#allocation61_spill] sm:$0xff] }
 0x440   : > { %v735_v40 = vadd.f32 %v5329_v37, %v707_v41  ;;  %v736_v42 = vadd.f32 %v5333_v20, %v708_v53  ;;  %v888_v54 = vadd.f32 %v5197_v59, %v868_v6  ;;  %v889_v10 = vadd.f32 %v5217_v11, %v869_v22  ;;  %v1012_v8 = vpop.permute.xlu1 %1011  ;;  %v6702_v53 = vld [vmem:[#allocation150_spill] sm:$0xff]  ;;  %v6704_v22 = vld [vmem:[#allocation31_spill] sm:$0xff]  ;;  %v6705_v34 = vld [vmem:[#allocation49_spill] sm:$0xff] }
 0x441   : > { %v870_v58 = vadd.f32 %v5349_v60, %v818_v38  ;;  %v871_v26 = vadd.f32 %v5353_v62, %v819_v52  ;;  %v812_v27 = vmul.f32 %v6689_v1, %v800_v17  ;;  %v813_v43 = vmul.f32 %v6689_v1, %v801_v57  ;;  %v6694_v62 = vld [vmem:[#allocation147_spill] sm:$0xff]  ;;  %v6707_v5 = vld [vmem:[#allocation77_spill] sm:$0xff]  ;;  %v6709_v17 = vld [vmem:[#allocation16_spill] sm:$0xff] }
 0x442   : > { %v934_v30 = vmul.f32 %v6687_v21, %v6692_v33  ;;  %v1033_v20 = vsel %vm647_vm2, %v1012_v8, %v6693_v51  ;;  %v940_v37 = vadd.f32 %v932_v36, %v888_v54  ;;  %v5453_v59 = vadd.f32 %v933_v16, %v889_v10  ;;  %2005 = vrot.lane.b32.xlu1 %v6694_v62, %s3282_s28  ;;  %v6699_v36 = vld [vmem:[#allocation145_spill] sm:$0xff]  ;;  %v6708_v52 = vld [vmem:[#allocation83_spill] sm:$0xff]  ;;  %v6712_v54 = vld [vmem:[#allocation86_spill] sm:$0xff] }
 0x443   : > { %v820_v11 = vadd.f32 %v812_v27, %v735_v40  ;;  %v821_v24 = vadd.f32 %v813_v43, %v736_v42  ;;  %v1036_v60 = vmul.f32 %v1033_v20, %v3544_v18  ;;  %v890_v1 = vadd.f32 %v5225_v13, %v870_v58  ;;  %v6711_v40 = vld [vmem:[#allocation18_spill] sm:$0xff]  ;;  %v6713_v10 = vld [vmem:[#allocation87_spill] sm:$0xff] }
 0x444   : > { %v5461_v19 = vmul.f32 %v6650_v4, %v6695_v29  ;;  %v5465_v3 = vmul.f32 %v6650_v4, %v6697_v44  ;;  %v935_v16 = vmul.f32 %v6687_v21, %v6699_v36  ;;  %v891_v49 = vadd.f32 %v5229_v50, %v871_v26  ;;  %v5473_v13 = vpop.permute.xlu1 %1025  ;;  %v6703_v4 = vld [vmem:[#allocation151_spill] sm:$0xff]  ;;  %v6714_v26 = vld [vmem:[#allocation88_spill] sm:$0xff]  ;;  %v6715_v20 = vld [vmem:[#allocation90_spill] sm:$0xff] }
 0x445   : > { %v872_v28 = vadd.f32 %v5361_v9, %v820_v11  ;;  %v873_v56 = vadd.f32 %v6700_v32, %v821_v24  ;;  %v1048_v2 = vmul.f32 %v6701_v46, %v1036_v60  ;;  %v5475_v41 = vadd.f32 %v934_v30, %v890_v1  ;;  %v6716_v24 = vld [vmem:[#allocation92_spill] sm:$0xff]  ;;  %v6717_v1 = vld [vmem:[#allocation93_spill] sm:$0xff]  ;;  %v6718_v36 = vld [vmem:[#allocation95_spill] sm:$0xff] }
 0x446   : > { %6696 = vst [vmem:[#allocation109_spill] sm:$0xff] %v5461_v19  ;;  %6698 = vst [vmem:[#allocation116_spill] sm:$0xff] %v5465_v3  ;;  %v936_v12 = vmul.f32 %v6687_v21, %v6702_v53  ;;  %v937_v63 = vmul.f32 %v6687_v21, %v6703_v4  ;;  %v1034_v50 = vsel %vm647_vm2, %v5473_v13, %v1012_v8  ;;  %2009 = vrot.lane.b32.xlu1 %v6705_v34, %s3282_s28  ;;  %v6710_v21 = vld [vmem:[#allocation84_spill] sm:$0xff]  ;;  %v6721_v53 = vld [vmem:[#allocation97_spill] sm:$0xff] }
 0x447   : > { %v5484_v6 = vadd.f32 %v935_v16, %v891_v49  ;;  %v1056_v9 = vadd.f32 %v1048_v2, %v939_v15  ;;  %v1035_v14 = vmul.f32 %v1034_v50, %v6704_v22  ;;  %v892_v61 = vadd.f32 %v6706_v47, %v872_v28  ;;  %v6719_v49 = vld [vmem:[#allocation96_spill] sm:$0xff]  ;;  %v6723_v4 = vld [vmem:[#allocation98_spill] sm:$0xff] }
 0x448   : > { %v893_v38 = vadd.f32 %v6707_v5, %v873_v56  ;;  %v5493_v57 = vmul.f32 %v6709_v17, %v6708_v52  ;;  %v5497_v42 = vmul.f32 %v6711_v40, %v6710_v21  ;;  %v5501_v15 = vmul.f32 %v6709_v17, %v6712_v54  ;;  %v1016_v8 = vpop.permute.xlu1 %1015  ;;  %v6720_v56 = vld [vmem:[#allocation32_spill] sm:$0xff] }
 0x449   : > { %v5505_v58 = vmul.f32 %v6709_v17, %v6713_v10  ;;  %v5509_v27 = vmul.f32 %v6709_v17, %v6714_v26  ;;  %v1047_v43 = vmul.f32 %v6701_v46, %v1035_v14  ;;  %v5512_v33 = vadd.f32 %v936_v12, %v892_v61  ;;  %v6726_v14 = vld [vmem:[#allocation102_spill] sm:$0xff]  ;;  %v6728_v61 = vld [vmem:[#allocation103_spill] sm:$0xff]  ;;  %v6730_v5 = vld [vmem:[#allocation104_spill] sm:$0xff] }
 0x44a   : > { %v5514_v30 = vadd.f32 %v937_v63, %v893_v38  ;;  %v5518_v11 = vmul.f32 %v6711_v40, %v6715_v20  ;;  %v5522_v60 = vmul.f32 %v6711_v40, %v6716_v24  ;;  %v5526_v29 = vmul.f32 %v6711_v40, %v6717_v1  ;;  %v6732_v52 = vld [vmem:[#allocation60_spill] sm:$0xff]  ;;  %v6734_v26 = vld [vmem:[#allocation126_spill] sm:$0xff]  ;;  %v6735_v20 = vld [vmem:[#allocation123_spill] sm:$0xff] }
 0x44b   : > { %v1032_v44 = vsel %vm647_vm2, %v6693_v51, %v1016_v8  ;;  %v5533_v16 = vmul.f32 %v6709_v17, %v6718_v36  ;;  %v5537_v28 = vmul.f32 %v6709_v17, %v6719_v49  ;;  %v1055_v32 = vadd.f32 %v1047_v43, %v938_v55  ;;  %v6725_v51 = vld [vmem:[#allocation100_spill] sm:$0xff]  ;;  %v6736_v1 = vld [vmem:[#allocation57_spill] sm:$0xff] }
 0x44c   : > { %v1037_v2 = vmul.f32 %v1032_v44, %v6720_v56  ;;  %v5542_v12 = vmul.f32 %v6709_v17, %v6721_v53  ;;  %v5546_v63 = vmul.f32 %v6709_v17, %v6723_v4  ;;  %v5550_v50 = vmul.f32 %v6711_v40, %v6725_v51  ;;  %v6733_v21 = vld [vmem:[#allocation12_spill] sm:$0xff]  ;;  %v1018_v10 = vpop.permute.xlu1 %1017  ;;  %v6737_v36 = vld [vmem:[#allocation129_spill] sm:$0xff] }
 0x44d   : > { %v5554_v47 = vmul.f32 %v6711_v40, %v6726_v14  ;;  %v5558_v55 = vmul.f32 %v6711_v40, %v6728_v61  ;;  %v5562_v38 = vmul.f32 %v6711_v40, %v6730_v5  ;;  %v1069_v17 = vmul.f32 %v6733_v21, %v6732_v52  ;;  %v6738_v53 = vld [vmem:[#allocation132_spill] sm:$0xff]  ;;  %v6739_v51 = vld [vmem:[#allocation37_spill] sm:$0xff]  ;;  %v6740_v61 = vld [vmem:[#allocation46_spill] sm:$0xff] }
 0x44e   : > { %6722 = vst [vmem:[#allocation106_spill] sm:$0xff] %v5542_v12  ;;  %6724 = vst [vmem:[#allocation58_spill] sm:$0xff] %v5546_v63  ;;  %v1049_v54 = vmul.f32 %v6701_v46, %v1037_v2  ;;  %v1067_v43 = vmul.f32 %v6733_v21, %v6734_v26  ;;  %v1068_v24 = vmul.f32 %v6733_v21, %v6735_v20  ;;  %v6741_v5 = vld [vmem:[#allocation23_spill] sm:$0xff]  ;;  %v6743_v26 = vld [vmem:[#allocation117_spill] sm:$0xff] }
 0x44f   : > { %6727 = vst [vmem:[#allocation75_spill] sm:$0xff] %v5554_v47  ;;  %6729 = vst [vmem:[#allocation55_spill] sm:$0xff] %v5558_v55  ;;  %v5573_v44 = vmul.f32 %v6733_v21, %v6736_v1  ;;  %v1031_v40 = vsel %vm647_vm2, %v1016_v8, %v1018_v10  ;;  %v1070_v49 = vmul.f32 %v6733_v21, %v6737_v36  ;;  %v6744_v1 = vld [vmem:[#allocation181_spill] sm:$0xff]  ;;  %v6745_v36 = vld [vmem:[#allocation119_spill] sm:$0xff] }
 0x450   : > { %6731 = vst [vmem:[#allocation128_spill] sm:$0xff] %v5562_v38  ;;  %v5581_v2 = vmul.f32 %v6733_v21, %v6738_v53  ;;  %v1057_v4 = vadd.f32 %v1049_v54, %v940_v37  ;;  %v1038_v14 = vmul.f32 %v1031_v40, %v6739_v51  ;;  %v5586_v52 = vmul.f32 %v6741_v5, %v6740_v61  ;;  %v6747_v53 = vld [vmem:[#allocation133_spill] sm:$0xff]  ;;  %v6748_v54 = vld [vmem:[#allocation180_spill] sm:$0xff] }
 0x451   : > { %v5590_v20 = vmul.f32 %v6733_v21, %v6743_v26  ;;  %v5594_v8 = vmul.f32 %v6733_v21, %v6744_v1  ;;  %v5598_v34 = vmul.f32 %v6741_v5, %v6745_v36  ;;  %v5602_v37 = vmul.f32 %v6741_v5, %v6747_v53  ;;  %v6749_v40 = vld [vmem:[#allocation13_spill] sm:$0xff]  ;;  %v1086_v26 = vpop.permute.xlu1 %1085  ;;  %v6753_v1 = vld [vmem:[#allocation64_spill] sm:$0xff]  ;;  %v6755_v53 = vld [vmem:[#allocation175_spill] sm:$0xff] }
 0x452   : > { %6742 = vst [vmem:[#allocation7_spill] sm:$0xff] %v5586_v52  ;;  %v1121_v61 = vmul.f32 %v6749_v40, %v6748_v54  ;;  %v1077_v62 = vadd.f32 %v1069_v17, %v1057_v4  ;;  %v1050_v7 = vmul.f32 %v6701_v46, %v1038_v14  ;;  %v5609_v25 = vmul.f32 %v6741_v5, %v6750_v39  ;;  %v6752_v21 = vld [vmem:[#allocation153_spill] sm:$0xff]  ;;  %v6758_v39 = vld [vmem:[#allocation146_spill] sm:$0xff] }
 0x453   : > { %6746 = vst [vmem:[#allocation78_spill] sm:$0xff] %v5598_v34  ;;  %v1205_v52 = vmul.f32 %v6753_v1, %v6752_v21  ;;  %v6754_v36 = vld [vmem:[#allocation177_spill] sm:$0xff]  ;;  %v1105_v31 = vsel %vm753_vm3, %v6755_v53, %v1086_v26  ;;  %v6757_v34 = vld [vmem:[#allocation34_spill] sm:$0xff]  ;;  %v1204_v5 = vmul.f32 %v6753_v1, %v6758_v39  ;;  %v1075_v38 = vadd.f32 %v1067_v43, %v1055_v32  ;;  %v6763_v39 = vld [vmem:[#allocation15_spill] sm:$0xff] }
 0x454   : > { %6751 = vst [vmem:[#allocation107_spill] sm:$0xff] %v5609_v25  ;;  %v1104_v3 = vsel %vm753_vm3, %v1086_v26, %v6754_v36  ;;  %v1129_v54 = vadd.f32 %v1121_v61, %v1077_v62  ;;  %v1058_v17 = vadd.f32 %v1050_v7, %v5453_v59  ;;  %v6756_v4 = vld [vmem:[#allocation33_spill] sm:$0xff]  ;;  %v6759_v25 = vld [vmem:[#allocation184_spill] sm:$0xff]  ;;  %v1076_v55 = vadd.f32 %v1068_v24, %v1056_v9  ;;  %v6761_v59 = vld [vmem:[#allocation154_spill] sm:$0xff] }
 0x455   : > { %v1107_v14 = vmul.f32 %v1105_v31, %v6756_v4  ;;  %v1108_v19 = vmul.f32 %v1104_v3, %v6757_v34  ;;  %v1122_v21 = vmul.f32 %v6749_v40, %v6759_v25  ;;  %v1020_v61 = vpop.permute.xlu1 %1019  ;;  %v6760_v7 = vld [vmem:[#allocation148_spill] sm:$0xff]  ;;  %v1206_v3 = vmul.f32 %v6753_v1, %v6761_v59  ;;  %v6762_v26 = vld [vmem:[#allocation157_spill] sm:$0xff]  ;;  %v6764_v9 = vld [vmem:[#allocation50_spill] sm:$0xff] }
 0x456   : > { %v1213_v36 = vadd.f32 %v1205_v52, %v1129_v54  ;;  %v1078_v47 = vadd.f32 %v1070_v49, %v1058_v17  ;;  %v1203_v31 = vmul.f32 %v6753_v1, %v6760_v7  ;;  %v1277_v34 = vmul.f32 %v6763_v39, %v6762_v26  ;;  %v6765_v52 = vld [vmem:[#allocation141_spill] sm:$0xff]  ;;  %v6766_v54 = vld [vmem:[#allocation152_spill] sm:$0xff]  ;;  %v6768_v7 = vld [vmem:[#allocation155_spill] sm:$0xff] }
 0x457   : > { %v1119_v51 = vmul.f32 %v6749_v40, %v1107_v14  ;;  %v1120_v62 = vmul.f32 %v6749_v40, %v1108_v19  ;;  %v1030_v25 = vsel %vm647_vm2, %v1018_v10, %v1020_v61  ;;  %v1278_v19 = vmul.f32 %v6763_v39, %v6765_v52  ;;  %v6767_v17 = vld [vmem:[#allocation21_spill] sm:$0xff]  ;;  %v6769_v4 = vld [vmem:[#allocation39_spill] sm:$0xff] }
 0x458   : > { %v1233_v32 = vadd.f32 %v6764_v9, %v1213_v36  ;;  %v1130_v43 = vadd.f32 %v1122_v21, %v1078_v47  ;;  %v5641_v14 = vmul.f32 %v6767_v17, %v6766_v54  ;;  %v1275_v59 = vmul.f32 %v6763_v39, %v6768_v7  ;;  %v6770_v47 = vld [vmem:[#allocation156_spill] sm:$0xff]  ;;  %v6772_v9 = vld [vmem:[#allocation70_spill] sm:$0xff] }
 0x459   : > { %v1127_v24 = vadd.f32 %v1119_v51, %v1075_v38  ;;  %v1128_v49 = vadd.f32 %v1120_v62, %v1076_v55  ;;  %v1039_v26 = vmul.f32 %v1030_v25, %v6769_v4  ;;  %v1022_v36 = vpop.permute.xlu1 %1021  ;;  %v1276_v55 = vmul.f32 %v6763_v39, %v6770_v47  ;;  %v6771_v38 = vld [vmem:[#allocation158_spill] sm:$0xff]  ;;  %v6773_v54 = vld [vmem:[#allocation68_spill] sm:$0xff] }
 0x45a   : > { %v1285_v56 = vadd.f32 %v1277_v34, %v1233_v32  ;;  %v1214_v63 = vadd.f32 %v1206_v3, %v1130_v43  ;;  %v1207_v51 = vmul.f32 %v6753_v1, %v6771_v38  ;;  %v1029_v62 = vsel %vm647_vm2, %v1020_v61, %v1022_v36  ;;  %v6774_v34 = vld [vmem:[#allocation66_spill] sm:$0xff]  ;;  %v6776_v32 = vld [vmem:[#allocation164_spill] sm:$0xff]  ;;  %v6777_v43 = vld [vmem:[#allocation19_spill] sm:$0xff] }
 0x45b   : > { %v1211_v10 = vadd.f32 %v1203_v31, %v1127_v24  ;;  %v1212_v12 = vadd.f32 %v1204_v5, %v1128_v49  ;;  %v1051_v21 = vmul.f32 %v6701_v46, %v1039_v26  ;;  %v6775_v31 = vld [vmem:[#allocation42_spill] sm:$0xff]  ;;  %v1484_v24 = vmul.f32 %v6777_v43, %v6776_v32  ;;  %v6778_v49 = vld [vmem:[#allocation165_spill] sm:$0xff] }
 0x45c   : > { %v1234_v52 = vadd.f32 %v6772_v9, %v1214_v63  ;;  %v1040_v5 = vmul.f32 %v1029_v62, %v6775_v31  ;;  %v1483_v7 = vmul.f32 %v6777_v43, %v6778_v49  ;;  %v1337_v26 = vadd.f32 %v5505_v58, %v1285_v56  ;;  %v6779_v9 = vld [vmem:[#allocation169_spill] sm:$0xff] }
 0x45d   : > { %v1231_v25 = vadd.f32 %v6773_v54, %v1211_v10  ;;  %v1232_v3 = vadd.f32 %v6774_v34, %v1212_v12  ;;  %v1059_v47 = vadd.f32 %v1051_v21, %v5475_v41  ;;  %v1024_v10 = vpop.permute.xlu1 %1023  ;;  %v1485_v12 = vmul.f32 %v6777_v43, %v6779_v9  ;;  %v6780_v34 = vld [vmem:[#allocation17_spill] sm:$0xff]  ;;  %v6782_v21 = vld [vmem:[#allocation170_spill] sm:$0xff] }
 0x45e   : > { %v1286_v38 = vadd.f32 %v1278_v19, %v1234_v52  ;;  %v1052_v63 = vmul.f32 %v6701_v46, %v1040_v5  ;;  %v1027_v62 = vsel %vm647_vm2, %v1024_v10, %v5473_v13  ;;  %v1028_v54 = vsel %vm647_vm2, %v1022_v36, %v1024_v10  ;;  %v6784_v36 = vld [vmem:[#allocation171_spill] sm:$0xff]  ;;  %v6788_v9 = vld [vmem:[#allocation41_spill] sm:$0xff] }
 0x45f   : > { %v1283_v61 = vadd.f32 %v1275_v59, %v1231_v25  ;;  %v1284_v4 = vadd.f32 %v1276_v55, %v1232_v3  ;;  %v1357_v41 = vadd.f32 %v6780_v34, %v1337_v26  ;;  %v6781_v59 = vld [vmem:[#allocation47_spill] sm:$0xff]  ;;  %v1486_v52 = vmul.f32 %v6777_v43, %v6782_v21  ;;  %v6783_v25 = vld [vmem:[#allocation36_spill] sm:$0xff] }
 0x460   : > { %v1060_v19 = vadd.f32 %v1052_v63, %v5484_v6  ;;  %v1041_v55 = vmul.f32 %v1028_v54, %v6781_v59  ;;  %v1042_v3 = vmul.f32 %v1027_v62, %v6783_v25  ;;  %v1338_v13 = vadd.f32 %v5509_v27, %v1286_v38  ;;  %v6786_v6 = vld [vmem:[#allocation40_spill] sm:$0xff]  ;;  %v6787_v63 = vld [vmem:[#allocation182_spill] sm:$0xff] }
 0x461   : > { %v1335_v58 = vadd.f32 %v5501_v15, %v1283_v61  ;;  %v1336_v56 = vadd.f32 %v5493_v57, %v1284_v4  ;;  %v1409_v5 = vadd.f32 %v5526_v29, %v1357_v41  ;;  %v1555_v32 = vmul.f32 %v6767_v17, %v6784_v36  ;;  %v1094_v49 = vpop.permute.xlu1 %1093  ;;  %v6785_v57 = vld [vmem:[#allocation56_spill] sm:$0xff]  ;;  %v6789_v41 = vld [vmem:[#allocation174_spill] sm:$0xff]  ;;  %v6791_v36 = vld [vmem:[#allocation173_spill] sm:$0xff] }
 0x462   : > { %v1053_v15 = vmul.f32 %v6701_v46, %v1041_v55  ;;  %v1054_v61 = vmul.f32 %v6701_v46, %v1042_v3  ;;  %v1101_v10 = vsel %vm753_vm3, %v6787_v63, %v1094_v49  ;;  %v1358_v27 = vadd.f32 %v6788_v9, %v1338_v13  ;;  %v6790_v55 = vld [vmem:[#allocation91_spill] sm:$0xff] }
 0x463   : > { %v1356_v4 = vadd.f32 %v6785_v57, %v1336_v56  ;;  %v1355_v26 = vadd.f32 %v6786_v6, %v1335_v58  ;;  %v1493_v38 = vadd.f32 %v1485_v12, %v1409_v5  ;;  %v1111_v62 = vmul.f32 %v1101_v10, %v3589_v45  ;;  %v6796_v10 = vld [vmem:[#allocation101_spill] sm:$0xff] }
 0x464   : > { %v1061_v29 = vadd.f32 %v1053_v15, %v5512_v33  ;;  %v1557_v58 = vmul.f32 %v6767_v17, %v6789_v41  ;;  %v1062_v46 = vadd.f32 %v1054_v61, %v5514_v30  ;;  %v1410_v56 = vadd.f32 %v5497_v42, %v1358_v27 }
 0x465   : > { %v1408_v54 = vadd.f32 %v5522_v60, %v1356_v4  ;;  %v1407_v34 = vadd.f32 %v5518_v11, %v1355_v26  ;;  %v1513_v21 = vadd.f32 %v6790_v55, %v1493_v38  ;;  %v1079_v3 = vadd.f32 %v5581_v2, %v1059_v47  ;;  %v1096_v33 = vpop.permute.xlu1 %1095  ;;  %v6792_v4 = vld [vmem:[#allocation73_spill] sm:$0xff]  ;;  %v6793_v2 = vld [vmem:[#allocation72_spill] sm:$0xff]  ;;  %v6794_v26 = vld [vmem:[#allocation159_spill] sm:$0xff] }
 0x466   : > { %v1123_v12 = vmul.f32 %v6749_v40, %v1111_v62  ;;  %v1556_v60 = vmul.f32 %v6767_v17, %v6791_v36  ;;  %v1100_v11 = vsel %vm753_vm3, %v1094_v49, %v1096_v33  ;;  %v1494_v15 = vadd.f32 %v1486_v52, %v1410_v56 }
 0x467   : > { %v1492_v13 = vadd.f32 %v1484_v24, %v1408_v54  ;;  %v1491_v5 = vadd.f32 %v1483_v7, %v1407_v34  ;;  %v5706_v57 = vadd.f32 %v1557_v58, %v1513_v21  ;;  %v1112_v42 = vmul.f32 %v1100_v11, %v3610_v23  ;;  %v6795_v7 = vld [vmem:[#allocation161_spill] sm:$0xff]  ;;  %v6797_v54 = vld [vmem:[#allocation163_spill] sm:$0xff]  ;;  %v6799_v21 = vld [vmem:[#allocation162_spill] sm:$0xff] }
 0x468   : > { %v1131_v30 = vadd.f32 %v1123_v12, %v1079_v3  ;;  %v1208_v24 = vmul.f32 %v6753_v1, %v6794_v26  ;;  %v1209_v61 = vmul.f32 %v6753_v1, %v6795_v7  ;;  %v1080_v63 = vadd.f32 %v5590_v20, %v1060_v19  ;;  %v6798_v19 = vld [vmem:[#allocation71_spill] sm:$0xff]  ;;  %v6800_v12 = vld [vmem:[#allocation112_spill] sm:$0xff]  ;;  %v6806_v26 = vld [vmem:[#allocation122_spill] sm:$0xff] }
 0x469   : > { %v1512_v6 = vadd.f32 %v6792_v4, %v1492_v13  ;;  %v1511_v47 = vadd.f32 %v6793_v2, %v1491_v5  ;;  %v1514_v49 = vadd.f32 %v6796_v10, %v1494_v15  ;;  %v1124_v9 = vmul.f32 %v6749_v40, %v1112_v42  ;;  %v1098_v27 = vpop.permute.xlu1 %1097  ;;  %v6801_v15 = vld [vmem:[#allocation167_spill] sm:$0xff]  ;;  %v6802_v42 = vld [vmem:[#allocation168_spill] sm:$0xff]  ;;  %v6804_v2 = vld [vmem:[#allocation185_spill] sm:$0xff] }
 0x46a   : > { %v1215_v52 = vadd.f32 %v1207_v51, %v1131_v30  ;;  %v1279_v34 = vmul.f32 %v6763_v39, %v6797_v54  ;;  %v1099_v41 = vsel %vm753_vm3, %v1096_v33, %v1098_v27  ;;  %v1106_v58 = vsel %vm753_vm3, %v1098_v27, %v6755_v53  ;;  %v6803_v4 = vld [vmem:[#allocation176_spill] sm:$0xff]  ;;  %v6807_v7 = vld [vmem:[#allocation178_spill] sm:$0xff] }
 0x46b   : > { %v1564_v38 = vadd.f32 %v1556_v60, %v1512_v6  ;;  %v1563_v62 = vadd.f32 %v1555_v32, %v1511_v47  ;;  %v5726_v20 = vadd.f32 %v5641_v14, %v1514_v49  ;;  %v1132_v56 = vadd.f32 %v1124_v9, %v1080_v63 }
 0x46c   : > { %v1235_v51 = vadd.f32 %v6798_v19, %v1215_v52  ;;  %v1113_v55 = vmul.f32 %v1099_v41, %v3640_v48  ;;  %v1114_v32 = vmul.f32 %v1106_v58, %v3567_v35  ;;  %v1210_v3 = vmul.f32 %v6753_v1, %v6799_v21  ;;  %v6810_v41 = vld [vmem:[#allocation183_spill] sm:$0xff]  ;;  %v6811_v19 = vld [vmem:[#allocation186_spill] sm:$0xff] }
 0x46d   : > { %v1280_v33 = vmul.f32 %v6763_v39, %v6800_v12  ;;  %v1081_v13 = vadd.f32 %v5594_v8, %v1061_v29  ;;  %v1082_v53 = vadd.f32 %v5573_v44, %v1062_v46  ;;  %v1216_v14 = vadd.f32 %v1208_v24, %v1132_v56  ;;  %v1644_v11 = vpop.permute.xlu1 %1643  ;;  %v6805_v29 = vld [vmem:[#allocation69_spill] sm:$0xff]  ;;  %v6812_v56 = vld [vmem:[#allocation22_spill] sm:$0xff] }
 0x46e   : > { %v1287_v5 = vadd.f32 %v1279_v34, %v1235_v51  ;;  %v1125_v36 = vmul.f32 %v6749_v40, %v1113_v55  ;;  %v1126_v60 = vmul.f32 %v6749_v40, %v1114_v32  ;;  %v1281_v30 = vmul.f32 %v6763_v39, %v6801_v15 }
 0x46f   : > { %v1282_v1 = vmul.f32 %v6763_v39, %v6802_v42  ;;  %v1487_v6 = vmul.f32 %v6777_v43, %v6803_v4  ;;  %v1665_v44 = vsel %vm647_vm2, %v1644_v11, %v6804_v2  ;;  %v1236_v46 = vadd.f32 %v6805_v29, %v1216_v14  ;;  %v6808_v39 = vld [vmem:[#allocation179_spill] sm:$0xff]  ;;  %v6817_v14 = vld [vmem:[#allocation124_spill] sm:$0xff] }
 0x470   : > { %v1339_v8 = vadd.f32 %v5533_v16, %v1287_v5  ;;  %v1133_v47 = vadd.f32 %v1125_v36, %v1081_v13  ;;  %v1134_v40 = vadd.f32 %v1126_v60, %v1082_v53  ;;  %v1488_v24 = vmul.f32 %v6777_v43, %v6806_v26  ;;  %v6809_v16 = vld [vmem:[#allocation43_spill] sm:$0xff]  ;;  %v6815_v13 = vld [vmem:[#allocation188_spill] sm:$0xff]  ;;  %v6816_v53 = vld [vmem:[#allocation25_spill] sm:$0xff] }
 0x471   : > { %v1489_v63 = vmul.f32 %v6777_v43, %v6807_v7  ;;  %v1490_v10 = vmul.f32 %v6777_v43, %v6808_v39  ;;  %v1668_v49 = vmul.f32 %v1665_v44, %v3544_v18  ;;  %v1288_v52 = vadd.f32 %v1280_v33, %v1236_v46  ;;  %v5757_v54 = vpop.permute.xlu1 %1657  ;;  %v6818_v44 = vld [vmem:[#allocation44_spill] sm:$0xff]  ;;  %v6819_v29 = vld [vmem:[#allocation187_spill] sm:$0xff]  ;;  %v6820_v26 = vld [vmem:[#allocation106_spill] sm:$0xff] }
 0x472   : > { %v1217_v9 = vadd.f32 %v1209_v61, %v1133_v47  ;;  %v1218_v27 = vadd.f32 %v1210_v3, %v1134_v40  ;;  %v1359_v34 = vadd.f32 %v6809_v16, %v1339_v8  ;;  %v1559_v58 = vmul.f32 %v6767_v17, %v6810_v41  ;;  %v6813_v61 = vld [vmem:[#allocation99_spill] sm:$0xff]  ;;  %v6814_v3 = vld [vmem:[#allocation14_spill] sm:$0xff]  ;;  %v6822_v39 = vld [vmem:[#allocation32_spill] sm:$0xff] }
 0x473   : > { %v1560_v51 = vmul.f32 %v6767_v17, %v6811_v19  ;;  %v1680_v55 = vmul.f32 %v6812_v56, %v1668_v49  ;;  %v1666_v43 = vsel %vm647_vm2, %v5757_v54, %v1644_v11  ;;  %v1340_v32 = vadd.f32 %v5537_v28, %v1288_v52  ;;  %v6823_v52 = vld [vmem:[#allocation127_spill] sm:$0xff] }
 0x474   : > { %v1237_v21 = vadd.f32 %v6813_v61, %v1217_v9  ;;  %v1238_v12 = vadd.f32 %v6814_v3, %v1218_v27  ;;  %v1667_v33 = vmul.f32 %v1666_v43, %v6704_v22  ;;  %v5774_v5 = vmul.f32 %v6816_v53, %v6815_v13  ;;  %v6824_v27 = vld [vmem:[#allocation37_spill] sm:$0xff]  ;;  %v6826_v19 = vld [vmem:[#allocation75_spill] sm:$0xff] }
 0x475   : > { %v1803_v36 = vmul.f32 %v6816_v53, %v6817_v14  ;;  %v1688_v60 = vadd.f32 %v1680_v55, %v1564_v38  ;;  %v1411_v15 = vadd.f32 %v5550_v50, %v1359_v34  ;;  %v1648_v4 = vpop.permute.xlu1 %1647  ;;  %v1360_v8 = vadd.f32 %v6818_v44, %v1340_v32  ;;  %v6825_v34 = vld [vmem:[#allocation105_spill] sm:$0xff] }
 0x476   : > { %v1289_v42 = vadd.f32 %v1281_v30, %v1237_v21  ;;  %v1290_v11 = vadd.f32 %v1282_v1, %v1238_v12  ;;  %v1679_v28 = vmul.f32 %v6812_v56, %v1667_v33  ;;  %v1663_v46 = vsel %vm647_vm2, %v1648_v4, %v6819_v29  ;;  %v6821_v30 = vld [vmem:[#allocation58_spill] sm:$0xff]  ;;  %v6828_v32 = vld [vmem:[#allocation65_spill] sm:$0xff] }
 0x477   : > { %v1664_v47 = vsel %vm647_vm2, %v6804_v2, %v1648_v4  ;;  %v1708_v40 = vadd.f32 %v5602_v37, %v1688_v60  ;;  %v1495_v38 = vadd.f32 %v1487_v6, %v1411_v15  ;;  %v1561_v9 = vmul.f32 %v6767_v17, %v6823_v52  ;;  %v6827_v2 = vld [vmem:[#allocation191_spill] sm:$0xff]  ;;  %v6829_v61 = vld [vmem:[#allocation45_spill] sm:$0xff] }
 0x478   : > { %v1341_v50 = vadd.f32 %v6820_v26, %v1289_v42  ;;  %v1342_v1 = vadd.f32 %v6821_v30, %v1290_v11  ;;  %v1687_v7 = vadd.f32 %v1679_v28, %v1563_v62  ;;  %v1669_v49 = vmul.f32 %v1664_v47, %v6822_v39  ;;  %v6830_v12 = vld [vmem:[#allocation189_spill] sm:$0xff]  ;;  %v6832_v42 = vld [vmem:[#allocation55_spill] sm:$0xff]  ;;  %v6833_v28 = vld [vmem:[#allocation128_spill] sm:$0xff] }
 0x479   : > { %v1670_v16 = vmul.f32 %v1663_v46, %v6824_v27  ;;  %v1515_v41 = vadd.f32 %v6825_v34, %v1495_v38  ;;  %v1412_v55 = vadd.f32 %v6826_v19, %v1360_v8  ;;  %v1562_v37 = vmul.f32 %v6767_v17, %v6827_v2  ;;  %v5799_v43 = vpop.permute.xlu1 %1715  ;;  %v6831_v17 = vld [vmem:[#allocation33_spill] sm:$0xff]  ;;  %v6836_v47 = vld [vmem:[#allocation24_spill] sm:$0xff] }
 0x47a   : > { %v1681_v6 = vmul.f32 %v6812_v56, %v1669_v49  ;;  %v1361_v62 = vadd.f32 %v6828_v32, %v1341_v50  ;;  %v1362_v21 = vadd.f32 %v6829_v61, %v1342_v1  ;;  %v1737_v33 = vsel %vm753_vm3, %v5799_v43, %v6830_v12  ;;  %v6834_v44 = vld [vmem:[#allocation121_spill] sm:$0xff]  ;;  %v6843_v61 = vld [vmem:[#allocation116_spill] sm:$0xff] }
 0x47b   : > { %v1682_v3 = vmul.f32 %v6812_v56, %v1670_v16  ;;  %v1567_v13 = vadd.f32 %v1559_v58, %v1515_v41  ;;  %v1496_v14 = vadd.f32 %v1488_v24, %v1412_v55  ;;  %v1739_v15 = vmul.f32 %v1737_v33, %v6831_v17  ;;  %v6835_v46 = vld [vmem:[#allocation193_spill] sm:$0xff]  ;;  %v6838_v58 = vld [vmem:[#allocation78_spill] sm:$0xff]  ;;  %v6839_v16 = vld [vmem:[#allocation107_spill] sm:$0xff] }
 0x47c   : > { %v1689_v60 = vadd.f32 %v1681_v6, %v5706_v57  ;;  %v1413_v11 = vadd.f32 %v6832_v42, %v1361_v62  ;;  %v1414_v4 = vadd.f32 %v6833_v28, %v1362_v21  ;;  %v1805_v8 = vmul.f32 %v6816_v53, %v6834_v44  ;;  %v6837_v50 = vld [vmem:[#allocation109_spill] sm:$0xff]  ;;  %v6840_v41 = vld [vmem:[#allocation190_spill] sm:$0xff]  ;;  %v6845_v33 = vld [vmem:[#allocation7_spill] sm:$0xff] }
 0x47d   : > { %v1754_v38 = vmul.f32 %v6836_v47, %v6835_v46  ;;  %v1690_v26 = vadd.f32 %v1682_v3, %v5726_v20  ;;  %v1516_v30 = vadd.f32 %v6837_v50, %v1496_v14  ;;  %v1707_v24 = vadd.f32 %v6838_v58, %v1687_v7  ;;  %v1720_v1 = vpop.permute.xlu1 %1719  ;;  %v6841_v6 = vld [vmem:[#allocation34_spill] sm:$0xff]  ;;  %v6842_v7 = vld [vmem:[#allocation35_spill] sm:$0xff] }
 0x47e   : > { %v1751_v57 = vmul.f32 %v6836_v47, %v1739_v15  ;;  %v1497_v49 = vadd.f32 %v1489_v63, %v1413_v11  ;;  %v1498_v52 = vadd.f32 %v1490_v10, %v1414_v4  ;;  %v1735_v19 = vsel %vm753_vm3, %v1720_v1, %v6840_v41  ;;  %v6844_v63 = vld [vmem:[#allocation118_spill] sm:$0xff]  ;;  %v6846_v15 = vld [vmem:[#allocation48_spill] sm:$0xff]  ;;  %v6847_v44 = vld [vmem:[#allocation195_spill] sm:$0xff] }
 0x47f   : > { %v1710_v34 = vadd.f32 %v6839_v16, %v1690_v26  ;;  %v1736_v55 = vsel %vm753_vm3, %v6830_v12, %v1720_v1  ;;  %v1568_v20 = vadd.f32 %v1560_v51, %v1516_v30  ;;  %v1741_v62 = vmul.f32 %v1735_v19, %v6842_v7  ;;  %v6848_v46 = vld [vmem:[#allocation27_spill] sm:$0xff]  ;;  %v6854_v41 = vld [vmem:[#allocation82_spill] sm:$0xff] }
 0x480   : > { %v1759_v2 = vadd.f32 %v1751_v57, %v1707_v24  ;;  %v1740_v32 = vmul.f32 %v1736_v55, %v6841_v6  ;;  %v1517_v21 = vadd.f32 %v6843_v61, %v1497_v49  ;;  %v1806_v10 = vmul.f32 %v6816_v53, %v6844_v63  ;;  %v6849_v24 = vld [vmem:[#allocation39_spill] sm:$0xff]  ;;  %v6851_v49 = vld [vmem:[#allocation160_spill] sm:$0xff]  ;;  %v6856_v61 = vld [vmem:[#allocation197_spill] sm:$0xff] }
 0x481   : > { %v1762_v3 = vadd.f32 %v1754_v38, %v1710_v34  ;;  %v1709_v14 = vadd.f32 %v6845_v33, %v1689_v60  ;;  %v1518_v42 = vadd.f32 %v6846_v15, %v1498_v52  ;;  %v1753_v51 = vmul.f32 %v6836_v47, %v1741_v62  ;;  %v1652_v12 = vpop.permute.xlu1 %1651  ;;  %v6852_v16 = vld [vmem:[#allocation79_spill] sm:$0xff]  ;;  %v6855_v55 = vld [vmem:[#allocation52_spill] sm:$0xff]  ;;  %v6857_v63 = vld [vmem:[#allocation198_spill] sm:$0xff] }
 0x482   : > { %v1811_v11 = vadd.f32 %v1803_v36, %v1759_v2  ;;  %v1752_v28 = vmul.f32 %v6836_v47, %v1740_v32  ;;  %v1569_v4 = vadd.f32 %v1561_v9, %v1517_v21  ;;  %v1875_v26 = vmul.f32 %v6848_v46, %v6847_v44  ;;  %v6850_v36 = vld [vmem:[#allocation10_spill] sm:$0xff] }
 0x483   : > { %v1662_v50 = vsel %vm647_vm2, %v6819_v29, %v1652_v12  ;;  %v1570_v30 = vadd.f32 %v1562_v37, %v1518_v42  ;;  %v1814_v38 = vadd.f32 %v1806_v10, %v1762_v3  ;;  %v1761_v60 = vadd.f32 %v1753_v51, %v1709_v14  ;;  %v6853_v9 = vld [vmem:[#allocation26_spill] sm:$0xff] }
 0x484   : > { %v1760_v58 = vadd.f32 %v1752_v28, %v1708_v40  ;;  %v1671_v57 = vmul.f32 %v1662_v50, %v6849_v24  ;;  %v1831_v1 = vadd.f32 %v6850_v36, %v1811_v11  ;;  %v1878_v52 = vmul.f32 %v6848_v46, %v6851_v49  ;;  %v6860_v49 = vld [vmem:[#allocation23_spill] sm:$0xff] }
 0x485   : > { %v1824_v34 = vmul.f32 %v6853_v9, %v6852_v16  ;;  %v1825_v19 = vmul.f32 %v6853_v9, %v6854_v41  ;;  %v1834_v2 = vadd.f32 %v6855_v55, %v1814_v38  ;;  %v1813_v37 = vadd.f32 %v1805_v8, %v1761_v60  ;;  %v1654_v32 = vpop.permute.xlu1 %1653 }
 0x486   : > { %v1812_v29 = vadd.f32 %v5774_v5, %v1760_v58  ;;  %v1683_v40 = vmul.f32 %v6812_v56, %v1671_v57  ;;  %v5852_v62 = vadd.f32 %v1875_v26, %v1831_v1  ;;  %v1876_v21 = vmul.f32 %v6848_v46, %v6856_v61  ;;  %v6858_v57 = vld [vmem:[#allocation192_spill] sm:$0xff]  ;;  %v6859_v1 = vld [vmem:[#allocation137_spill] sm:$0xff] }
 0x487   : > { %v1877_v10 = vmul.f32 %v6848_v46, %v6857_v63  ;;  %v1661_v3 = vsel %vm647_vm2, %v1652_v12, %v1654_v32  ;;  %v5860_v33 = vadd.f32 %v1878_v52, %v1834_v2  ;;  %v1833_v15 = vadd.f32 %v1825_v19, %v1813_v37  ;;  %v6862_v2 = vld [vmem:[#allocation200_spill] sm:$0xff] }
 0x488   : > { %v1691_v14 = vadd.f32 %v1683_v40, %v1567_v13  ;;  %v1672_v5 = vmul.f32 %v1661_v3, %v6775_v31  ;;  %v1832_v8 = vadd.f32 %v1824_v34, %v1812_v29  ;;  %v1807_v29 = vmul.f32 %v6816_v53, %v6862_v2 }
 0x489   : > { %v1656_v11 = vpop.permute.xlu1 %1655  ;;  %v5864_v51 = vadd.f32 %v1877_v10, %v1833_v15  ;;  %v6864_v10 = vld [vmem:[#allocation130_spill] sm:$0xff] }
 0x48a   : > { %v1684_v42 = vmul.f32 %v6812_v56, %v1672_v5  ;;  %v1884_v28 = vadd.f32 %v1876_v21, %v1832_v8  ;;  %v1659_v44 = vsel %vm647_vm2, %v1656_v11, %v5757_v54  ;;  %v1660_v12 = vsel %vm647_vm2, %v1654_v32, %v1656_v11  ;;  %v6863_v21 = vld [vmem:[#allocation85_spill] sm:$0xff]  ;;  %v6866_v8 = vld [vmem:[#allocation206_spill] sm:$0xff] }
 0x48b   : > { %v1673_v13 = vmul.f32 %v1660_v12, %v6781_v59  ;;  %v1674_v50 = vmul.f32 %v1659_v44, %v6783_v25  ;;  %v1703_v54 = vmul.f32 %v6860_v49, %v6859_v1  ;;  %v1827_v63 = vmul.f32 %v6853_v9, %v6863_v21 }
 0x48c   : > { %v1692_v26 = vadd.f32 %v1684_v42, %v1568_v20  ;;  %v1808_v3 = vmul.f32 %v6816_v53, %v6864_v10  ;;  %v1879_v15 = vmul.f32 %v6848_v46, %v6866_v8 }
 0x48d   : > { %v1685_v38 = vmul.f32 %v6812_v56, %v1673_v13  ;;  %v1686_v58 = vmul.f32 %v6812_v56, %v1674_v50  ;;  %v1726_v60 = vpop.permute.xlu1 %1725  ;;  %v1711_v34 = vadd.f32 %v1703_v54, %v1691_v14  ;;  %v6861_v56 = vld [vmem:[#allocation53_spill] sm:$0xff]  ;;  %v6865_v14 = vld [vmem:[#allocation194_spill] sm:$0xff]  ;;  %v6871_v54 = vld [vmem:[#allocation207_spill] sm:$0xff] }
 0x48e   : > { %v1733_v36 = vsel %vm753_vm3, %v6858_v57, %v1726_v60  ;;  %v1704_v55 = vmul.f32 %v6860_v49, %v6861_v56  ;;  %v6869_v57 = vld [vmem:[#allocation139_spill] sm:$0xff] }
 0x48f   : > { %v1693_v52 = vadd.f32 %v1685_v38, %v1569_v4  ;;  %v1694_v16 = vadd.f32 %v1686_v58, %v1570_v30  ;;  %v1743_v20 = vmul.f32 %v1733_v36, %v3589_v45  ;;  %v6868_v38 = vld [vmem:[#allocation94_spill] sm:$0xff]  ;;  %v6870_v36 = vld [vmem:[#allocation29_spill] sm:$0xff] }
 0x490   : > { %v1712_v30 = vadd.f32 %v1704_v55, %v1692_v26  ;;  %v6867_v26 = vld [vmem:[#allocation28_spill] sm:$0xff]  ;;  %v1828_v58 = vmul.f32 %v6853_v9, %v6868_v38  ;;  %v1980_v1 = vmul.f32 %v6870_v36, %v6869_v57  ;;  %v6880_v57 = vld [vmem:[#allocation81_spill] sm:$0xff] }
 0x491   : > { %v1755_v59 = vmul.f32 %v6836_v47, %v1743_v20  ;;  %v1728_v41 = vpop.permute.xlu1 %1727  ;;  %v1880_v20 = vmul.f32 %v6848_v46, %v6871_v54 }
 0x492   : > { %v1732_v19 = vsel %vm753_vm3, %v1726_v60, %v1728_v41 }
 0x493   : > { %v1763_v37 = vadd.f32 %v1755_v59, %v1711_v34  ;;  %v1744_v40 = vmul.f32 %v1732_v19, %v3610_v23  ;;  %v6872_v34 = vld [vmem:[#allocation205_spill] sm:$0xff] }
 0x495   : > { %v1815_v4 = vadd.f32 %v1807_v29, %v1763_v37  ;;  %v1756_v32 = vmul.f32 %v6836_v47, %v1744_v40  ;;  %v1924_v61 = vpop.permute.xlu1 %1923 }
 0x496   : > { %v1945_v5 = vsel %vm647_vm2, %v1924_v61, %v6865_v14 }
 0x497   : > { %v1764_v42 = vadd.f32 %v1756_v32, %v1712_v30  ;;  %v1948_v11 = vmul.f32 %v1945_v5, %v3544_v18  ;;  %v1835_v44 = vadd.f32 %v1827_v63, %v1815_v4  ;;  %v6873_v30 = vld [vmem:[#allocation51_spill] sm:$0xff] }
 0x498   : > { %v1706_v32 = vmul.f32 %v6860_v49, %v6873_v30 }
 0x499   : > { %v1816_v12 = vadd.f32 %v1808_v3, %v1764_v42  ;;  %v1960_v13 = vmul.f32 %v6867_v26, %v1948_v11  ;;  %v1938_v50 = vpop.permute.xlu1 %1937  ;;  %v5903_v60 = vadd.f32 %v1879_v15, %v1835_v44  ;;  %v6875_v42 = vld [vmem:[#allocation203_spill] sm:$0xff] }
 0x49a   : > { %v1939_v18 = vsel %vm647_vm2, %v6872_v34, %v1938_v50  ;;  %v1946_v59 = vsel %vm647_vm2, %v1938_v50, %v1924_v61  ;;  %v1714_v5 = vadd.f32 %v1706_v32, %v1694_v16  ;;  %v1809_v11 = vmul.f32 %v6816_v53, %v6875_v42  ;;  %v6878_v50 = vld [vmem:[#allocation120_spill] sm:$0xff] }
 0x49b   : > { %v1968_v19 = vadd.f32 %v1960_v13, %v1884_v28  ;;  %v1947_v56 = vmul.f32 %v1946_v59, %v6704_v22  ;;  %v1954_v55 = vmul.f32 %v1939_v18, %v6783_v25  ;;  %v1836_v2 = vadd.f32 %v1828_v58, %v1816_v12  ;;  %v6874_v28 = vld [vmem:[#allocation54_spill] sm:$0xff]  ;;  %v6879_v58 = vld [vmem:[#allocation89_spill] sm:$0xff] }
 0x49c   : > { %v1705_v25 = vmul.f32 %v6860_v49, %v6874_v28  ;;  %v6877_v49 = vld [vmem:[#allocation196_spill] sm:$0xff]  ;;  %v1981_v38 = vmul.f32 %v6870_v36, %v6878_v50  ;;  %v6882_v59 = vld [vmem:[#allocation209_spill] sm:$0xff] }
 0x49d   : > { %v1959_v29 = vmul.f32 %v6867_v26, %v1947_v56  ;;  %v1730_v37 = vpop.permute.xlu1 %1729  ;;  %v5917_v40 = vadd.f32 %v1980_v1, %v1968_v19  ;;  %v5919_v4 = vadd.f32 %v1880_v20, %v1836_v2  ;;  %v1830_v1 = vmul.f32 %v6853_v9, %v6880_v57  ;;  %v6883_v56 = vld [vmem:[#allocation210_spill] sm:$0xff] }
 0x49e   : > { %v1731_v21 = vsel %vm753_vm3, %v1728_v41, %v1730_v37  ;;  %v1738_v22 = vsel %vm753_vm3, %v1730_v37, %v5799_v43  ;;  %v1713_v3 = vadd.f32 %v1705_v25, %v1693_v52  ;;  %v6876_v43 = vld [vmem:[#allocation204_spill] sm:$0xff]  ;;  %v1881_v19 = vmul.f32 %v6848_v46, %v6882_v59  ;;  %v6886_v25 = vld [vmem:[#allocation149_spill] sm:$0xff]  ;;  %v6891_v59 = vld [vmem:[#allocation38_spill] sm:$0xff] }
 0x49f   : > { %v1967_v61 = vadd.f32 %v1959_v29, %v5852_v62  ;;  %v1745_v63 = vmul.f32 %v1731_v21, %v3640_v48  ;;  %v1746_v10 = vmul.f32 %v1738_v22, %v3567_v35  ;;  %v1810_v44 = vmul.f32 %v6816_v53, %v6876_v43  ;;  %v6884_v29 = vld [vmem:[#allocation199_spill] sm:$0xff]  ;;  %v6885_v22 = vld [vmem:[#allocation125_spill] sm:$0xff] }
 0x4a0   : > { %v1829_v53 = vmul.f32 %v6853_v9, %v6879_v58  ;;  %v1882_v2 = vmul.f32 %v6848_v46, %v6883_v56  ;;  %v1979_v28 = vmul.f32 %v6870_v36, %v6885_v22  ;;  %v6889_v43 = vld [vmem:[#allocation201_spill] sm:$0xff]  ;;  %v2008_v56 = vpop.permute.xlu0 %2007 }
 0x4a1   : > { %v1757_v8 = vmul.f32 %v6836_v47, %v1745_v63  ;;  %v1758_v15 = vmul.f32 %v6836_v47, %v1746_v10  ;;  %v1928_v41 = vpop.permute.xlu1 %1927  ;;  %v1985_v63 = vmul.f32 %v6870_v36, %v6886_v25  ;;  %v6887_v10 = vld [vmem:[#allocation208_spill] sm:$0xff] }
 0x4a2   : > { %v1943_v62 = vsel %vm647_vm2, %v1928_v41, %v6877_v49  ;;  %v1944_v52 = vsel %vm647_vm2, %v6865_v14, %v1928_v41  ;;  %v1965_v46 = vmul.f32 %v6867_v26, %v6887_v10 }
 0x4a3   : > { %v1765_v16 = vadd.f32 %v1757_v8, %v1713_v3  ;;  %v1766_v12 = vadd.f32 %v1758_v15, %v1714_v5  ;;  %v1949_v13 = vmul.f32 %v1944_v52, %v6822_v39  ;;  %v1950_v47 = vmul.f32 %v1943_v62, %v6824_v27  ;;  %v6881_v39 = vld [vmem:[#allocation142_spill] sm:$0xff] }
 0x4a4   : > { %v1982_v27 = vmul.f32 %v6870_v36, %v6881_v39  ;;  %v1966_v5 = vmul.f32 %v6867_v26, %v1954_v55 }
 0x4a5   : > { %v1817_v54 = vadd.f32 %v1809_v11, %v1765_v16  ;;  %v1818_v20 = vadd.f32 %v1810_v44, %v1766_v12  ;;  %v1961_v34 = vmul.f32 %v6867_v26, %v1949_v13  ;;  %v1962_v14 = vmul.f32 %v6867_v26, %v1950_v47  ;;  %v5955_v18 = vpop.permute.xlu1 %1995  ;;  %v6888_v11 = vld [vmem:[#allocation30_spill] sm:$0xff] }
 0x4a6   : > { %v2017_v9 = vsel %vm753_vm3, %v5955_v18, %v6884_v29 }
 0x4a7   : > { %v1837_v37 = vadd.f32 %v1829_v53, %v1817_v54  ;;  %v1838_v30 = vadd.f32 %v1830_v1, %v1818_v20  ;;  %v1969_v32 = vadd.f32 %v1961_v34, %v5864_v51  ;;  %v1970_v21 = vadd.f32 %v1962_v14, %v5860_v33  ;;  %v6890_v53 = vld [vmem:[#allocation202_spill] sm:$0xff] }
 0x4a8   : > { %v2019_v3 = vmul.f32 %v2017_v9, %v6831_v17  ;;  %v1987_v51 = vadd.f32 %v1979_v28, %v1967_v61 }
 0x4a9   : > { %v2000_v8 = vpop.permute.xlu1 %1999  ;;  %v1990_v15 = vadd.f32 %v1982_v27, %v1970_v21  ;;  %v1889_v41 = vadd.f32 %v1881_v19, %v1837_v37  ;;  %v1890_v42 = vadd.f32 %v1882_v2, %v1838_v30  ;;  %v1989_v13 = vadd.f32 %v1981_v38, %v1969_v32  ;;  %v6892_v2 = vld [vmem:[#allocation76_spill] sm:$0xff]  ;;  %v6893_v37 = vld [vmem:[#allocation147_spill] sm:$0xff] }
 0x4aa   : > { %v2031_v33 = vmul.f32 %v6888_v11, %v2019_v3  ;;  %v2015_v44 = vsel %vm753_vm3, %v2000_v8, %v6889_v43  ;;  %v2016_v62 = vsel %vm753_vm3, %v6884_v29, %v2000_v8  ;;  %v1983_v29 = vmul.f32 %v6870_v36, %v6892_v2 }
 0x4ab   : > { %v2020_v52 = vmul.f32 %v2016_v62, %v6841_v6  ;;  %v2021_v17 = vmul.f32 %v2015_v44, %v6842_v7  ;;  %v1973_v55 = vadd.f32 %v1965_v46, %v1889_v41  ;;  %v1974_v16 = vadd.f32 %v1966_v5, %v1890_v42  ;;  %v6894_v46 = vld [vmem:[#allocation49_spill] sm:$0xff] }
 0x4ac   : > { %v2039_v12 = vadd.f32 %v2031_v33, %v1987_v51  ;;  %v1986_v3 = vmul.f32 %v6870_v36, %v6894_v46 }
 0x4ad   : > { %v2032_v61 = vmul.f32 %v6888_v11, %v2020_v52  ;;  %v2033_v47 = vmul.f32 %v6888_v11, %v2021_v17  ;;  %v1932_v50 = vpop.permute.xlu1 %1931  ;;  %v1993_v58 = vadd.f32 %v1985_v63, %v1973_v55 }
 0x4ae   : > { %v1941_v57 = vsel %vm647_vm2, %v1932_v50, %v6890_v53  ;;  %v1942_v6 = vsel %vm647_vm2, %v6877_v49, %v1932_v50 }
 0x4af   : > { %v2040_v7 = vadd.f32 %v2032_v61, %v5917_v40  ;;  %v2041_v1 = vadd.f32 %v2033_v47, %v1989_v13  ;;  %v1951_v54 = vmul.f32 %v1942_v6, %v6849_v24  ;;  %v1952_v38 = vmul.f32 %v1941_v57, %v6775_v31 }
 0x4b1   : > { %v1963_v20 = vmul.f32 %v6867_v26, %v1951_v54  ;;  %v1964_v34 = vmul.f32 %v6867_v26, %v1952_v38  ;;  %v2004_v14 = vpop.permute.xlu1 %2003  ;;  %v2051_v19 = vadd.f32 %v2040_v7, %v2039_v12 }
 0x4b2   : > { %v2014_v39 = vsel %vm753_vm3, %v6889_v43, %v2004_v14  ;;  %v1994_v43 = vadd.f32 %v1986_v3, %v1974_v16 }
 0x4b3   : > { %v1971_v27 = vadd.f32 %v1963_v20, %v5903_v60  ;;  %v1972_v49 = vadd.f32 %v1964_v34, %v5919_v4  ;;  %v2022_v40 = vmul.f32 %v2014_v39, %v6891_v59  ;;  %v1984_v60 = vmul.f32 %v6870_v36, %v6893_v37 }
 0x4b4   : > { %v2052_v21 = vadd.f32 %v2051_v19, %v2041_v1 }
 0x4b5   : > { %v2034_v24 = vmul.f32 %v6888_v11, %v2022_v40  ;;  %v2006_v31 = vpop.permute.xlu1 %2005  ;;  %v1991_v22 = vadd.f32 %v1983_v29, %v1971_v27  ;;  %v1992_v28 = vadd.f32 %v1984_v60, %v1972_v49  ;;  %v2050_v40 = vld [vmem:[%s2049_s21] sm:$0xff] }
 0x4b6   : > { %v2012_v26 = vsel %vm753_vm3, %v2006_v31, %v2008_v56  ;;  %v2013_v9 = vsel %vm753_vm3, %v2004_v14, %v2006_v31 }
 0x4b7   : > { %v2042_v4 = vadd.f32 %v2034_v24, %v1990_v15  ;;  %v2023_v30 = vmul.f32 %v2013_v9, %v3589_v45  ;;  %v2024_v32 = vmul.f32 %v2012_v26, %v3610_v23 }
 0x4b9   : > { %v2035_v25 = vmul.f32 %v6888_v11, %v2023_v30  ;;  %v2036_v63 = vmul.f32 %v6888_v11, %v2024_v32  ;;  %v2010_v10 = vpop.permute.xlu1 %2009  ;;  %v2053_v5 = vadd.f32 %v2052_v21, %v2042_v4 }
 0x4ba   : > { %v2011_v8 = vsel %vm753_vm3, %v2008_v56, %v2010_v10  ;;  %v2018_v45 = vsel %vm753_vm3, %v2010_v10, %v5955_v18 }
 0x4bb   : > { %v2043_v23 = vadd.f32 %v2035_v25, %v1991_v22  ;;  %v2044_v15 = vadd.f32 %v2036_v63, %v1992_v28  ;;  %v2025_v41 = vmul.f32 %v2011_v8, %v3640_v48  ;;  %v2026_v42 = vmul.f32 %v2018_v45, %v3567_v35 }
 0x4bd   : > { %v2054_v51 = vadd.f32 %v2053_v5, %v2043_v23  ;;  %v2037_v33 = vmul.f32 %v6888_v11, %v2025_v41  ;;  %v2038_v36 = vmul.f32 %v6888_v11, %v2026_v42 }
 0x4bf   : > { %v2045_v44 = vadd.f32 %v2037_v33, %v1993_v58  ;;  %v2046_v62 = vadd.f32 %v2038_v36, %v1994_v43  ;;  %v2055_v52 = vadd.f32 %v2054_v51, %v2044_v15 }
 0x4c1   : > { %v2056_v17 = vadd.f32 %v2055_v52, %v2045_v44 }
 0x4c3   : > { %v2057_v55 = vadd.f32 %v2056_v17, %v2046_v62 }
 0x4c5   : > { %2058 = vadd.xlane.f32.xlu0 %v2057_v55 }
 0x4db   : > { %2099 = vperm.xlu0 %3126, %v2048_v0  }
 0x54e   : > { %v2059_v48 = vpop.xlane.xlu0 %2058 }
 0x54f   : > { %v2060_v35 = vmul.f32 0.0009765625, %v2059_v48 }
 0x551   : > { %v2061_v18 = vsub.f32 %v2039_v12, %v2060_v35  ;;  %v2062_v13 = vsub.f32 %v2040_v7, %v2060_v35  ;;  %v2063_v61 = vsub.f32 %v2041_v1, %v2060_v35  ;;  %v2064_v47 = vsub.f32 %v2042_v4, %v2060_v35 }
 0x552   : > { %v2065_v50 = vsub.f32 %v2043_v23, %v2060_v35  ;;  %v2066_v57 = vsub.f32 %v2044_v15, %v2060_v35  ;;  %v2067_v38 = vsub.f32 %v2045_v44, %v2060_v35  ;;  %v2068_v14 = vsub.f32 %v2046_v62, %v2060_v35 }
 0x553   : > { %v2069_v11 = vmul.f32 %v2061_v18, %v2061_v18  ;;  %v2070_v16 = vmul.f32 %v2062_v13, %v2062_v13  ;;  %v2071_v58 = vmul.f32 %v2063_v61, %v2063_v61  ;;  %v2072_v6 = vmul.f32 %v2064_v47, %v2064_v47 }
 0x554   : > { %v2073_v20 = vmul.f32 %v2065_v50, %v2065_v50  ;;  %v2074_v39 = vmul.f32 %v2066_v57, %v2066_v57  ;;  %v2075_v49 = vmul.f32 %v2067_v38, %v2067_v38  ;;  %v2076_v7 = vmul.f32 %v2068_v14, %v2068_v14 }
 0x555   : > { %v2077_v53 = vadd.f32 %v2070_v16, %v2069_v11 }
 0x556   : > { %v2100_v2 = vpop.permute.xlu0 %2099 }
 0x557   : > { %v2078_v54 = vadd.f32 %v2077_v53, %v2071_v58 }
 0x559   : > { %v2079_v34 = vadd.f32 %v2078_v54, %v2072_v6 }
 0x55b   : > { %v2080_v27 = vadd.f32 %v2079_v34, %v2073_v20 }
 0x55d   : > { %v2081_v12 = vadd.f32 %v2080_v27, %v2074_v39 }
 0x55f   : > { %v2082_v1 = vadd.f32 %v2081_v12, %v2075_v49 }
 0x561   : > { %v2083_v59 = vadd.f32 %v2082_v1, %v2076_v7 }
 0x563   : > { %2084 = vadd.xlane.f32.xlu1 %v2083_v59 }
 0x574   : > { %2112 = vperm.xlu1 %3127, %v2050_v40  }
 0x5ec   : > { %v2085_v19 = vpop.xlane.xlu1 %2084 }
 0x5ed   : > { %v2086_v56 = vmul.f32 0.0009765625, %v2085_v19 }
 0x5ef   : > { %v2087_v24 = vadd.f32 1e-05, %v2086_v56 }
 0x5f0   : > { %v2113_v60 = vpop.permute.xlu1 %2112 }
 0x5f1   : > { %3162 = vrsqrt.f32 %v2087_v24 }
 0x5fe   : > { %v3163_v31 = vpop.eup %3162 }
 0x5ff   : > { %v2093_v29 = vmul.f32 %v3163_v31, %v2065_v50  ;;  %v2094_v26 = vmul.f32 %v3163_v31, %v2066_v57  ;;  %v2095_v9 = vmul.f32 %v3163_v31, %v2067_v38  ;;  %v2096_v37 = vmul.f32 %v3163_v31, %v2068_v14 }
 0x600   : > { %v2089_v4 = vmul.f32 %v3163_v31, %v2061_v18  ;;  %v2090_v30 = vmul.f32 %v3163_v31, %v2062_v13  ;;  %v2091_v32 = vmul.f32 %v3163_v31, %v2063_v61  ;;  %v2092_v21 = vmul.f32 %v3163_v31, %v2064_v47 }
 0x601   : > { %v2106_v22 = vmul.f32 %v2100_v2, %v2093_v29  ;;  %v2107_v28 = vmul.f32 %v2100_v2, %v2094_v26  ;;  %v2108_v25 = vmul.f32 %v2100_v2, %v2095_v9  ;;  %v2109_v63 = vmul.f32 %v2100_v2, %v2096_v37 }
 0x602   : > { %v2102_v10 = vmul.f32 %v2100_v2, %v2089_v4  ;;  %v2103_v46 = vmul.f32 %v2100_v2, %v2090_v30  ;;  %v2104_v3 = vmul.f32 %v2100_v2, %v2091_v32  ;;  %v2105_v5 = vmul.f32 %v2100_v2, %v2092_v21 }
 0x603   : > { %v2119_v8 = vadd.f32 %v2113_v60, %v2106_v22  ;;  %v2120_v45 = vadd.f32 %v2113_v60, %v2107_v28  ;;  %v2121_v23 = vadd.f32 %v2113_v60, %v2108_v25  ;;  %v2122_v15 = vadd.f32 %v2113_v60, %v2109_v63 }
 0x604   : > { %v2115_v41 = vadd.f32 %v2113_v60, %v2102_v10  ;;  %v6037_v42 = vadd.f32 %v2113_v60, %v2103_v46  ;;  %v2117_v43 = vadd.f32 %v2113_v60, %v2104_v3  ;;  %v6039_v62 = vadd.f32 %v2113_v60, %v2105_v5  ;;  %v2213_v10 = vld [vmem:[%s6148_s8] sm:$0xff] (%p53_p0)  ;;  %v2216_v5 = vld [vmem:[%s6149_s9 + $0x8] sm:$0xff] (%p53_p0) }
 0x605   : > { %v3000_v51 = vmul.f32 -1.442695, %v2119_v8  ;;  %v3001_v33 = vmul.f32 -1.442695, %v2120_v45  ;;  %v3002_v36 = vmul.f32 -1.442695, %v2121_v23  ;;  %3041 = vmatprep.mubr.msk.f32.mxu0 (%p53_p0), %vm2227_vm8, %v2213_v10 }
 0x606   : > { %v3003_v44 = vmul.f32 -1.442695, %v2122_v15  ;;  %v2996_v52 = vmul.f32 -1.442695, %v2115_v41  ;;  %v2997_v17 = vmul.f32 -1.442695, %v6037_v42 }
 0x607   : > { %3164 = vpow2.f32 %v3000_v51  ;;  %v2998_v55 = vmul.f32 -1.442695, %v2117_v43  ;;  %v2999_v0 = vmul.f32 -1.442695, %v6039_v62  ;;  %v3283_v46 = vmov (%p53_p0), 0   ;;  %v2317_v51 = vld [vmem:[%s6151_s11 + $0x10] sm:$0xff] (%p53_p0) }
 0x608   : > { %3166 = vpow2.f32 %v3001_v33  ;;  %3196 = vset.pattern.permute.xlu0 (%p53_p0), %v3283_v46  ;;  %3197 = vset.pattern.permute.xlu1 (%p53_p0), %v3283_v46  ;;  %v2315_v33 = vld [vmem:[%s6151_s11] sm:$0xff] (%p53_p0) }
 0x609   : > { %3168 = vpow2.f32 %v3002_v36 }
 0x60a   : > { %3170 = vpow2.f32 %v3003_v44 }
 0x60b   : > { %3172 = vpow2.f32 %v2996_v52 }
 0x60c   : > { %3174 = vpow2.f32 %v2997_v17 }
 0x60d   : > { %3176 = vpow2.f32 %v2998_v55 }
 0x60e   : > { %3178 = vpow2.f32 %v2999_v0 }
 0x614   : > { %v3165_v48 = vpop.eup %3164 }
 0x615   : > { %v3167_v35 = vpop.eup %3166  ;;  %v2151_v18 = vadd.f32 1.0, %v3165_v48  ;;  %v2312_v48 = vld [vmem:[%s6150_s10 + $0x8] sm:$0xff] (%p53_p0) }
 0x616   : > { %v3169_v13 = vpop.eup %3168  ;;  %v2152_v61 = vadd.f32 1.0, %v3167_v35  ;;  %v2313_v35 = vld [vmem:[%s6150_s10 + $0x10] sm:$0xff] (%p53_p0) }
 0x617   : > { %v3171_v47 = vpop.eup %3170  ;;  %v2153_v11 = vadd.f32 1.0, %v3169_v13  ;;  %3180 = vrcp.f32 %v2151_v18  ;;  %v2314_v18 = vld [vmem:[%s6150_s10 + $0x18] sm:$0xff] (%p53_p0) }
 0x618   : > { %v3173_v16 = vpop.eup %3172  ;;  %v2154_v50 = vadd.f32 1.0, %v3171_v47  ;;  %3182 = vrcp.f32 %v2152_v61 }
 0x619   : > { %v3175_v58 = vpop.eup %3174  ;;  %3184 = vrcp.f32 %v2153_v11  ;;  %v2147_v53 = vadd.f32 1.0, %v3173_v16 }
 0x61a   : > { %v3177_v57 = vpop.eup %3176  ;;  %3186 = vrcp.f32 %v2154_v50  ;;  %v2148_v6 = vadd.f32 1.0, %v3175_v58 }
 0x61b   : > { %v3179_v54 = vpop.eup %3178  ;;  %v2149_v38 = vadd.f32 1.0, %v3177_v57  ;;  %3188 = vrcp.f32 %v2147_v53 }
 0x61c   : > { %v2150_v20 = vadd.f32 1.0, %v3179_v54  ;;  %3190 = vrcp.f32 %v2148_v6 }
 0x61d   : > { %3192 = vrcp.f32 %v2149_v38 }
 0x61e   : > { %3194 = vrcp.f32 %v2150_v20 }
 0x624   : > { %v3181_v34 = vpop.eup %3180 }
 0x625   : > { %v3183_v14 = vpop.eup %3182  ;;  %v2175_v39 = vmul.f32 %v3181_v34, %v2119_v8 }
 0x626   : > { %v3185_v27 = vpop.eup %3184  ;;  %v2176_v49 = vmul.f32 %v3183_v14, %v2120_v45  ;;  %v2215_v45 = vld [vmem:[%s6149_s9] sm:$0xff] (%p53_p0) }
 0x627   : > { %v3187_v12 = vpop.eup %3186  ;;  %v2177_v7 = vmul.f32 %v3185_v27, %v2121_v23  ;;  %2188 = vst [vmem:[%s2183_s24 + $0x20] sm:$0xff] %v2175_v39  ;;  %v2214_v23 = vld [vmem:[%s6148_s8 + $0x8] sm:$0xff] (%p53_p0) }
 0x628   : > { %v3189_v1 = vpop.eup %3188  ;;  %v2178_v59 = vmul.f32 %v3187_v12, %v2122_v15  ;;  %2189 = vst [vmem:[%s2183_s24 + $0x28] sm:$0xff] %v2176_v49  ;;  %v2201_v40 = vadd.f32 %v2176_v49, %v2175_v39  ;;  %v2316_v15 = vld [vmem:[%s6151_s11 + $0x8] sm:$0xff] (%p53_p0) }
 0x629   : > { %v3191_v19 = vpop.eup %3190  ;;  %2190 = vst [vmem:[%s2183_s24 + $0x30] sm:$0xff] %v2177_v7  ;;  %v2171_v56 = vmul.f32 %v3189_v1, %v2115_v41  ;;  %v2311_v41 = vld [vmem:[%s6150_s10] sm:$0xff] (%p53_p0) }
 0x62a   : > { %v3193_v24 = vpop.eup %3192  ;;  %2191 = vst [vmem:[%s2183_s24 + $0x38] sm:$0xff] %v2178_v59  ;;  %v2202_v31 = vadd.f32 %v2201_v40, %v2177_v7  ;;  %v2172_v2 = vmul.f32 %v3191_v19, %v6037_v42  ;;  %3048 = vmatprep.mubr.msk.f32.mxu1 (%p53_p0), %vm2339_vm9, %v2311_v41  ;;  %v2318_v42 = vld [vmem:[%s6151_s11 + $0x18] sm:$0xff] (%p53_p0) }
 0x62b   : > { %v3195_v29 = vpop.eup %3194  ;;  %v2173_v26 = vmul.f32 %v3193_v24, %v2117_v43  ;;  %2184 = vst [vmem:[%s2183_s24] sm:$0xff] %v2171_v56 }
 0x62c   : > { %v2203_v9 = vadd.f32 %v2202_v31, %v2178_v59  ;;  %v2174_v37 = vmul.f32 %v3195_v29, %v6039_v62  ;;  %2185 = vst [vmem:[%s2183_s24 + $0x8] sm:$0xff] %v2172_v2  ;;  %v2192_v60 = vadd.f32 %v2172_v2, %v2171_v56  ;;  %v3284_v2 = vmov (%p53_p0), 1  }
 0x62d   : > { %2186 = vst [vmem:[%s2183_s24 + $0x10] sm:$0xff] %v2173_v26 }
 0x62e   : > { %2204 = vadd.xlane.f32.xlu0 %v2203_v9  ;;  %2187 = vst [vmem:[%s2183_s24 + $0x18] sm:$0xff] %v2174_v37  ;;  %v2193_v4 = vadd.f32 %v2192_v60, %v2173_v26  ;;  %v3285_v26 = vmov (%p53_p0), 0.0  }
 0x630   : > { %v2194_v30 = vadd.f32 %v2193_v4, %v2174_v37 }
 0x632   : > { %2195 = vadd.xlane.f32.xlu1 %v2194_v30 }
 0x635   :  { %v2474_v37 = vld [vmem:[#allocation2 + $0xc0] sm:$0xff] (%p53_p0)  ;;  %v2476_v60 = vld [vmem:[#allocation2 + $0xd0] sm:$0xff] (%p53_p0)  ;;  %v2475_v4 = vld [vmem:[#allocation2 + $0xc8] sm:$0xff] (%p53_p0) }
 0x636   :  { %v2477_v30 = vld [vmem:[#allocation2 + $0xd8] sm:$0xff] (%p53_p0) }
 0x643   :  { %2336 = vperm.xlu1 (%p53_p0), %3197, %v2318_v42  }
 0x644   :  { %2224 = vperm.xlu0 (%p53_p0), %3196, %v2216_v5   ;;  %v2473_v5 = vld [vmem:[#allocation2 + $0x98] sm:$0xff] (%p53_p0) }
 0x647   :  { %2331 = vperm.xlu1 (%p53_p0), %3197, %v2317_v51   ;;  %v2469_v51 = vld [vmem:[#allocation2 + $0x58] sm:$0xff] (%p53_p0) }
 0x648   :  { %2219 = vperm.xlu0 (%p53_p0), %3196, %v2215_v45   ;;  %v2467_v45 = vld [vmem:[#allocation2 + $0x48] sm:$0xff] (%p53_p0) }
 0x64b   :  { %2321 = vperm.xlu1 (%p53_p0), %3197, %v2315_v33  }
 0x64c   :  { %2326 = vperm.xlu0 (%p53_p0), %3196, %v2316_v15   ;;  %v2468_v15 = vld [vmem:[#allocation2 + $0x50] sm:$0xff] (%p53_p0) }
 0x6b7   : > { %v2205_v32 = vpop.xlane.xlu0 %2204 }
 0x6b8   : > { %v2206_v21 = vmul.f32 0.001953125, %v2205_v32 }
 0x6bb   : > { %v2196_v22 = vpop.xlane.xlu1 %2195  ;;  %55 = sbr.rel (!%p53_p0) target bundleno = 1 (0x1), region = 95 }
 0x6bc   : > { %v2197_v28 = vmul.f32 0.001953125, %v2196_v22  ;;  %v2472_v22 = vld [vmem:[#allocation2 + $0x90] sm:$0xff] (%p53_p0) }
 0x6be   : > { %2200 = vst.msk [vmem:[%s2198_s25] sm:$0xff] %vm2199_vm6, %v2197_v28  ;;  %v2471_v28 = vld [vmem:[#allocation2 + $0x88] sm:$0xff] (%p53_p0) }
 0x6bf   : > { %2208 = vst.msk [vmem:[%s2198_s25] sm:$0xff] %vm2207_vm7, %v2206_v21  ;;  %v2225_v36 = vpop.permute.xlu0 (%p53_p0), %2224  ;;  %v2337_v13 = vpop.permute.xlu1 (%p53_p0), %2336  ;;  %v2470_v21 = vld [vmem:[#allocation2 + $0x80] sm:$0xff] (%p53_p0) }
 0x6c3   :  { %v2220_v62 = vpop.permute.xlu0 %2219  ;;  %v2332_v61 = vpop.permute.xlu1 %2331 }
 0x6c6   :  { %v2212_v25 = vld [vmem:[#allocation3 + $0x18] sm:$0xff]  ;;  %v2211_v63 = vld [vmem:[#allocation3 + $0x10] sm:$0xff]  ;;  %v2210_v3 = vld [vmem:[#allocation3 + $0x8] sm:$0xff] }
 0x6c7   :  { %3033 = vmatprep.subr.mxu0 %v2212_v25  ;;  %v2209_v8 = vld [vmem:[#allocation3] sm:$0xff]  ;;  %v2327_v47 = vpop.permute.xlu0 %2326  ;;  %v2322_v16 = vpop.permute.xlu1 %2321 }
 0x6c8   :  { %3034 = vmatpush3.msra.mxu0 %v2212_v25 }
 0x6c9   :  { %3035 = vmatprep.subr.mxu0 %v2211_v63 }
 0x6ca   :  { %3036 = vmatpush3.msra.mxu0 %v2211_v63 }
 0x6cb   :  { %3037 = vmatprep.subr.mxu0 %v2210_v3 }
 0x6cc   :  { %3038 = vmatpush3.msra.mxu0 %v2210_v3 }
 0x6cd   :  { %3039 = vmatprep.subr.mxu0 %v2209_v8 }
 0x6ce   :  { %3040 = vmatpush3.msra.mxu0 %v2209_v8 }
 0x6cf   :  { %3042 = vmatmul.mubr.msk.f32.vlgmr.msra.gmra.mxu0 %vm2227_vm8, %v2214_v23  ;;  %v2466_v23 = vld [vmem:[#allocation2 + $0x40] sm:$0xff] }
 0x6d0   :  { %2652 = vmatprep.mubr.f32.mxu0 %v3285_v26 }
 0x78f   :  { %v3043_v43 = vpop.f32.mrf.mxu0 }
 0x790   :  { %v2306_v44 = vadd.f32 %v3043_v43, %v2225_v36  ;;  %v2462_v36 = vld [vmem:[#allocation2] sm:$0xff]  ;;  %v2464_v43 = vld [vmem:[#allocation2 + $0x10] sm:$0xff] }
 0x791   :  { %v2300_v52 = vpop.f32.mrf.mxu0 }
 0x792   :  { %v2310_v17 = vmax.f32 %v2306_v44, 0.0  ;;  %v2301_v55 = vadd.f32 %v2300_v52, %v2220_v62  ;;  %v2463_v44 = vld [vmem:[#allocation2 + $0x8] sm:$0xff]  ;;  %v2465_v52 = vld [vmem:[#allocation2 + $0x18] sm:$0xff] }
 0x794   :  { %v2309_v0 = vmax.f32 %v2301_v55, 0.0  ;;  %3044 = vmatprep.subr.mxu1 %v2310_v17 }
 0x795   :  { %3045 = vmatpush3.msra.mxu1 %v2310_v17 }
 0x796   :  { %3046 = vmatprep.subr.mxu1 %v2309_v0 }
 0x797   :  { %3047 = vmatpush3.msra.mxu1 %v2309_v0 }
 0x798   :  { %3049 = vmatmul.mubr.msk.f32.vlgmr.msra.gmra.mxu1 %vm2339_vm9, %v2312_v48 }
 0x799   :  { %3051 = vmatprep.mubr.msk.f32.mxu1 %vm2339_vm9, %v2313_v35 }
 0x79c   :  { %3052 = vmatmul.mubr.msk.f32.gmra.mxu1 %vm2339_vm9, %v2314_v18  ;;  %v2672_v18 = vld [vmem:[#allocation2 + $0xe8] sm:$0xff] }
 0x79d   :  { %2581 = vmatprep.mubr.f32.mxu1 %v3285_v26 }
 0x858   :  { %v3050_v11 = vpop.f32.mrf.mxu1 }
 0x859   :  { %v2424_v50 = vadd.f32 %v3050_v11, %v2327_v47  ;;  %v2674_v11 = vld [vmem:[#allocation2 + $0xf8] sm:$0xff] }
 0x85a   :  { %v2418_v58 = vpop.f32.mrf.mxu1 }
 0x85b   :  { %v3013_v53 = vmul.f32 -1.442695, %v2424_v50  ;;  %v2419_v57 = vadd.f32 %v2418_v58, %v2322_v16  ;;  %v2671_v16 = vld [vmem:[#allocation2 + $0xe0] sm:$0xff]  ;;  %v2673_v50 = vld [vmem:[#allocation2 + $0xf0] sm:$0xff] }
 0x85c   :  { %v3053_v6 = vpop.f32.mrf.mxu1 }
 0x85d   :  { %3202 = vpow2.f32 %v3013_v53  ;;  %v2434_v54 = vadd.f32 %v3053_v6, %v2337_v13  ;;  %v3012_v38 = vmul.f32 -1.442695, %v2419_v57  ;;  %v2667_v53 = vld [vmem:[#allocation2 + $0xa0] sm:$0xff]  ;;  %v2669_v6 = vld [vmem:[#allocation2 + $0xb0] sm:$0xff] }
 0x85e   :  { %v2428_v20 = vpop.f32.mrf.mxu1 }
 0x85f   :  { %v3015_v34 = vmul.f32 -1.442695, %v2434_v54  ;;  %v2429_v14 = vadd.f32 %v2428_v20, %v2332_v61  ;;  %v2461_v54 = vld [vmem:[%s6152_s12] sm:$0xff] }
 0x861   :  { %3204 = vpow2.f32 %v3015_v34  ;;  %v3014_v39 = vmul.f32 -1.442695, %v2429_v14  ;;  %v2670_v34 = vld [vmem:[#allocation2 + $0xb8] sm:$0xff] }
 0x862   :  { %3206 = vpow2.f32 %v3012_v38  ;;  %v2668_v38 = vld [vmem:[#allocation2 + $0xa8] sm:$0xff] }
 0x863   :  { %3208 = vpow2.f32 %v3014_v39 }
 0x86a   :  { %v3203_v27 = vpop.eup %3202 }
 0x86b   :  { %v2450_v49 = vadd.f32 1.0, %v3203_v27 }
 0x86d   :  { %3210 = vrcp.f32 %v2450_v49 }
 0x86e   :  { %v3205_v12 = vpop.eup %3204 }
 0x86f   :  { %v3207_v7 = vpop.eup %3206  ;;  %v2452_v1 = vadd.f32 1.0, %v3205_v12 }
 0x870   :  { %v3209_v59 = vpop.eup %3208  ;;  %v2449_v19 = vadd.f32 1.0, %v3207_v7 }
 0x871   :  { %3212 = vrcp.f32 %v2452_v1  ;;  %v2451_v40 = vadd.f32 1.0, %v3209_v59  ;;  %v2663_v1 = vld [vmem:[#allocation2 + $0x60] sm:$0xff] }
 0x873   :  { %3214 = vrcp.f32 %v2451_v40  ;;  %v2665_v40 = vld [vmem:[#allocation2 + $0x70] sm:$0xff] }
 0x874   :  { %3216 = vrcp.f32 %v2449_v19  ;;  %v2664_v19 = vld [vmem:[#allocation2 + $0x68] sm:$0xff] }
 0x87a   :  { %v3211_v56 = vpop.eup %3210 }
 0x87b   :  { %2485 = vperm.xlu0 %3196, %v3211_v56  }
 0x87e   :  { %v3213_v24 = vpop.eup %3212 }
 0x87f   :  { %2495 = vperm.xlu0 %3196, %v3213_v24  }
 0x880   :  { %v3215_v31 = vpop.eup %3214 }
 0x881   :  { %2490 = vperm.xlu1 %3197, %v3215_v31   ;;  %v3217_v29 = vpop.eup %3216 }
 0x883   :  { %3198 = vset.pattern.permute.xlu0 %v3284_v2 }
 0x884   :  { %2688 = vperm.xlu0 %3198, %v3213_v24  }
 0x885   :  { %2480 = vperm.xlu1 %3197, %v3217_v29  }
 0x888   :  { %2676 = vperm.xlu0 %3198, %v3217_v29   ;;  %v2662_v29 = vld [vmem:[#allocation2 + $0x38] sm:$0xff] }
 0x889   :  { %3199 = vset.pattern.permute.xlu1 %v3284_v2  ;;  %v2660_v2 = vld [vmem:[#allocation2 + $0x28] sm:$0xff] }
 0x88a   :  { %2684 = vperm.xlu1 %3199, %v3215_v31  }
 0x88c   :  { %3200 = vset.pattern.permute.xlu0 %v3283_v46 }
 0x88e   :  { %2680 = vperm.xlu1 %3199, %v3211_v56   ;;  %v2666_v56 = vld [vmem:[#allocation2 + $0x78] sm:$0xff] }
 0x892   :  { %3201 = vset.pattern.permute.xlu1 %v3283_v46 }
 0x8f6   :  { %v2486_v9 = vpop.permute.xlu0 %2485 }
 0x8f7   :  { %v2503_v62 = vmul.f32 %v2486_v9, %v2467_v45  ;;  %v2502_v17 = vmul.f32 %v2486_v9, %v2466_v23  ;;  %v2504_v55 = vmul.f32 %v2486_v9, %v2468_v15  ;;  %v2505_v35 = vmul.f32 %v2486_v9, %v2469_v51  ;;  %v2659_v9 = vld [vmem:[#allocation2 + $0x20] sm:$0xff] }
 0x8fa   :  { %v2496_v32 = vpop.permute.xlu0 %2495 }
 0x8fb   :  { %v2510_v25 = vmul.f32 %v2496_v32, %v2474_v37  ;;  %v2512_v63 = vmul.f32 %v2496_v32, %v2476_v60  ;;  %v2511_v10 = vmul.f32 %v2496_v32, %v2475_v4  ;;  %v2513_v3 = vmul.f32 %v2496_v32, %v2477_v30  ;;  %v2661_v37 = vld [vmem:[#allocation2 + $0x30] sm:$0xff] }
 0x8fc   :  { %v2491_v8 = vpop.permute.xlu1 %2490 }
 0x8fd   :  { %v2506_v41 = vmul.f32 %v2491_v8, %v2470_v21  ;;  %v2508_v46 = vmul.f32 %v2491_v8, %v2472_v22  ;;  %2541 = vmatprep.subr.mxu1 %v2511_v10  ;;  %2612 = vmatprep.subr.mxu0 %v2513_v3  ;;  %v2507_v42 = vmul.f32 %v2491_v8, %v2471_v28 }
 0x8fe   :  { %2542 = vmatpush1.msra.mxu1 %v2510_v25  ;;  %2613 = vmatpush1.msra.mxu0 %v2512_v63  ;;  %v2509_v33 = vmul.f32 %v2491_v8, %v2473_v5 }
 0x8ff   :  { %2543 = vmatprep.subr.mxu1 %v2507_v42  ;;  %v2689_v0 = vpop.permute.xlu0 %2688 }
 0x900   :  { %2614 = vmatprep.subr.mxu0 %v2509_v33  ;;  %2544 = vmatpush1.msra.mxu1 %v2506_v41  ;;  %v2481_v48 = vpop.permute.xlu1 %2480  ;;  %v2704_v57 = vmul.f32 %v2689_v0, %v2672_v18  ;;  %v2706_v20 = vmul.f32 %v2689_v0, %v2674_v11  ;;  %v2703_v14 = vmul.f32 %v2689_v0, %v2671_v16 }
 0x901   :  { %2615 = vmatpush1.msra.mxu0 %v2508_v46  ;;  %v2498_v13 = vmul.f32 %v2481_v48, %v2462_v36  ;;  %v2500_v61 = vmul.f32 %v2481_v48, %v2464_v43  ;;  %2545 = vmatprep.subr.mxu1 %v2503_v62  ;;  %v2499_v47 = vmul.f32 %v2481_v48, %v2463_v44  ;;  %v2850_v43 = vld [vmem:[%s6154_s14] sm:$0xff] }
 0x902   :  { %2616 = vmatprep.subr.mxu0 %v2505_v35  ;;  %2546 = vmatpush1.msra.mxu1 %v2502_v17  ;;  %v2501_v58 = vmul.f32 %v2481_v48, %v2465_v52  ;;  %v2705_v39 = vmul.f32 %v2689_v0, %v2673_v50 }
 0x903   :  { %2617 = vmatpush1.msra.mxu0 %v2504_v55  ;;  %2547 = vmatprep.subr.mxu1 %v2499_v47  ;;  %v2677_v24 = vpop.permute.xlu0 %2676 }
 0x904   :  { %2618 = vmatprep.subr.mxu0 %v2501_v58  ;;  %2548 = vmatpush1.msra.mxu1 %v2498_v13  ;;  %v2692_v21 = vmul.f32 %v2677_v24, %v2660_v2  ;;  %v2694_v22 = vmul.f32 %v2677_v24, %v2662_v29  ;;  %v2691_v28 = vmul.f32 %v2677_v24, %v2659_v9 }
 0x905   :  { %2619 = vmatpush1.msra.mxu0 %v2500_v61  ;;  %2731 = vmatprep.subr.mxu1 %v2704_v57  ;;  %v2685_v27 = vpop.permute.xlu1 %2684  ;;  %v2693_v25 = vmul.f32 %v2677_v24, %v2661_v37 }
 0x906   :  { %2802 = vmatprep.subr.mxu0 %v2706_v20  ;;  %v2699_v49 = vmul.f32 %v2685_v27, %v2667_v53  ;;  %v2701_v12 = vmul.f32 %v2685_v27, %v2669_v6  ;;  %3016 = vmatmul.mubr.msk.f32.vlgmr.msra.gmra.mxu1 %vm2227_vm8, %v2461_v54  ;;  %v2700_v7 = vmul.f32 %v2685_v27, %v2668_v38 }
 0x907   :  { %3017 = vmatmul.mubr.msk.f32.vlgmr.msra.gmra.mxu0 %vm2227_vm8, %v2461_v54  ;;  %2732 = vmatpush1.msra.mxu1 %v2703_v14  ;;  %v2702_v59 = vmul.f32 %v2685_v27, %v2670_v34  ;;  %v2849_v27 = vld [vmem:[%s6153_s13] sm:$0xff] }
 0x908   :  { %2803 = vmatpush1.msra.mxu0 %v2705_v39  ;;  %2733 = vmatprep.subr.mxu1 %v2700_v7 }
 0x909   :  { %2804 = vmatprep.subr.mxu0 %v2702_v59  ;;  %2734 = vmatpush1.msra.mxu1 %v2699_v49  ;;  %v2681_v31 = vpop.permute.xlu1 %2680 }
 0x90a   :  { %2805 = vmatpush1.msra.mxu0 %v2701_v12  ;;  %v2695_v60 = vmul.f32 %v2681_v31, %v2663_v1  ;;  %v2697_v4 = vmul.f32 %v2681_v31, %v2665_v40  ;;  %v2696_v30 = vmul.f32 %v2681_v31, %v2664_v19  ;;  %v2698_v32 = vmul.f32 %v2681_v31, %v2666_v56 }
 0x90b   :  { %2771 = vmatprep.mubr.f32.mxu1 %v3285_v26  ;;  %2842 = vmatprep.mubr.f32.mxu0 %v3285_v26 }
 0x90c   :  { %2735 = vmatprep.subr.mxu1 %v2696_v30  ;;  %2806 = vmatprep.subr.mxu0 %v2698_v32 }
 0x90d   :  { %2736 = vmatpush1.msra.mxu1 %v2695_v60  ;;  %2807 = vmatpush1.msra.mxu0 %v2697_v4 }
 0x90e   :  { %2737 = vmatprep.subr.mxu1 %v2692_v21  ;;  %2808 = vmatprep.subr.mxu0 %v2694_v22  ;;  %v2924_v21 = vld [vmem:[%s6140_s0] sm:$0xff]  ;;  %v2925_v22 = vld [vmem:[%s6140_s0 + $0x8] sm:$0xff] }
 0x90f   :  { %2738 = vmatpush1.msra.mxu1 %v2691_v28  ;;  %2809 = vmatpush1.msra.mxu0 %v2693_v25 }
 0x910   :  { %3018 = vmatmul.mubr.msk.f32.vlgmr.msra.gmra.mxu1 %vm2227_vm8, %v2461_v54  ;;  %3019 = vmatmul.mubr.msk.f32.vlgmr.msra.gmra.mxu0 %vm2227_vm8, %v2461_v54 }
 0x9c6   :  { %v2583_v63 = vpop.f32.mrf.mxu1 }
 0x9c7   :  { %v2654_v3 = vpop.f32.mrf.mxu0 }
 0x9c8   :  { %v2585_v10 = vpop.f32.mrf.mxu1 }
 0x9c9   :  { %v2851_v26 = vadd.f32 %v2585_v10, %v2583_v63  ;;  %v2656_v8 = vpop.f32.mrf.mxu0 }
 0x9cb   :  { %v2852_v5 = vadd.f32 %v2851_v26, %v2654_v3  ;;  %v2927_v26 = vld [vmem:[%s6140_s0 + $0x18] sm:$0xff] }
 0x9cd   :  { %v2853_v45 = vadd.f32 %v2852_v5, %v2656_v8  ;;  %v2928_v5 = vld [vmem:[%s6140_s0 + $0x20] sm:$0xff] }
 0x9d0   :  { %v2773_v23 = vpop.f32.mrf.mxu1  ;;  %v2844_v46 = vpop.f32.mrf.mxu0 }
 0x9d1   :  { %v2854_v15 = vadd.f32 %v2853_v45, %v2773_v23  ;;  %v2930_v45 = vld [vmem:[%s6140_s0 + $0x30] sm:$0xff] }
 0x9d2   :  { %v2775_v41 = vpop.f32.mrf.mxu1  ;;  %v2846_v33 = vpop.f32.mrf.mxu0 }
 0x9d3   :  { %v2855_v42 = vadd.f32 %v2854_v15, %v2775_v41 }
 0x9d5   :  { %v2856_v51 = vadd.f32 %v2855_v42, %v2844_v46 }
 0x9d7   :  { %v2857_v36 = vadd.f32 %v2856_v51, %v2846_v33 }
 0x9d9   :  { %2858 = vadd.xlane.f32.xlu1 %v2857_v36 }
 0x9ea   :  { %2913 = vperm.xlu1 %3201, %v2850_v43  }
 0xa62   :  { %v2859_v44 = vpop.xlane.xlu1 %2858 }
 0xa63   :  { %v2861_v62 = vmul.f32 0.0009765625, %v2859_v44 }
 0xa65   :  { %v2862_v52 = vsub.f32 %v2583_v63, %v2861_v62  ;;  %v2863_v17 = vsub.f32 %v2585_v10, %v2861_v62  ;;  %v2864_v55 = vsub.f32 %v2654_v3, %v2861_v62  ;;  %v2865_v0 = vsub.f32 %v2656_v8, %v2861_v62  ;;  %v2926_v3 = vld [vmem:[%s6140_s0 + $0x10] sm:$0xff]  ;;  %v2929_v8 = vld [vmem:[%s6140_s0 + $0x28] sm:$0xff] }
 0xa66   :  { %v2866_v18 = vsub.f32 %v2773_v23, %v2861_v62  ;;  %v2867_v47 = vsub.f32 %v2775_v41, %v2861_v62  ;;  %v2868_v50 = vsub.f32 %v2844_v46, %v2861_v62  ;;  %v2869_v57 = vsub.f32 %v2846_v33, %v2861_v62  ;;  %v2914_v37 = vpop.permute.xlu1 %2913  ;;  %v2931_v23 = vld [vmem:[%s6140_s0 + $0x38] sm:$0xff]  ;;  %s3220_s0 = scalar_lea.vmem %s2955_s20, 1024 }
 0xa67   :  { %v2870_v48 = vmul.f32 %v2862_v52, %v2862_v52  ;;  %v2871_v35 = vmul.f32 %v2863_v17, %v2863_v17  ;;  %v2872_v13 = vmul.f32 %v2864_v55, %v2864_v55  ;;  %v2873_v11 = vmul.f32 %v2865_v0, %v2865_v0  ;;  %p3221_p1 = scmp.ne.s32.totalorder %s2955_s20, %s3220_s0  ;;  %p3226_p3 = scmp.lt.s32.totalorder %s3220_s0, %s3220_s0 }
 0xa68   :  { %v2874_v58 = vmul.f32 %v2866_v18, %v2866_v18  ;;  %v2875_v6 = vmul.f32 %v2867_v47, %v2867_v47  ;;  %v2876_v38 = vmul.f32 %v2868_v50, %v2868_v50  ;;  %v2877_v34 = vmul.f32 %v2869_v57, %v2869_v57 }
 0xa69   :  { %v2878_v61 = vadd.f32 %v2871_v35, %v2870_v48  ;;  %p3227_p4 = por %p3226_p3, %p3225_p2 }
 0xa6b   :  { %v2879_v16 = vadd.f32 %v2878_v61, %v2872_v13  ;;  %p3228_p5 = pnand %p3227_p4, %p3221_p1 }
 0xa6d   :  { %v2880_v53 = vadd.f32 %v2879_v16, %v2873_v11 }
 0xa6f   :  { %v2881_v54 = vadd.f32 %v2880_v53, %v2874_v58 }
 0xa71   :  { %v2882_v20 = vadd.f32 %v2881_v54, %v2875_v6 }
 0xa73   :  { %v2883_v14 = vadd.f32 %v2882_v20, %v2876_v38 }
 0xa75   :  { %v2884_v39 = vadd.f32 %v2883_v14, %v2877_v34 }
 0xa77   :  { %2885 = vadd.xlane.f32.xlu0 %v2884_v39 }
 0xa8d   :  { %2900 = vperm.xlu0 %3200, %v2849_v27  }
 0xb00   :  { %v2886_v49 = vpop.xlane.xlu0 %2885 }
 0xb01   :  { %v2887_v12 = vmul.f32 0.0009765625, %v2886_v49 }
 0xb03   :  { %v2888_v7 = vadd.f32 1e-05, %v2887_v12 }
 0xb05   :  { %3218 = vrsqrt.f32 %v2888_v7 }
 0xb08   :  { %v2901_v59 = vpop.permute.xlu0 %2900 }
 0xb12   :  { %v3219_v1 = vpop.eup %3218 }
 0xb13   :  { %v2890_v40 = vmul.f32 %v3219_v1, %v2862_v52  ;;  %v2891_v19 = vmul.f32 %v3219_v1, %v2863_v17  ;;  %v2892_v56 = vmul.f32 %v3219_v1, %v2864_v55  ;;  %v2893_v24 = vmul.f32 %v3219_v1, %v2865_v0 }
 0xb14   :  { %v2894_v31 = vmul.f32 %v3219_v1, %v2866_v18  ;;  %v2895_v2 = vmul.f32 %v3219_v1, %v2867_v47  ;;  %v2896_v29 = vmul.f32 %v3219_v1, %v2868_v50  ;;  %v2897_v9 = vmul.f32 %v3219_v1, %v2869_v57 }
 0xb15   :  { %v2903_v60 = vmul.f32 %v2901_v59, %v2890_v40  ;;  %v2904_v4 = vmul.f32 %v2901_v59, %v2891_v19  ;;  %v2905_v30 = vmul.f32 %v2901_v59, %v2892_v56  ;;  %v2906_v32 = vmul.f32 %v2901_v59, %v2893_v24 }
 0xb16   :  { %v2907_v28 = vmul.f32 %v2901_v59, %v2894_v31  ;;  %v2908_v25 = vmul.f32 %v2901_v59, %v2895_v2  ;;  %v2909_v63 = vmul.f32 %v2901_v59, %v2896_v29  ;;  %v2910_v10 = vmul.f32 %v2901_v59, %v2897_v9 }
 0xb17   :  { %v2916_v15 = vadd.f32 %v2914_v37, %v2903_v60  ;;  %v2917_v41 = vadd.f32 %v2914_v37, %v2904_v4  ;;  %v2918_v46 = vadd.f32 %v2914_v37, %v2905_v30  ;;  %v2919_v42 = vadd.f32 %v2914_v37, %v2906_v32 }
 0xb18   :  { %v2920_v51 = vadd.f32 %v2914_v37, %v2907_v28  ;;  %v2921_v33 = vadd.f32 %v2914_v37, %v2908_v25  ;;  %v2922_v36 = vadd.f32 %v2914_v37, %v2909_v63  ;;  %v2923_v43 = vadd.f32 %v2914_v37, %v2910_v10 }
 0xb19   :  { %v2932_v44 = vadd.f32 %v2924_v21, %v2916_v15  ;;  %v2933_v62 = vadd.f32 %v2925_v22, %v2917_v41  ;;  %v2934_v52 = vadd.f32 %v2926_v3, %v2918_v46  ;;  %v2935_v17 = vadd.f32 %v2927_v26, %v2919_v42 }
 0xb1a   :  { %v2936_v55 = vadd.f32 %v2928_v5, %v2920_v51  ;;  %v2937_v0 = vadd.f32 %v2929_v8, %v2921_v33  ;;  %v2938_v48 = vadd.f32 %v2930_v45, %v2922_v36  ;;  %v2939_v35 = vadd.f32 %v2931_v23, %v2923_v43 }
 0xb1b   :  { %2940 = vst [vmem:[#allocation4] sm:$0xff] %v2932_v44  ;;  %2941 = vst [vmem:[#allocation4 + $0x8] sm:$0xff] %v2933_v62 }
 0xb1c   :  { %2942 = vst [vmem:[#allocation4 + $0x10] sm:$0xff] %v2934_v52  ;;  %2943 = vst [vmem:[#allocation4 + $0x18] sm:$0xff] %v2935_v17 }
 0xb1d   :  { %2944 = vst [vmem:[#allocation4 + $0x20] sm:$0xff] %v2936_v55  ;;  %2945 = vst [vmem:[#allocation4 + $0x28] sm:$0xff] %v2937_v0 }
 0xb1e   :  { %2946 = vst [vmem:[#allocation4 + $0x30] sm:$0xff] %v2938_v48  ;;  %2947 = vst [vmem:[#allocation4 + $0x38] sm:$0xff] %v2939_v35 }
 0xb1f   :  { %3231 = shalt.err (!%p3228_p5)
}
 0xb20   :  { %2957 = dma.vmem_to_hbm [thread:$0]  %s2955_s20, 1024, %s6155_s15, [#allocation5]  }
 0xb21   :  { %3244 = dma.done.wait [#allocation5], 1024  }
 0xb22   :  { %3245 = vsyncadd [#allocation5], 4294966272 }
 0xb23   :  { %2961 = vsyncpa [#allocation5], 1 }

</bundles_post_ra>
